<compile_context>
chip_gen: v7x
topology: tpu7x:2x2x1
jax: 0.10.0
libtpu: 0.0.40
codegen_flags: <defaults>
</compile_context>

<pallas_src>
import functools
import math

import jax
import jax.numpy as jnp
from jax.experimental import pallas as pl
from jax.experimental.pallas import tpu as pltpu


# ----------------------------- fused kernel -----------------------------

def _layernorm(x, g, b):
    # LayerNorm over the last (feature) axis, eps=1e-5 (PyTorch default).
    mean = jnp.mean(x, axis=-1, keepdims=True)
    var = jnp.mean(jnp.square(x - mean), axis=-1, keepdims=True)
    return (x - mean) * jax.lax.rsqrt(var + 1e-5) * g + b


def _xp2label_kernel(
    # inputs
    x_ref, proj_w_ref, proj_b_ref, pos_ref,
    in_w_ref, in_b_ref, out_w_ref, out_b_ref,
    ff1_w_ref, ff1_b_ref, ff2_w_ref, ff2_b_ref,
    ln1_g_ref, ln1_b_ref, ln2_g_ref, ln2_b_ref,
    fc1_w_ref, fc1_b_ref, fc2_w_ref, fc2_b_ref, fc3_w_ref, fc3_b_ref,
    # output
    o_ref,
    # VMEM scratch
    attn_buf,
    *, B, S, C, H, L):
    Dh = C // H
    scale = 1.0 / math.sqrt(Dh)

    # ---- input projection (Linear(1, C)) + positional embedding add ----
    # pos_ref is pre-tiled to (B*S, C) by the wrapper.
    # TODO(synk): nn.Dropout layers are eval-mode identity; training-mode RNG dropout not modeled.
    h = x_ref[...] * proj_w_ref[...] + proj_b_ref[...] + pos_ref[...]      # (B*S, C)

    # ---- transformer encoder layers (post-norm, ReLU, dropout = identity) ----
    for l in range(L):
        # QKV projection (PyTorch in_proj stacking -> columns [0:C | C:2C | 2C:3C])
        qkv = jnp.dot(h, in_w_ref[l], preferred_element_type=jnp.float32) + in_b_ref[l]

        # per-(batch, head) scaled dot-product attention, statically unrolled
        for b in range(B):
            r0 = b * S
            for hh in range(H):
                c0 = hh * Dh
                qh = qkv[r0:r0 + S, c0:c0 + Dh]                         # (S, Dh)
                kh = qkv[r0:r0 + S, C + c0:C + c0 + Dh]                 # (S, Dh)
                vh = qkv[r0:r0 + S, 2 * C + c0:2 * C + c0 + Dh]         # (S, Dh)
                s = jax.lax.dot_general(
                    qh, kh, (((1,), (1,)), ((), ())),
                    preferred_element_type=jnp.float32) * scale         # (S, S)
                s = s - jnp.max(s, axis=-1, keepdims=True)
                p = jnp.exp(s)
                p = p * pl.reciprocal(jnp.sum(p, axis=-1, keepdims=True), approx=True)
                attn_buf[pl.ds(r0, S), pl.ds(c0, Dh)] = jnp.dot(
                    p, vh, preferred_element_type=jnp.float32)           # (S, Dh)

        # out projection + residual + LN1
        attn_out = (
            jnp.dot(attn_buf[...], out_w_ref[l], preferred_element_type=jnp.float32)
            + out_b_ref[l])
        h = _layernorm(h + attn_out, ln1_g_ref[l], ln1_b_ref[l])

        # feed-forward + residual + LN2
        ff = jnp.maximum(
            jnp.dot(h, ff1_w_ref[l], preferred_element_type=jnp.float32) + ff1_b_ref[l],
            0.0)
        ff = jnp.dot(ff, ff2_w_ref[l], preferred_element_type=jnp.float32) + ff2_b_ref[l]
        h = _layernorm(h + ff, ln2_g_ref[l], ln2_b_ref[l])

    # ---- flatten(start_dim=1) + MLP head ----
    # flat[b, s*C + c] == h[b*S + s, c]; fc1_w is passed stacked as (S, C, 1024), so
    # flat @ W1 == sum_s h[b, s, :] @ W1[s].  Loop s-outer so each weight slice is
    # read from VMEM once.
    fc1_b = fc1_b_ref[...]                                               # (1, 1024)
    accs = [fc1_b] * B
    for s_idx in range(S):
        w_s = fc1_w_ref[s_idx]                                           # (C, 1024)
        for b in range(B):
            row = h[b * S + s_idx:b * S + s_idx + 1, :]                  # (1, C)
            accs[b] = accs[b] + jnp.dot(row, w_s, preferred_element_type=jnp.float32)

    fc2_w = fc2_w_ref[...]
    fc2_b = fc2_b_ref[...]
    fc3_w = fc3_w_ref[...]
    fc3_b = fc3_b_ref[...]
    for b in range(B):
        h1 = jnp.maximum(accs[b], 0.0)
        h2 = jnp.maximum(
            jnp.dot(h1, fc2_w, preferred_element_type=jnp.float32) + fc2_b, 0.0)
        h3 = jnp.maximum(
            jnp.dot(h2, fc3_w, preferred_element_type=jnp.float32) + fc3_b, 0.0)
        o_ref[pl.ds(b, 1), :] = h3.astype(o_ref.dtype)                   # (1, n_out)


# ----------------------------- wrapper -----------------------------

def xp2label_forward(x, params, *, n_enc, channels, n_heads, n_layers):
    S, C, H, L = n_enc, channels, n_heads, n_layers
    x2d = x.reshape(-1, 1).astype(jnp.float32)        # x.view(-1, n_enc, 1) flattened to (B*S, 1)
    B = x2d.shape[0] // S
    n_out = params["fc3_b"].shape[1]
    pos = jnp.tile(params["pos_emb"][:S], (B, 1))     # (B*S, C) — 2 KB, negligible
    fc1_w3 = params["fc1_w"].reshape(S, C, -1)        # (S, C, 1024), s-major like torch.flatten

    return pl.pallas_call(
        functools.partial(_xp2label_kernel, B=B, S=S, C=C, H=H, L=L),
        out_shape=jax.ShapeDtypeStruct((B, n_out), jnp.float32),
        scratch_shapes=[
            pltpu.VMEM((B * S, C), jnp.float32),      # multi-head attention output
        ],
    )(
        x2d, params["proj_w"], params["proj_b"], pos,
        params["in_w"], params["in_b"], params["out_w"], params["out_b"],
        params["ff1_w"], params["ff1_b"], params["ff2_w"], params["ff2_b"],
        params["ln1_g"], params["ln1_b"], params["ln2_g"], params["ln2_b"],
        fc1_w3, params["fc1_b"], params["fc2_w"], params["fc2_b"],
        params["fc3_w"], params["fc3_b"],
    )


# ----------------------------- deterministic params -----------------------------
# All matmul weights are stored pre-transposed in (K, N) layout; per-layer weights are
# stacked on a leading layer axis; biases / LN params carry a singleton row dim.

def init_params(key, n_enc, C, H, L, n_out):
    ks = jax.random.split(key, 9)

    def w(k, shape, scale):
        return jax.random.normal(k, shape, dtype=jnp.float32) * scale

    return {
        "pos_emb": w(ks[0], (128, C), 0.02),
        "proj_w": w(ks[1], (1, C), 0.5),                       # Linear(1, C), (K, N)
        "proj_b": jnp.zeros((1, C), jnp.float32),
        # stacked encoder-layer weights
        "in_w": w(ks[2], (L, C, 3 * C), 0.05),                 # MHA in_proj^T
        "in_b": jnp.zeros((L, 1, 3 * C), jnp.float32),
        "out_w": w(ks[3], (L, C, C), 0.05),                    # MHA out_proj^T
        "out_b": jnp.zeros((L, 1, C), jnp.float32),
        "ff1_w": w(ks[4], (L, C, 4 * C), 0.05),                # linear1^T
        "ff1_b": jnp.zeros((L, 1, 4 * C), jnp.float32),
        "ff2_w": w(ks[5], (L, 4 * C, C), 0.05),                # linear2^T
        "ff2_b": jnp.zeros((L, 1, C), jnp.float32),
        "ln1_g": jnp.ones((L, 1, C), jnp.float32),
        "ln1_b": jnp.zeros((L, 1, C), jnp.float32),
        "ln2_g": jnp.ones((L, 1, C), jnp.float32),
        "ln2_b": jnp.zeros((L, 1, C), jnp.float32),
        # MLP head
        "fc1_w": w(ks[6], (C * n_enc, 1024), 0.02),
        "fc1_b": jnp.zeros((1, 1024), jnp.float32),
        "fc2_w": w(ks[7], (1024, 64), 0.02),
        "fc2_b": jnp.zeros((1, 64), jnp.float32),
        "fc3_w": w(ks[8], (64, n_out), 0.02),
        "fc3_b": jnp.zeros((1, n_out), jnp.float32),
    }


# ----------------------------- main -----------------------------

if __name__ == "__main__":
    # small config: batch=2, n_encoder_inputs(seq)=8, channels=32, heads=4, layers=2, outputs=3
    B, N_ENC, C, H, L, N_OUT = 2, 8, 32, 4, 2, 3

    key = jax.random.PRNGKey(0)
    params = init_params(key, N_ENC, C, H, L, N_OUT)
    x = jax.random.normal(jax.random.fold_in(key, 999), (B, N_ENC), dtype=jnp.float32)

    fwd = jax.jit(functools.partial(
        xp2label_forward, n_enc=N_ENC, channels=C, n_heads=H, n_layers=L))
    out = fwd(x, params)
    out = jax.block_until_ready(out)

    assert out.shape == (B, N_OUT), out.shape
    assert bool(jnp.all(jnp.isfinite(out)))
    print("KERNEL_OK")
</pallas_src>

<mosaic_0001>
module attributes {stable_mosaic.version = 11 : i64} {
  func.func @_xp2label_kernel(%arg0: memref<16x1xf32, #tpu.memory_space<vmem>>, %arg1: memref<1x32xf32, #tpu.memory_space<vmem>>, %arg2: memref<1x32xf32, #tpu.memory_space<vmem>>, %arg3: memref<16x32xf32, #tpu.memory_space<vmem>>, %arg4: memref<2x32x96xf32, #tpu.memory_space<vmem>>, %arg5: memref<2x1x96xf32, #tpu.memory_space<vmem>>, %arg6: memref<2x32x32xf32, #tpu.memory_space<vmem>>, %arg7: memref<2x1x32xf32, #tpu.memory_space<vmem>>, %arg8: memref<2x32x128xf32, #tpu.memory_space<vmem>>, %arg9: memref<2x1x128xf32, #tpu.memory_space<vmem>>, %arg10: memref<2x128x32xf32, #tpu.memory_space<vmem>>, %arg11: memref<2x1x32xf32, #tpu.memory_space<vmem>>, %arg12: memref<2x1x32xf32, #tpu.memory_space<vmem>>, %arg13: memref<2x1x32xf32, #tpu.memory_space<vmem>>, %arg14: memref<2x1x32xf32, #tpu.memory_space<vmem>>, %arg15: memref<2x1x32xf32, #tpu.memory_space<vmem>>, %arg16: memref<8x32x1024xf32, #tpu.memory_space<vmem>>, %arg17: memref<1x1024xf32, #tpu.memory_space<vmem>>, %arg18: memref<1024x64xf32, #tpu.memory_space<vmem>>, %arg19: memref<1x64xf32, #tpu.memory_space<vmem>>, %arg20: memref<64x3xf32, #tpu.memory_space<vmem>>, %arg21: memref<1x3xf32, #tpu.memory_space<vmem>>, %arg22: memref<2x3xf32, #tpu.memory_space<vmem>>, %arg23: memref<16x32xf32, #tpu.memory_space<vmem>>) attributes {dimension_semantics = [], scalar_prefetch = 0 : i64, scratch_operands = 1 : i64, tpu.core_type = #tpu.core_type<tc>} {
    %c0 = arith.constant 0 : index
    %c0_0 = arith.constant 0 : index
    %0 = vector.load %arg0[%c0, %c0_0] : memref<16x1xf32, #tpu.memory_space<vmem>>, vector<16x1xf32>
    %c0_1 = arith.constant 0 : index
    %c0_2 = arith.constant 0 : index
    %1 = vector.load %arg1[%c0_1, %c0_2] : memref<1x32xf32, #tpu.memory_space<vmem>>, vector<1x32xf32>
    %2 = vector.broadcast %0 : vector<16x1xf32> to vector<16x32xf32>
    %3 = vector.broadcast %1 : vector<1x32xf32> to vector<16x32xf32>
    %4 = arith.mulf %2, %3 : vector<16x32xf32>
    %c0_3 = arith.constant 0 : index
    %c0_4 = arith.constant 0 : index
    %5 = vector.load %arg2[%c0_3, %c0_4] : memref<1x32xf32, #tpu.memory_space<vmem>>, vector<1x32xf32>
    %6 = vector.broadcast %5 : vector<1x32xf32> to vector<16x32xf32>
    %7 = arith.addf %4, %6 : vector<16x32xf32>
    %c0_5 = arith.constant 0 : index
    %c0_6 = arith.constant 0 : index
    %8 = vector.load %arg3[%c0_5, %c0_6] : memref<16x32xf32, #tpu.memory_space<vmem>>, vector<16x32xf32>
    %9 = arith.addf %7, %8 : vector<16x32xf32>
    %c0_7 = arith.constant 0 : index
    %c0_8 = arith.constant 0 : index
    %c0_9 = arith.constant 0 : index
    %10 = vector.load %arg4[%c0_7, %c0_8, %c0_9] : memref<2x32x96xf32, #tpu.memory_space<vmem>>, vector<1x32x96xf32>
    %11 = vector.shape_cast %10 : vector<1x32x96xf32> to vector<32x96xf32>
    %cst = arith.constant dense<0.000000e+00> : vector<16x96xf32>
    %12 = tpu.matmul %9, %11, %cst {dimension_numbers = #tpu.dot_dimension_numbers<[1], [0], [0], [1], [0, 0, 1, 1], [], []>} : vector<16x32xf32>, vector<32x96xf32>, vector<16x96xf32> -> vector<16x96xf32>
    %c0_10 = arith.constant 0 : index
    %c0_11 = arith.constant 0 : index
    %c0_12 = arith.constant 0 : index
    %13 = vector.load %arg5[%c0_10, %c0_11, %c0_12] : memref<2x1x96xf32, #tpu.memory_space<vmem>>, vector<1x1x96xf32>
    %14 = vector.shape_cast %13 : vector<1x1x96xf32> to vector<1x96xf32>
    %15 = vector.broadcast %14 : vector<1x96xf32> to vector<16x96xf32>
    %16 = arith.addf %12, %15 : vector<16x96xf32>
    %17 = vector.extract_strided_slice %16 {offsets = [0, 0], sizes = [8, 8], strides = [1, 1]} : vector<16x96xf32> to vector<8x8xf32>
    %18 = vector.extract_strided_slice %16 {offsets = [0, 32], sizes = [8, 8], strides = [1, 1]} : vector<16x96xf32> to vector<8x8xf32>
    %19 = vector.extract_strided_slice %16 {offsets = [0, 64], sizes = [8, 8], strides = [1, 1]} : vector<16x96xf32> to vector<8x8xf32>
    %cst_13 = arith.constant dense<0.000000e+00> : vector<8x8xf32>
    %20 = tpu.matmul %17, %18, %cst_13 {dimension_numbers = #tpu.dot_dimension_numbers<[1], [1], [0], [0], [0, 0, 1, 0], [], []>} : vector<8x8xf32>, vector<8x8xf32>, vector<8x8xf32> -> vector<8x8xf32>
    %cst_14 = arith.constant 0.353553385 : f32
    %21 = vector.broadcast %cst_14 : f32 to vector<8x8xf32>
    %22 = arith.mulf %20, %21 : vector<8x8xf32>
    %cst_15 = arith.constant dense<0xFF800000> : vector<8xf32>
    %23 = vector.multi_reduction <maximumf>, %22, %cst_15 [1] : vector<8x8xf32> to vector<8xf32>
    %24 = vector.shape_cast %23 : vector<8xf32> to vector<8x1xf32>
    %25 = vector.broadcast %24 : vector<8x1xf32> to vector<8x8xf32>
    %26 = arith.subf %22, %25 : vector<8x8xf32>
    %27 = math.exp %26 : vector<8x8xf32>
    %cst_16 = arith.constant dense<0.000000e+00> : vector<8xf32>
    %28 = vector.multi_reduction <add>, %27, %cst_16 [1] : vector<8x8xf32> to vector<8xf32>
    %29 = vector.shape_cast %28 : vector<8xf32> to vector<8x1xf32>
    %30 = tpu.reciprocal %29 {approx = true} : vector<8x1xf32> -> vector<8x1xf32>
    %31 = vector.broadcast %30 : vector<8x1xf32> to vector<8x8xf32>
    %32 = arith.mulf %27, %31 : vector<8x8xf32>
    %cst_17 = arith.constant dense<0.000000e+00> : vector<8x8xf32>
    %33 = tpu.matmul %32, %19, %cst_17 {dimension_numbers = #tpu.dot_dimension_numbers<[1], [0], [0], [1], [0, 0, 1, 1], [], []>} : vector<8x8xf32>, vector<8x8xf32>, vector<8x8xf32> -> vector<8x8xf32>
    %c0_18 = arith.constant 0 : index
    %c0_19 = arith.constant 0 : index
    %34 = vector.load %arg23[%c0_18, %c0_19] : memref<16x32xf32, #tpu.memory_space<vmem>>, vector<8x8xf32>
    tpu.vector_store %arg23[%c0_18, %c0_19], %33 {strides = array<i32>} : memref<16x32xf32, #tpu.memory_space<vmem>>, vector<8x8xf32>,
    %35 = vector.extract_strided_slice %16 {offsets = [0, 8], sizes = [8, 8], strides = [1, 1]} : vector<16x96xf32> to vector<8x8xf32>
    %36 = vector.extract_strided_slice %16 {offsets = [0, 40], sizes = [8, 8], strides = [1, 1]} : vector<16x96xf32> to vector<8x8xf32>
    %37 = vector.extract_strided_slice %16 {offsets = [0, 72], sizes = [8, 8], strides = [1, 1]} : vector<16x96xf32> to vector<8x8xf32>
    %cst_20 = arith.constant dense<0.000000e+00> : vector<8x8xf32>
    %38 = tpu.matmul %35, %36, %cst_20 {dimension_numbers = #tpu.dot_dimension_numbers<[1], [1], [0], [0], [0, 0, 1, 0], [], []>} : vector<8x8xf32>, vector<8x8xf32>, vector<8x8xf32> -> vector<8x8xf32>
    %cst_21 = arith.constant 0.353553385 : f32
    %39 = vector.broadcast %cst_21 : f32 to vector<8x8xf32>
    %40 = arith.mulf %38, %39 : vector<8x8xf32>
    %cst_22 = arith.constant dense<0xFF800000> : vector<8xf32>
    %41 = vector.multi_reduction <maximumf>, %40, %cst_22 [1] : vector<8x8xf32> to vector<8xf32>
    %42 = vector.shape_cast %41 : vector<8xf32> to vector<8x1xf32>
    %43 = vector.broadcast %42 : vector<8x1xf32> to vector<8x8xf32>
    %44 = arith.subf %40, %43 : vector<8x8xf32>
    %45 = math.exp %44 : vector<8x8xf32>
    %cst_23 = arith.constant dense<0.000000e+00> : vector<8xf32>
    %46 = vector.multi_reduction <add>, %45, %cst_23 [1] : vector<8x8xf32> to vector<8xf32>
    %47 = vector.shape_cast %46 : vector<8xf32> to vector<8x1xf32>
    %48 = tpu.reciprocal %47 {approx = true} : vector<8x1xf32> -> vector<8x1xf32>
    %49 = vector.broadcast %48 : vector<8x1xf32> to vector<8x8xf32>
    %50 = arith.mulf %45, %49 : vector<8x8xf32>
    %cst_24 = arith.constant dense<0.000000e+00> : vector<8x8xf32>
    %51 = tpu.matmul %50, %37, %cst_24 {dimension_numbers = #tpu.dot_dimension_numbers<[1], [0], [0], [1], [0, 0, 1, 1], [], []>} : vector<8x8xf32>, vector<8x8xf32>, vector<8x8xf32> -> vector<8x8xf32>
    %c0_25 = arith.constant 0 : index
    %c8 = arith.constant 8 : index
    %52 = vector.load %arg23[%c0_25, %c8] : memref<16x32xf32, #tpu.memory_space<vmem>>, vector<8x8xf32>
    tpu.vector_store %arg23[%c0_25, %c8], %51 {strides = array<i32>} : memref<16x32xf32, #tpu.memory_space<vmem>>, vector<8x8xf32>,
    %53 = vector.extract_strided_slice %16 {offsets = [0, 16], sizes = [8, 8], strides = [1, 1]} : vector<16x96xf32> to vector<8x8xf32>
    %54 = vector.extract_strided_slice %16 {offsets = [0, 48], sizes = [8, 8], strides = [1, 1]} : vector<16x96xf32> to vector<8x8xf32>
    %55 = vector.extract_strided_slice %16 {offsets = [0, 80], sizes = [8, 8], strides = [1, 1]} : vector<16x96xf32> to vector<8x8xf32>
    %cst_26 = arith.constant dense<0.000000e+00> : vector<8x8xf32>
    %56 = tpu.matmul %53, %54, %cst_26 {dimension_numbers = #tpu.dot_dimension_numbers<[1], [1], [0], [0], [0, 0, 1, 0], [], []>} : vector<8x8xf32>, vector<8x8xf32>, vector<8x8xf32> -> vector<8x8xf32>
    %cst_27 = arith.constant 0.353553385 : f32
    %57 = vector.broadcast %cst_27 : f32 to vector<8x8xf32>
    %58 = arith.mulf %56, %57 : vector<8x8xf32>
    %cst_28 = arith.constant dense<0xFF800000> : vector<8xf32>
    %59 = vector.multi_reduction <maximumf>, %58, %cst_28 [1] : vector<8x8xf32> to vector<8xf32>
    %60 = vector.shape_cast %59 : vector<8xf32> to vector<8x1xf32>
    %61 = vector.broadcast %60 : vector<8x1xf32> to vector<8x8xf32>
    %62 = arith.subf %58, %61 : vector<8x8xf32>
    %63 = math.exp %62 : vector<8x8xf32>
    %cst_29 = arith.constant dense<0.000000e+00> : vector<8xf32>
    %64 = vector.multi_reduction <add>, %63, %cst_29 [1] : vector<8x8xf32> to vector<8xf32>
    %65 = vector.shape_cast %64 : vector<8xf32> to vector<8x1xf32>
    %66 = tpu.reciprocal %65 {approx = true} : vector<8x1xf32> -> vector<8x1xf32>
    %67 = vector.broadcast %66 : vector<8x1xf32> to vector<8x8xf32>
    %68 = arith.mulf %63, %67 : vector<8x8xf32>
    %cst_30 = arith.constant dense<0.000000e+00> : vector<8x8xf32>
    %69 = tpu.matmul %68, %55, %cst_30 {dimension_numbers = #tpu.dot_dimension_numbers<[1], [0], [0], [1], [0, 0, 1, 1], [], []>} : vector<8x8xf32>, vector<8x8xf32>, vector<8x8xf32> -> vector<8x8xf32>
    %c0_31 = arith.constant 0 : index
    %c16 = arith.constant 16 : index
    %70 = vector.load %arg23[%c0_31, %c16] : memref<16x32xf32, #tpu.memory_space<vmem>>, vector<8x8xf32>
    tpu.vector_store %arg23[%c0_31, %c16], %69 {strides = array<i32>} : memref<16x32xf32, #tpu.memory_space<vmem>>, vector<8x8xf32>,
    %71 = vector.extract_strided_slice %16 {offsets = [0, 24], sizes = [8, 8], strides = [1, 1]} : vector<16x96xf32> to vector<8x8xf32>
    %72 = vector.extract_strided_slice %16 {offsets = [0, 56], sizes = [8, 8], strides = [1, 1]} : vector<16x96xf32> to vector<8x8xf32>
    %73 = vector.extract_strided_slice %16 {offsets = [0, 88], sizes = [8, 8], strides = [1, 1]} : vector<16x96xf32> to vector<8x8xf32>
    %cst_32 = arith.constant dense<0.000000e+00> : vector<8x8xf32>
    %74 = tpu.matmul %71, %72, %cst_32 {dimension_numbers = #tpu.dot_dimension_numbers<[1], [1], [0], [0], [0, 0, 1, 0], [], []>} : vector<8x8xf32>, vector<8x8xf32>, vector<8x8xf32> -> vector<8x8xf32>
    %cst_33 = arith.constant 0.353553385 : f32
    %75 = vector.broadcast %cst_33 : f32 to vector<8x8xf32>
    %76 = arith.mulf %74, %75 : vector<8x8xf32>
    %cst_34 = arith.constant dense<0xFF800000> : vector<8xf32>
    %77 = vector.multi_reduction <maximumf>, %76, %cst_34 [1] : vector<8x8xf32> to vector<8xf32>
    %78 = vector.shape_cast %77 : vector<8xf32> to vector<8x1xf32>
    %79 = vector.broadcast %78 : vector<8x1xf32> to vector<8x8xf32>
    %80 = arith.subf %76, %79 : vector<8x8xf32>
    %81 = math.exp %80 : vector<8x8xf32>
    %cst_35 = arith.constant dense<0.000000e+00> : vector<8xf32>
    %82 = vector.multi_reduction <add>, %81, %cst_35 [1] : vector<8x8xf32> to vector<8xf32>
    %83 = vector.shape_cast %82 : vector<8xf32> to vector<8x1xf32>
    %84 = tpu.reciprocal %83 {approx = true} : vector<8x1xf32> -> vector<8x1xf32>
    %85 = vector.broadcast %84 : vector<8x1xf32> to vector<8x8xf32>
    %86 = arith.mulf %81, %85 : vector<8x8xf32>
    %cst_36 = arith.constant dense<0.000000e+00> : vector<8x8xf32>
    %87 = tpu.matmul %86, %73, %cst_36 {dimension_numbers = #tpu.dot_dimension_numbers<[1], [0], [0], [1], [0, 0, 1, 1], [], []>} : vector<8x8xf32>, vector<8x8xf32>, vector<8x8xf32> -> vector<8x8xf32>
    %c0_37 = arith.constant 0 : index
    %c24 = arith.constant 24 : index
    %88 = vector.load %arg23[%c0_37, %c24] : memref<16x32xf32, #tpu.memory_space<vmem>>, vector<8x8xf32>
    tpu.vector_store %arg23[%c0_37, %c24], %87 {strides = array<i32>} : memref<16x32xf32, #tpu.memory_space<vmem>>, vector<8x8xf32>,
    %89 = vector.extract_strided_slice %16 {offsets = [8, 0], sizes = [8, 8], strides = [1, 1]} : vector<16x96xf32> to vector<8x8xf32>
    %90 = vector.extract_strided_slice %16 {offsets = [8, 32], sizes = [8, 8], strides = [1, 1]} : vector<16x96xf32> to vector<8x8xf32>
    %91 = vector.extract_strided_slice %16 {offsets = [8, 64], sizes = [8, 8], strides = [1, 1]} : vector<16x96xf32> to vector<8x8xf32>
    %cst_38 = arith.constant dense<0.000000e+00> : vector<8x8xf32>
    %92 = tpu.matmul %89, %90, %cst_38 {dimension_numbers = #tpu.dot_dimension_numbers<[1], [1], [0], [0], [0, 0, 1, 0], [], []>} : vector<8x8xf32>, vector<8x8xf32>, vector<8x8xf32> -> vector<8x8xf32>
    %cst_39 = arith.constant 0.353553385 : f32
    %93 = vector.broadcast %cst_39 : f32 to vector<8x8xf32>
    %94 = arith.mulf %92, %93 : vector<8x8xf32>
    %cst_40 = arith.constant dense<0xFF800000> : vector<8xf32>
    %95 = vector.multi_reduction <maximumf>, %94, %cst_40 [1] : vector<8x8xf32> to vector<8xf32>
    %96 = vector.shape_cast %95 : vector<8xf32> to vector<8x1xf32>
    %97 = vector.broadcast %96 : vector<8x1xf32> to vector<8x8xf32>
    %98 = arith.subf %94, %97 : vector<8x8xf32>
    %99 = math.exp %98 : vector<8x8xf32>
    %cst_41 = arith.constant dense<0.000000e+00> : vector<8xf32>
    %100 = vector.multi_reduction <add>, %99, %cst_41 [1] : vector<8x8xf32> to vector<8xf32>
    %101 = vector.shape_cast %100 : vector<8xf32> to vector<8x1xf32>
    %102 = tpu.reciprocal %101 {approx = true} : vector<8x1xf32> -> vector<8x1xf32>
    %103 = vector.broadcast %102 : vector<8x1xf32> to vector<8x8xf32>
    %104 = arith.mulf %99, %103 : vector<8x8xf32>
    %cst_42 = arith.constant dense<0.000000e+00> : vector<8x8xf32>
    %105 = tpu.matmul %104, %91, %cst_42 {dimension_numbers = #tpu.dot_dimension_numbers<[1], [0], [0], [1], [0, 0, 1, 1], [], []>} : vector<8x8xf32>, vector<8x8xf32>, vector<8x8xf32> -> vector<8x8xf32>
    %c8_43 = arith.constant 8 : index
    %c0_44 = arith.constant 0 : index
    %106 = vector.load %arg23[%c8_43, %c0_44] : memref<16x32xf32, #tpu.memory_space<vmem>>, vector<8x8xf32>
    tpu.vector_store %arg23[%c8_43, %c0_44], %105 {strides = array<i32>} : memref<16x32xf32, #tpu.memory_space<vmem>>, vector<8x8xf32>,
    %107 = vector.extract_strided_slice %16 {offsets = [8, 8], sizes = [8, 8], strides = [1, 1]} : vector<16x96xf32> to vector<8x8xf32>
    %108 = vector.extract_strided_slice %16 {offsets = [8, 40], sizes = [8, 8], strides = [1, 1]} : vector<16x96xf32> to vector<8x8xf32>
    %109 = vector.extract_strided_slice %16 {offsets = [8, 72], sizes = [8, 8], strides = [1, 1]} : vector<16x96xf32> to vector<8x8xf32>
    %cst_45 = arith.constant dense<0.000000e+00> : vector<8x8xf32>
    %110 = tpu.matmul %107, %108, %cst_45 {dimension_numbers = #tpu.dot_dimension_numbers<[1], [1], [0], [0], [0, 0, 1, 0], [], []>} : vector<8x8xf32>, vector<8x8xf32>, vector<8x8xf32> -> vector<8x8xf32>
    %cst_46 = arith.constant 0.353553385 : f32
    %111 = vector.broadcast %cst_46 : f32 to vector<8x8xf32>
    %112 = arith.mulf %110, %111 : vector<8x8xf32>
    %cst_47 = arith.constant dense<0xFF800000> : vector<8xf32>
    %113 = vector.multi_reduction <maximumf>, %112, %cst_47 [1] : vector<8x8xf32> to vector<8xf32>
    %114 = vector.shape_cast %113 : vector<8xf32> to vector<8x1xf32>
    %115 = vector.broadcast %114 : vector<8x1xf32> to vector<8x8xf32>
    %116 = arith.subf %112, %115 : vector<8x8xf32>
    %117 = math.exp %116 : vector<8x8xf32>
    %cst_48 = arith.constant dense<0.000000e+00> : vector<8xf32>
    %118 = vector.multi_reduction <add>, %117, %cst_48 [1] : vector<8x8xf32> to vector<8xf32>
    %119 = vector.shape_cast %118 : vector<8xf32> to vector<8x1xf32>
    %120 = tpu.reciprocal %119 {approx = true} : vector<8x1xf32> -> vector<8x1xf32>
    %121 = vector.broadcast %120 : vector<8x1xf32> to vector<8x8xf32>
    %122 = arith.mulf %117, %121 : vector<8x8xf32>
    %cst_49 = arith.constant dense<0.000000e+00> : vector<8x8xf32>
    %123 = tpu.matmul %122, %109, %cst_49 {dimension_numbers = #tpu.dot_dimension_numbers<[1], [0], [0], [1], [0, 0, 1, 1], [], []>} : vector<8x8xf32>, vector<8x8xf32>, vector<8x8xf32> -> vector<8x8xf32>
    %c8_50 = arith.constant 8 : index
    %c8_51 = arith.constant 8 : index
    %124 = vector.load %arg23[%c8_50, %c8_51] : memref<16x32xf32, #tpu.memory_space<vmem>>, vector<8x8xf32>
    tpu.vector_store %arg23[%c8_50, %c8_51], %123 {strides = array<i32>} : memref<16x32xf32, #tpu.memory_space<vmem>>, vector<8x8xf32>,
    %125 = vector.extract_strided_slice %16 {offsets = [8, 16], sizes = [8, 8], strides = [1, 1]} : vector<16x96xf32> to vector<8x8xf32>
    %126 = vector.extract_strided_slice %16 {offsets = [8, 48], sizes = [8, 8], strides = [1, 1]} : vector<16x96xf32> to vector<8x8xf32>
    %127 = vector.extract_strided_slice %16 {offsets = [8, 80], sizes = [8, 8], strides = [1, 1]} : vector<16x96xf32> to vector<8x8xf32>
    %cst_52 = arith.constant dense<0.000000e+00> : vector<8x8xf32>
    %128 = tpu.matmul %125, %126, %cst_52 {dimension_numbers = #tpu.dot_dimension_numbers<[1], [1], [0], [0], [0, 0, 1, 0], [], []>} : vector<8x8xf32>, vector<8x8xf32>, vector<8x8xf32> -> vector<8x8xf32>
    %cst_53 = arith.constant 0.353553385 : f32
    %129 = vector.broadcast %cst_53 : f32 to vector<8x8xf32>
    %130 = arith.mulf %128, %129 : vector<8x8xf32>
    %cst_54 = arith.constant dense<0xFF800000> : vector<8xf32>
    %131 = vector.multi_reduction <maximumf>, %130, %cst_54 [1] : vector<8x8xf32> to vector<8xf32>
    %132 = vector.shape_cast %131 : vector<8xf32> to vector<8x1xf32>
    %133 = vector.broadcast %132 : vector<8x1xf32> to vector<8x8xf32>
    %134 = arith.subf %130, %133 : vector<8x8xf32>
    %135 = math.exp %134 : vector<8x8xf32>
    %cst_55 = arith.constant dense<0.000000e+00> : vector<8xf32>
    %136 = vector.multi_reduction <add>, %135, %cst_55 [1] : vector<8x8xf32> to vector<8xf32>
    %137 = vector.shape_cast %136 : vector<8xf32> to vector<8x1xf32>
    %138 = tpu.reciprocal %137 {approx = true} : vector<8x1xf32> -> vector<8x1xf32>
    %139 = vector.broadcast %138 : vector<8x1xf32> to vector<8x8xf32>
    %140 = arith.mulf %135, %139 : vector<8x8xf32>
    %cst_56 = arith.constant dense<0.000000e+00> : vector<8x8xf32>
    %141 = tpu.matmul %140, %127, %cst_56 {dimension_numbers = #tpu.dot_dimension_numbers<[1], [0], [0], [1], [0, 0, 1, 1], [], []>} : vector<8x8xf32>, vector<8x8xf32>, vector<8x8xf32> -> vector<8x8xf32>
    %c8_57 = arith.constant 8 : index
    %c16_58 = arith.constant 16 : index
    %142 = vector.load %arg23[%c8_57, %c16_58] : memref<16x32xf32, #tpu.memory_space<vmem>>, vector<8x8xf32>
    tpu.vector_store %arg23[%c8_57, %c16_58], %141 {strides = array<i32>} : memref<16x32xf32, #tpu.memory_space<vmem>>, vector<8x8xf32>,
    %143 = vector.extract_strided_slice %16 {offsets = [8, 24], sizes = [8, 8], strides = [1, 1]} : vector<16x96xf32> to vector<8x8xf32>
    %144 = vector.extract_strided_slice %16 {offsets = [8, 56], sizes = [8, 8], strides = [1, 1]} : vector<16x96xf32> to vector<8x8xf32>
    %145 = vector.extract_strided_slice %16 {offsets = [8, 88], sizes = [8, 8], strides = [1, 1]} : vector<16x96xf32> to vector<8x8xf32>
    %cst_59 = arith.constant dense<0.000000e+00> : vector<8x8xf32>
    %146 = tpu.matmul %143, %144, %cst_59 {dimension_numbers = #tpu.dot_dimension_numbers<[1], [1], [0], [0], [0, 0, 1, 0], [], []>} : vector<8x8xf32>, vector<8x8xf32>, vector<8x8xf32> -> vector<8x8xf32>
    %cst_60 = arith.constant 0.353553385 : f32
    %147 = vector.broadcast %cst_60 : f32 to vector<8x8xf32>
    %148 = arith.mulf %146, %147 : vector<8x8xf32>
    %cst_61 = arith.constant dense<0xFF800000> : vector<8xf32>
    %149 = vector.multi_reduction <maximumf>, %148, %cst_61 [1] : vector<8x8xf32> to vector<8xf32>
    %150 = vector.shape_cast %149 : vector<8xf32> to vector<8x1xf32>
    %151 = vector.broadcast %150 : vector<8x1xf32> to vector<8x8xf32>
    %152 = arith.subf %148, %151 : vector<8x8xf32>
    %153 = math.exp %152 : vector<8x8xf32>
    %cst_62 = arith.constant dense<0.000000e+00> : vector<8xf32>
    %154 = vector.multi_reduction <add>, %153, %cst_62 [1] : vector<8x8xf32> to vector<8xf32>
    %155 = vector.shape_cast %154 : vector<8xf32> to vector<8x1xf32>
    %156 = tpu.reciprocal %155 {approx = true} : vector<8x1xf32> -> vector<8x1xf32>
    %157 = vector.broadcast %156 : vector<8x1xf32> to vector<8x8xf32>
    %158 = arith.mulf %153, %157 : vector<8x8xf32>
    %cst_63 = arith.constant dense<0.000000e+00> : vector<8x8xf32>
    %159 = tpu.matmul %158, %145, %cst_63 {dimension_numbers = #tpu.dot_dimension_numbers<[1], [0], [0], [1], [0, 0, 1, 1], [], []>} : vector<8x8xf32>, vector<8x8xf32>, vector<8x8xf32> -> vector<8x8xf32>
    %c8_64 = arith.constant 8 : index
    %c24_65 = arith.constant 24 : index
    %160 = vector.load %arg23[%c8_64, %c24_65] : memref<16x32xf32, #tpu.memory_space<vmem>>, vector<8x8xf32>
    tpu.vector_store %arg23[%c8_64, %c24_65], %159 {strides = array<i32>} : memref<16x32xf32, #tpu.memory_space<vmem>>, vector<8x8xf32>,
    %c0_66 = arith.constant 0 : index
    %c0_67 = arith.constant 0 : index
    %161 = vector.load %arg23[%c0_66, %c0_67] : memref<16x32xf32, #tpu.memory_space<vmem>>, vector<16x32xf32>
    %c0_68 = arith.constant 0 : index
    %c0_69 = arith.constant 0 : index
    %c0_70 = arith.constant 0 : index
    %162 = vector.load %arg6[%c0_68, %c0_69, %c0_70] : memref<2x32x32xf32, #tpu.memory_space<vmem>>, vector<1x32x32xf32>
    %163 = vector.shape_cast %162 : vector<1x32x32xf32> to vector<32x32xf32>
    %cst_71 = arith.constant dense<0.000000e+00> : vector<16x32xf32>
    %164 = tpu.matmul %161, %163, %cst_71 {dimension_numbers = #tpu.dot_dimension_numbers<[1], [0], [0], [1], [0, 0, 1, 1], [], []>} : vector<16x32xf32>, vector<32x32xf32>, vector<16x32xf32> -> vector<16x32xf32>
    %c0_72 = arith.constant 0 : index
    %c0_73 = arith.constant 0 : index
    %c0_74 = arith.constant 0 : index
    %165 = vector.load %arg7[%c0_72, %c0_73, %c0_74] : memref<2x1x32xf32, #tpu.memory_space<vmem>>, vector<1x1x32xf32>
    %166 = vector.shape_cast %165 : vector<1x1x32xf32> to vector<1x32xf32>
    %167 = vector.broadcast %166 : vector<1x32xf32> to vector<16x32xf32>
    %168 = arith.addf %164, %167 : vector<16x32xf32>
    %169 = arith.addf %9, %168 : vector<16x32xf32>
    %c0_75 = arith.constant 0 : index
    %c0_76 = arith.constant 0 : index
    %c0_77 = arith.constant 0 : index
    %170 = vector.load %arg12[%c0_75, %c0_76, %c0_77] : memref<2x1x32xf32, #tpu.memory_space<vmem>>, vector<1x1x32xf32>
    %171 = vector.shape_cast %170 : vector<1x1x32xf32> to vector<1x32xf32>
    %c0_78 = arith.constant 0 : index
    %c0_79 = arith.constant 0 : index
    %c0_80 = arith.constant 0 : index
    %172 = vector.load %arg13[%c0_78, %c0_79, %c0_80] : memref<2x1x32xf32, #tpu.memory_space<vmem>>, vector<1x1x32xf32>
    %173 = vector.shape_cast %172 : vector<1x1x32xf32> to vector<1x32xf32>
    %cst_81 = arith.constant dense<0.000000e+00> : vector<16xf32>
    %174 = vector.multi_reduction <add>, %169, %cst_81 [1] : vector<16x32xf32> to vector<16xf32>
    %175 = vector.shape_cast %174 : vector<16xf32> to vector<16x1xf32>
    %cst_82 = arith.constant 3.200000e+01 : f32
    %176 = vector.broadcast %cst_82 : f32 to vector<16x1xf32>
    %177 = arith.divf %175, %176 : vector<16x1xf32>
    %178 = vector.broadcast %177 : vector<16x1xf32> to vector<16x32xf32>
    %179 = arith.subf %169, %178 : vector<16x32xf32>
    %180 = arith.mulf %179, %179 : vector<16x32xf32>
    %cst_83 = arith.constant dense<0.000000e+00> : vector<16xf32>
    %181 = vector.multi_reduction <add>, %180, %cst_83 [1] : vector<16x32xf32> to vector<16xf32>
    %182 = vector.shape_cast %181 : vector<16xf32> to vector<16x1xf32>
    %cst_84 = arith.constant 3.200000e+01 : f32
    %183 = vector.broadcast %cst_84 : f32 to vector<16x1xf32>
    %184 = arith.divf %182, %183 : vector<16x1xf32>
    %185 = vector.broadcast %177 : vector<16x1xf32> to vector<16x32xf32>
    %186 = arith.subf %169, %185 : vector<16x32xf32>
    %cst_85 = arith.constant 9.99999974E-6 : f32
    %187 = vector.broadcast %cst_85 : f32 to vector<16x1xf32>
    %188 = arith.addf %184, %187 : vector<16x1xf32>
    %189 = math.rsqrt %188 : vector<16x1xf32>
    %190 = vector.broadcast %189 : vector<16x1xf32> to vector<16x32xf32>
    %191 = arith.mulf %186, %190 : vector<16x32xf32>
    %192 = vector.broadcast %171 : vector<1x32xf32> to vector<16x32xf32>
    %193 = arith.mulf %191, %192 : vector<16x32xf32>
    %194 = vector.broadcast %173 : vector<1x32xf32> to vector<16x32xf32>
    %195 = arith.addf %193, %194 : vector<16x32xf32>
    %c0_86 = arith.constant 0 : index
    %c0_87 = arith.constant 0 : index
    %c0_88 = arith.constant 0 : index
    %196 = vector.load %arg8[%c0_86, %c0_87, %c0_88] : memref<2x32x128xf32, #tpu.memory_space<vmem>>, vector<1x32x128xf32>
    %197 = vector.shape_cast %196 : vector<1x32x128xf32> to vector<32x128xf32>
    %cst_89 = arith.constant dense<0.000000e+00> : vector<16x128xf32>
    %198 = tpu.matmul %195, %197, %cst_89 {dimension_numbers = #tpu.dot_dimension_numbers<[1], [0], [0], [1], [0, 0, 1, 1], [], []>} : vector<16x32xf32>, vector<32x128xf32>, vector<16x128xf32> -> vector<16x128xf32>
    %c0_90 = arith.constant 0 : index
    %c0_91 = arith.constant 0 : index
    %c0_92 = arith.constant 0 : index
    %199 = vector.load %arg9[%c0_90, %c0_91, %c0_92] : memref<2x1x128xf32, #tpu.memory_space<vmem>>, vector<1x1x128xf32>
    %200 = vector.shape_cast %199 : vector<1x1x128xf32> to vector<1x128xf32>
    %201 = vector.broadcast %200 : vector<1x128xf32> to vector<16x128xf32>
    %202 = arith.addf %198, %201 : vector<16x128xf32>
    %cst_93 = arith.constant 0.000000e+00 : f32
    %203 = vector.broadcast %cst_93 : f32 to vector<16x128xf32>
    %204 = arith.maximumf %202, %203 : vector<16x128xf32>
    %c0_94 = arith.constant 0 : index
    %c0_95 = arith.constant 0 : index
    %c0_96 = arith.constant 0 : index
    %205 = vector.load %arg10[%c0_94, %c0_95, %c0_96] : memref<2x128x32xf32, #tpu.memory_space<vmem>>, vector<1x128x32xf32>
    %206 = vector.shape_cast %205 : vector<1x128x32xf32> to vector<128x32xf32>
    %cst_97 = arith.constant dense<0.000000e+00> : vector<16x32xf32>
    %207 = tpu.matmul %204, %206, %cst_97 {dimension_numbers = #tpu.dot_dimension_numbers<[1], [0], [0], [1], [0, 0, 1, 1], [], []>} : vector<16x128xf32>, vector<128x32xf32>, vector<16x32xf32> -> vector<16x32xf32>
    %c0_98 = arith.constant 0 : index
    %c0_99 = arith.constant 0 : index
    %c0_100 = arith.constant 0 : index
    %208 = vector.load %arg11[%c0_98, %c0_99, %c0_100] : memref<2x1x32xf32, #tpu.memory_space<vmem>>, vector<1x1x32xf32>
    %209 = vector.shape_cast %208 : vector<1x1x32xf32> to vector<1x32xf32>
    %210 = vector.broadcast %209 : vector<1x32xf32> to vector<16x32xf32>
    %211 = arith.addf %207, %210 : vector<16x32xf32>
    %212 = arith.addf %195, %211 : vector<16x32xf32>
    %c0_101 = arith.constant 0 : index
    %c0_102 = arith.constant 0 : index
    %c0_103 = arith.constant 0 : index
    %213 = vector.load %arg14[%c0_101, %c0_102, %c0_103] : memref<2x1x32xf32, #tpu.memory_space<vmem>>, vector<1x1x32xf32>
    %214 = vector.shape_cast %213 : vector<1x1x32xf32> to vector<1x32xf32>
    %c0_104 = arith.constant 0 : index
    %c0_105 = arith.constant 0 : index
    %c0_106 = arith.constant 0 : index
    %215 = vector.load %arg15[%c0_104, %c0_105, %c0_106] : memref<2x1x32xf32, #tpu.memory_space<vmem>>, vector<1x1x32xf32>
    %216 = vector.shape_cast %215 : vector<1x1x32xf32> to vector<1x32xf32>
    %cst_107 = arith.constant dense<0.000000e+00> : vector<16xf32>
    %217 = vector.multi_reduction <add>, %212, %cst_107 [1] : vector<16x32xf32> to vector<16xf32>
    %218 = vector.shape_cast %217 : vector<16xf32> to vector<16x1xf32>
    %cst_108 = arith.constant 3.200000e+01 : f32
    %219 = vector.broadcast %cst_108 : f32 to vector<16x1xf32>
    %220 = arith.divf %218, %219 : vector<16x1xf32>
    %221 = vector.broadcast %220 : vector<16x1xf32> to vector<16x32xf32>
    %222 = arith.subf %212, %221 : vector<16x32xf32>
    %223 = arith.mulf %222, %222 : vector<16x32xf32>
    %cst_109 = arith.constant dense<0.000000e+00> : vector<16xf32>
    %224 = vector.multi_reduction <add>, %223, %cst_109 [1] : vector<16x32xf32> to vector<16xf32>
    %225 = vector.shape_cast %224 : vector<16xf32> to vector<16x1xf32>
    %cst_110 = arith.constant 3.200000e+01 : f32
    %226 = vector.broadcast %cst_110 : f32 to vector<16x1xf32>
    %227 = arith.divf %225, %226 : vector<16x1xf32>
    %228 = vector.broadcast %220 : vector<16x1xf32> to vector<16x32xf32>
    %229 = arith.subf %212, %228 : vector<16x32xf32>
    %cst_111 = arith.constant 9.99999974E-6 : f32
    %230 = vector.broadcast %cst_111 : f32 to vector<16x1xf32>
    %231 = arith.addf %227, %230 : vector<16x1xf32>
    %232 = math.rsqrt %231 : vector<16x1xf32>
    %233 = vector.broadcast %232 : vector<16x1xf32> to vector<16x32xf32>
    %234 = arith.mulf %229, %233 : vector<16x32xf32>
    %235 = vector.broadcast %214 : vector<1x32xf32> to vector<16x32xf32>
    %236 = arith.mulf %234, %235 : vector<16x32xf32>
    %237 = vector.broadcast %216 : vector<1x32xf32> to vector<16x32xf32>
    %238 = arith.addf %236, %237 : vector<16x32xf32>
    %c1 = arith.constant 1 : index
    %c0_112 = arith.constant 0 : index
    %c0_113 = arith.constant 0 : index
    %239 = vector.load %arg4[%c1, %c0_112, %c0_113] : memref<2x32x96xf32, #tpu.memory_space<vmem>>, vector<1x32x96xf32>
    %240 = vector.shape_cast %239 : vector<1x32x96xf32> to vector<32x96xf32>
    %cst_114 = arith.constant dense<0.000000e+00> : vector<16x96xf32>
    %241 = tpu.matmul %238, %240, %cst_114 {dimension_numbers = #tpu.dot_dimension_numbers<[1], [0], [0], [1], [0, 0, 1, 1], [], []>} : vector<16x32xf32>, vector<32x96xf32>, vector<16x96xf32> -> vector<16x96xf32>
    %c1_115 = arith.constant 1 : index
    %c0_116 = arith.constant 0 : index
    %c0_117 = arith.constant 0 : index
    %242 = vector.load %arg5[%c1_115, %c0_116, %c0_117] : memref<2x1x96xf32, #tpu.memory_space<vmem>>, vector<1x1x96xf32>
    %243 = vector.shape_cast %242 : vector<1x1x96xf32> to vector<1x96xf32>
    %244 = vector.broadcast %243 : vector<1x96xf32> to vector<16x96xf32>
    %245 = arith.addf %241, %244 : vector<16x96xf32>
    %246 = vector.extract_strided_slice %245 {offsets = [0, 0], sizes = [8, 8], strides = [1, 1]} : vector<16x96xf32> to vector<8x8xf32>
    %247 = vector.extract_strided_slice %245 {offsets = [0, 32], sizes = [8, 8], strides = [1, 1]} : vector<16x96xf32> to vector<8x8xf32>
    %248 = vector.extract_strided_slice %245 {offsets = [0, 64], sizes = [8, 8], strides = [1, 1]} : vector<16x96xf32> to vector<8x8xf32>
    %cst_118 = arith.constant dense<0.000000e+00> : vector<8x8xf32>
    %249 = tpu.matmul %246, %247, %cst_118 {dimension_numbers = #tpu.dot_dimension_numbers<[1], [1], [0], [0], [0, 0, 1, 0], [], []>} : vector<8x8xf32>, vector<8x8xf32>, vector<8x8xf32> -> vector<8x8xf32>
    %cst_119 = arith.constant 0.353553385 : f32
    %250 = vector.broadcast %cst_119 : f32 to vector<8x8xf32>
    %251 = arith.mulf %249, %250 : vector<8x8xf32>
    %cst_120 = arith.constant dense<0xFF800000> : vector<8xf32>
    %252 = vector.multi_reduction <maximumf>, %251, %cst_120 [1] : vector<8x8xf32> to vector<8xf32>
    %253 = vector.shape_cast %252 : vector<8xf32> to vector<8x1xf32>
    %254 = vector.broadcast %253 : vector<8x1xf32> to vector<8x8xf32>
    %255 = arith.subf %251, %254 : vector<8x8xf32>
    %256 = math.exp %255 : vector<8x8xf32>
    %cst_121 = arith.constant dense<0.000000e+00> : vector<8xf32>
    %257 = vector.multi_reduction <add>, %256, %cst_121 [1] : vector<8x8xf32> to vector<8xf32>
    %258 = vector.shape_cast %257 : vector<8xf32> to vector<8x1xf32>
    %259 = tpu.reciprocal %258 {approx = true} : vector<8x1xf32> -> vector<8x1xf32>
    %260 = vector.broadcast %259 : vector<8x1xf32> to vector<8x8xf32>
    %261 = arith.mulf %256, %260 : vector<8x8xf32>
    %cst_122 = arith.constant dense<0.000000e+00> : vector<8x8xf32>
    %262 = tpu.matmul %261, %248, %cst_122 {dimension_numbers = #tpu.dot_dimension_numbers<[1], [0], [0], [1], [0, 0, 1, 1], [], []>} : vector<8x8xf32>, vector<8x8xf32>, vector<8x8xf32> -> vector<8x8xf32>
    %c0_123 = arith.constant 0 : index
    %c0_124 = arith.constant 0 : index
    %263 = vector.load %arg23[%c0_123, %c0_124] : memref<16x32xf32, #tpu.memory_space<vmem>>, vector<8x8xf32>
    tpu.vector_store %arg23[%c0_123, %c0_124], %262 {strides = array<i32>} : memref<16x32xf32, #tpu.memory_space<vmem>>, vector<8x8xf32>,
    %264 = vector.extract_strided_slice %245 {offsets = [0, 8], sizes = [8, 8], strides = [1, 1]} : vector<16x96xf32> to vector<8x8xf32>
    %265 = vector.extract_strided_slice %245 {offsets = [0, 40], sizes = [8, 8], strides = [1, 1]} : vector<16x96xf32> to vector<8x8xf32>
    %266 = vector.extract_strided_slice %245 {offsets = [0, 72], sizes = [8, 8], strides = [1, 1]} : vector<16x96xf32> to vector<8x8xf32>
    %cst_125 = arith.constant dense<0.000000e+00> : vector<8x8xf32>
    %267 = tpu.matmul %264, %265, %cst_125 {dimension_numbers = #tpu.dot_dimension_numbers<[1], [1], [0], [0], [0, 0, 1, 0], [], []>} : vector<8x8xf32>, vector<8x8xf32>, vector<8x8xf32> -> vector<8x8xf32>
    %cst_126 = arith.constant 0.353553385 : f32
    %268 = vector.broadcast %cst_126 : f32 to vector<8x8xf32>
    %269 = arith.mulf %267, %268 : vector<8x8xf32>
    %cst_127 = arith.constant dense<0xFF800000> : vector<8xf32>
    %270 = vector.multi_reduction <maximumf>, %269, %cst_127 [1] : vector<8x8xf32> to vector<8xf32>
    %271 = vector.shape_cast %270 : vector<8xf32> to vector<8x1xf32>
    %272 = vector.broadcast %271 : vector<8x1xf32> to vector<8x8xf32>
    %273 = arith.subf %269, %272 : vector<8x8xf32>
    %274 = math.exp %273 : vector<8x8xf32>
    %cst_128 = arith.constant dense<0.000000e+00> : vector<8xf32>
    %275 = vector.multi_reduction <add>, %274, %cst_128 [1] : vector<8x8xf32> to vector<8xf32>
    %276 = vector.shape_cast %275 : vector<8xf32> to vector<8x1xf32>
    %277 = tpu.reciprocal %276 {approx = true} : vector<8x1xf32> -> vector<8x1xf32>
    %278 = vector.broadcast %277 : vector<8x1xf32> to vector<8x8xf32>
    %279 = arith.mulf %274, %278 : vector<8x8xf32>
    %cst_129 = arith.constant dense<0.000000e+00> : vector<8x8xf32>
    %280 = tpu.matmul %279, %266, %cst_129 {dimension_numbers = #tpu.dot_dimension_numbers<[1], [0], [0], [1], [0, 0, 1, 1], [], []>} : vector<8x8xf32>, vector<8x8xf32>, vector<8x8xf32> -> vector<8x8xf32>
    %c0_130 = arith.constant 0 : index
    %c8_131 = arith.constant 8 : index
    %281 = vector.load %arg23[%c0_130, %c8_131] : memref<16x32xf32, #tpu.memory_space<vmem>>, vector<8x8xf32>
    tpu.vector_store %arg23[%c0_130, %c8_131], %280 {strides = array<i32>} : memref<16x32xf32, #tpu.memory_space<vmem>>, vector<8x8xf32>,
    %282 = vector.extract_strided_slice %245 {offsets = [0, 16], sizes = [8, 8], strides = [1, 1]} : vector<16x96xf32> to vector<8x8xf32>
    %283 = vector.extract_strided_slice %245 {offsets = [0, 48], sizes = [8, 8], strides = [1, 1]} : vector<16x96xf32> to vector<8x8xf32>
    %284 = vector.extract_strided_slice %245 {offsets = [0, 80], sizes = [8, 8], strides = [1, 1]} : vector<16x96xf32> to vector<8x8xf32>
    %cst_132 = arith.constant dense<0.000000e+00> : vector<8x8xf32>
    %285 = tpu.matmul %282, %283, %cst_132 {dimension_numbers = #tpu.dot_dimension_numbers<[1], [1], [0], [0], [0, 0, 1, 0], [], []>} : vector<8x8xf32>, vector<8x8xf32>, vector<8x8xf32> -> vector<8x8xf32>
    %cst_133 = arith.constant 0.353553385 : f32
    %286 = vector.broadcast %cst_133 : f32 to vector<8x8xf32>
    %287 = arith.mulf %285, %286 : vector<8x8xf32>
    %cst_134 = arith.constant dense<0xFF800000> : vector<8xf32>
    %288 = vector.multi_reduction <maximumf>, %287, %cst_134 [1] : vector<8x8xf32> to vector<8xf32>
    %289 = vector.shape_cast %288 : vector<8xf32> to vector<8x1xf32>
    %290 = vector.broadcast %289 : vector<8x1xf32> to vector<8x8xf32>
    %291 = arith.subf %287, %290 : vector<8x8xf32>
    %292 = math.exp %291 : vector<8x8xf32>
    %cst_135 = arith.constant dense<0.000000e+00> : vector<8xf32>
    %293 = vector.multi_reduction <add>, %292, %cst_135 [1] : vector<8x8xf32> to vector<8xf32>
    %294 = vector.shape_cast %293 : vector<8xf32> to vector<8x1xf32>
    %295 = tpu.reciprocal %294 {approx = true} : vector<8x1xf32> -> vector<8x1xf32>
    %296 = vector.broadcast %295 : vector<8x1xf32> to vector<8x8xf32>
    %297 = arith.mulf %292, %296 : vector<8x8xf32>
    %cst_136 = arith.constant dense<0.000000e+00> : vector<8x8xf32>
    %298 = tpu.matmul %297, %284, %cst_136 {dimension_numbers = #tpu.dot_dimension_numbers<[1], [0], [0], [1], [0, 0, 1, 1], [], []>} : vector<8x8xf32>, vector<8x8xf32>, vector<8x8xf32> -> vector<8x8xf32>
    %c0_137 = arith.constant 0 : index
    %c16_138 = arith.constant 16 : index
    %299 = vector.load %arg23[%c0_137, %c16_138] : memref<16x32xf32, #tpu.memory_space<vmem>>, vector<8x8xf32>
    tpu.vector_store %arg23[%c0_137, %c16_138], %298 {strides = array<i32>} : memref<16x32xf32, #tpu.memory_space<vmem>>, vector<8x8xf32>,
    %300 = vector.extract_strided_slice %245 {offsets = [0, 24], sizes = [8, 8], strides = [1, 1]} : vector<16x96xf32> to vector<8x8xf32>
    %301 = vector.extract_strided_slice %245 {offsets = [0, 56], sizes = [8, 8], strides = [1, 1]} : vector<16x96xf32> to vector<8x8xf32>
    %302 = vector.extract_strided_slice %245 {offsets = [0, 88], sizes = [8, 8], strides = [1, 1]} : vector<16x96xf32> to vector<8x8xf32>
    %cst_139 = arith.constant dense<0.000000e+00> : vector<8x8xf32>
    %303 = tpu.matmul %300, %301, %cst_139 {dimension_numbers = #tpu.dot_dimension_numbers<[1], [1], [0], [0], [0, 0, 1, 0], [], []>} : vector<8x8xf32>, vector<8x8xf32>, vector<8x8xf32> -> vector<8x8xf32>
    %cst_140 = arith.constant 0.353553385 : f32
    %304 = vector.broadcast %cst_140 : f32 to vector<8x8xf32>
    %305 = arith.mulf %303, %304 : vector<8x8xf32>
    %cst_141 = arith.constant dense<0xFF800000> : vector<8xf32>
    %306 = vector.multi_reduction <maximumf>, %305, %cst_141 [1] : vector<8x8xf32> to vector<8xf32>
    %307 = vector.shape_cast %306 : vector<8xf32> to vector<8x1xf32>
    %308 = vector.broadcast %307 : vector<8x1xf32> to vector<8x8xf32>
    %309 = arith.subf %305, %308 : vector<8x8xf32>
    %310 = math.exp %309 : vector<8x8xf32>
    %cst_142 = arith.constant dense<0.000000e+00> : vector<8xf32>
    %311 = vector.multi_reduction <add>, %310, %cst_142 [1] : vector<8x8xf32> to vector<8xf32>
    %312 = vector.shape_cast %311 : vector<8xf32> to vector<8x1xf32>
    %313 = tpu.reciprocal %312 {approx = true} : vector<8x1xf32> -> vector<8x1xf32>
    %314 = vector.broadcast %313 : vector<8x1xf32> to vector<8x8xf32>
    %315 = arith.mulf %310, %314 : vector<8x8xf32>
    %cst_143 = arith.constant dense<0.000000e+00> : vector<8x8xf32>
    %316 = tpu.matmul %315, %302, %cst_143 {dimension_numbers = #tpu.dot_dimension_numbers<[1], [0], [0], [1], [0, 0, 1, 1], [], []>} : vector<8x8xf32>, vector<8x8xf32>, vector<8x8xf32> -> vector<8x8xf32>
    %c0_144 = arith.constant 0 : index
    %c24_145 = arith.constant 24 : index
    %317 = vector.load %arg23[%c0_144, %c24_145] : memref<16x32xf32, #tpu.memory_space<vmem>>, vector<8x8xf32>
    tpu.vector_store %arg23[%c0_144, %c24_145], %316 {strides = array<i32>} : memref<16x32xf32, #tpu.memory_space<vmem>>, vector<8x8xf32>,
    %318 = vector.extract_strided_slice %245 {offsets = [8, 0], sizes = [8, 8], strides = [1, 1]} : vector<16x96xf32> to vector<8x8xf32>
    %319 = vector.extract_strided_slice %245 {offsets = [8, 32], sizes = [8, 8], strides = [1, 1]} : vector<16x96xf32> to vector<8x8xf32>
    %320 = vector.extract_strided_slice %245 {offsets = [8, 64], sizes = [8, 8], strides = [1, 1]} : vector<16x96xf32> to vector<8x8xf32>
    %cst_146 = arith.constant dense<0.000000e+00> : vector<8x8xf32>
    %321 = tpu.matmul %318, %319, %cst_146 {dimension_numbers = #tpu.dot_dimension_numbers<[1], [1], [0], [0], [0, 0, 1, 0], [], []>} : vector<8x8xf32>, vector<8x8xf32>, vector<8x8xf32> -> vector<8x8xf32>
    %cst_147 = arith.constant 0.353553385 : f32
    %322 = vector.broadcast %cst_147 : f32 to vector<8x8xf32>
    %323 = arith.mulf %321, %322 : vector<8x8xf32>
    %cst_148 = arith.constant dense<0xFF800000> : vector<8xf32>
    %324 = vector.multi_reduction <maximumf>, %323, %cst_148 [1] : vector<8x8xf32> to vector<8xf32>
    %325 = vector.shape_cast %324 : vector<8xf32> to vector<8x1xf32>
    %326 = vector.broadcast %325 : vector<8x1xf32> to vector<8x8xf32>
    %327 = arith.subf %323, %326 : vector<8x8xf32>
    %328 = math.exp %327 : vector<8x8xf32>
    %cst_149 = arith.constant dense<0.000000e+00> : vector<8xf32>
    %329 = vector.multi_reduction <add>, %328, %cst_149 [1] : vector<8x8xf32> to vector<8xf32>
    %330 = vector.shape_cast %329 : vector<8xf32> to vector<8x1xf32>
    %331 = tpu.reciprocal %330 {approx = true} : vector<8x1xf32> -> vector<8x1xf32>
    %332 = vector.broadcast %331 : vector<8x1xf32> to vector<8x8xf32>
    %333 = arith.mulf %328, %332 : vector<8x8xf32>
    %cst_150 = arith.constant dense<0.000000e+00> : vector<8x8xf32>
    %334 = tpu.matmul %333, %320, %cst_150 {dimension_numbers = #tpu.dot_dimension_numbers<[1], [0], [0], [1], [0, 0, 1, 1], [], []>} : vector<8x8xf32>, vector<8x8xf32>, vector<8x8xf32> -> vector<8x8xf32>
    %c8_151 = arith.constant 8 : index
    %c0_152 = arith.constant 0 : index
    %335 = vector.load %arg23[%c8_151, %c0_152] : memref<16x32xf32, #tpu.memory_space<vmem>>, vector<8x8xf32>
    tpu.vector_store %arg23[%c8_151, %c0_152], %334 {strides = array<i32>} : memref<16x32xf32, #tpu.memory_space<vmem>>, vector<8x8xf32>,
    %336 = vector.extract_strided_slice %245 {offsets = [8, 8], sizes = [8, 8], strides = [1, 1]} : vector<16x96xf32> to vector<8x8xf32>
    %337 = vector.extract_strided_slice %245 {offsets = [8, 40], sizes = [8, 8], strides = [1, 1]} : vector<16x96xf32> to vector<8x8xf32>
    %338 = vector.extract_strided_slice %245 {offsets = [8, 72], sizes = [8, 8], strides = [1, 1]} : vector<16x96xf32> to vector<8x8xf32>
    %cst_153 = arith.constant dense<0.000000e+00> : vector<8x8xf32>
    %339 = tpu.matmul %336, %337, %cst_153 {dimension_numbers = #tpu.dot_dimension_numbers<[1], [1], [0], [0], [0, 0, 1, 0], [], []>} : vector<8x8xf32>, vector<8x8xf32>, vector<8x8xf32> -> vector<8x8xf32>
    %cst_154 = arith.constant 0.353553385 : f32
    %340 = vector.broadcast %cst_154 : f32 to vector<8x8xf32>
    %341 = arith.mulf %339, %340 : vector<8x8xf32>
    %cst_155 = arith.constant dense<0xFF800000> : vector<8xf32>
    %342 = vector.multi_reduction <maximumf>, %341, %cst_155 [1] : vector<8x8xf32> to vector<8xf32>
    %343 = vector.shape_cast %342 : vector<8xf32> to vector<8x1xf32>
    %344 = vector.broadcast %343 : vector<8x1xf32> to vector<8x8xf32>
    %345 = arith.subf %341, %344 : vector<8x8xf32>
    %346 = math.exp %345 : vector<8x8xf32>
    %cst_156 = arith.constant dense<0.000000e+00> : vector<8xf32>
    %347 = vector.multi_reduction <add>, %346, %cst_156 [1] : vector<8x8xf32> to vector<8xf32>
    %348 = vector.shape_cast %347 : vector<8xf32> to vector<8x1xf32>
    %349 = tpu.reciprocal %348 {approx = true} : vector<8x1xf32> -> vector<8x1xf32>
    %350 = vector.broadcast %349 : vector<8x1xf32> to vector<8x8xf32>
    %351 = arith.mulf %346, %350 : vector<8x8xf32>
    %cst_157 = arith.constant dense<0.000000e+00> : vector<8x8xf32>
    %352 = tpu.matmul %351, %338, %cst_157 {dimension_numbers = #tpu.dot_dimension_numbers<[1], [0], [0], [1], [0, 0, 1, 1], [], []>} : vector<8x8xf32>, vector<8x8xf32>, vector<8x8xf32> -> vector<8x8xf32>
    %c8_158 = arith.constant 8 : index
    %c8_159 = arith.constant 8 : index
    %353 = vector.load %arg23[%c8_158, %c8_159] : memref<16x32xf32, #tpu.memory_space<vmem>>, vector<8x8xf32>
    tpu.vector_store %arg23[%c8_158, %c8_159], %352 {strides = array<i32>} : memref<16x32xf32, #tpu.memory_space<vmem>>, vector<8x8xf32>,
    %354 = vector.extract_strided_slice %245 {offsets = [8, 16], sizes = [8, 8], strides = [1, 1]} : vector<16x96xf32> to vector<8x8xf32>
    %355 = vector.extract_strided_slice %245 {offsets = [8, 48], sizes = [8, 8], strides = [1, 1]} : vector<16x96xf32> to vector<8x8xf32>
    %356 = vector.extract_strided_slice %245 {offsets = [8, 80], sizes = [8, 8], strides = [1, 1]} : vector<16x96xf32> to vector<8x8xf32>
    %cst_160 = arith.constant dense<0.000000e+00> : vector<8x8xf32>
    %357 = tpu.matmul %354, %355, %cst_160 {dimension_numbers = #tpu.dot_dimension_numbers<[1], [1], [0], [0], [0, 0, 1, 0], [], []>} : vector<8x8xf32>, vector<8x8xf32>, vector<8x8xf32> -> vector<8x8xf32>
    %cst_161 = arith.constant 0.353553385 : f32
    %358 = vector.broadcast %cst_161 : f32 to vector<8x8xf32>
    %359 = arith.mulf %357, %358 : vector<8x8xf32>
    %cst_162 = arith.constant dense<0xFF800000> : vector<8xf32>
    %360 = vector.multi_reduction <maximumf>, %359, %cst_162 [1] : vector<8x8xf32> to vector<8xf32>
    %361 = vector.shape_cast %360 : vector<8xf32> to vector<8x1xf32>
    %362 = vector.broadcast %361 : vector<8x1xf32> to vector<8x8xf32>
    %363 = arith.subf %359, %362 : vector<8x8xf32>
    %364 = math.exp %363 : vector<8x8xf32>
    %cst_163 = arith.constant dense<0.000000e+00> : vector<8xf32>
    %365 = vector.multi_reduction <add>, %364, %cst_163 [1] : vector<8x8xf32> to vector<8xf32>
    %366 = vector.shape_cast %365 : vector<8xf32> to vector<8x1xf32>
    %367 = tpu.reciprocal %366 {approx = true} : vector<8x1xf32> -> vector<8x1xf32>
    %368 = vector.broadcast %367 : vector<8x1xf32> to vector<8x8xf32>
    %369 = arith.mulf %364, %368 : vector<8x8xf32>
    %cst_164 = arith.constant dense<0.000000e+00> : vector<8x8xf32>
    %370 = tpu.matmul %369, %356, %cst_164 {dimension_numbers = #tpu.dot_dimension_numbers<[1], [0], [0], [1], [0, 0, 1, 1], [], []>} : vector<8x8xf32>, vector<8x8xf32>, vector<8x8xf32> -> vector<8x8xf32>
    %c8_165 = arith.constant 8 : index
    %c16_166 = arith.constant 16 : index
    %371 = vector.load %arg23[%c8_165, %c16_166] : memref<16x32xf32, #tpu.memory_space<vmem>>, vector<8x8xf32>
    tpu.vector_store %arg23[%c8_165, %c16_166], %370 {strides = array<i32>} : memref<16x32xf32, #tpu.memory_space<vmem>>, vector<8x8xf32>,
    %372 = vector.extract_strided_slice %245 {offsets = [8, 24], sizes = [8, 8], strides = [1, 1]} : vector<16x96xf32> to vector<8x8xf32>
    %373 = vector.extract_strided_slice %245 {offsets = [8, 56], sizes = [8, 8], strides = [1, 1]} : vector<16x96xf32> to vector<8x8xf32>
    %374 = vector.extract_strided_slice %245 {offsets = [8, 88], sizes = [8, 8], strides = [1, 1]} : vector<16x96xf32> to vector<8x8xf32>
    %cst_167 = arith.constant dense<0.000000e+00> : vector<8x8xf32>
    %375 = tpu.matmul %372, %373, %cst_167 {dimension_numbers = #tpu.dot_dimension_numbers<[1], [1], [0], [0], [0, 0, 1, 0], [], []>} : vector<8x8xf32>, vector<8x8xf32>, vector<8x8xf32> -> vector<8x8xf32>
    %cst_168 = arith.constant 0.353553385 : f32
    %376 = vector.broadcast %cst_168 : f32 to vector<8x8xf32>
    %377 = arith.mulf %375, %376 : vector<8x8xf32>
    %cst_169 = arith.constant dense<0xFF800000> : vector<8xf32>
    %378 = vector.multi_reduction <maximumf>, %377, %cst_169 [1] : vector<8x8xf32> to vector<8xf32>
    %379 = vector.shape_cast %378 : vector<8xf32> to vector<8x1xf32>
    %380 = vector.broadcast %379 : vector<8x1xf32> to vector<8x8xf32>
    %381 = arith.subf %377, %380 : vector<8x8xf32>
    %382 = math.exp %381 : vector<8x8xf32>
    %cst_170 = arith.constant dense<0.000000e+00> : vector<8xf32>
    %383 = vector.multi_reduction <add>, %382, %cst_170 [1] : vector<8x8xf32> to vector<8xf32>
    %384 = vector.shape_cast %383 : vector<8xf32> to vector<8x1xf32>
    %385 = tpu.reciprocal %384 {approx = true} : vector<8x1xf32> -> vector<8x1xf32>
    %386 = vector.broadcast %385 : vector<8x1xf32> to vector<8x8xf32>
    %387 = arith.mulf %382, %386 : vector<8x8xf32>
    %cst_171 = arith.constant dense<0.000000e+00> : vector<8x8xf32>
    %388 = tpu.matmul %387, %374, %cst_171 {dimension_numbers = #tpu.dot_dimension_numbers<[1], [0], [0], [1], [0, 0, 1, 1], [], []>} : vector<8x8xf32>, vector<8x8xf32>, vector<8x8xf32> -> vector<8x8xf32>
    %c8_172 = arith.constant 8 : index
    %c24_173 = arith.constant 24 : index
    %389 = vector.load %arg23[%c8_172, %c24_173] : memref<16x32xf32, #tpu.memory_space<vmem>>, vector<8x8xf32>
    tpu.vector_store %arg23[%c8_172, %c24_173], %388 {strides = array<i32>} : memref<16x32xf32, #tpu.memory_space<vmem>>, vector<8x8xf32>,
    %c0_174 = arith.constant 0 : index
    %c0_175 = arith.constant 0 : index
    %390 = vector.load %arg23[%c0_174, %c0_175] : memref<16x32xf32, #tpu.memory_space<vmem>>, vector<16x32xf32>
    %c1_176 = arith.constant 1 : index
    %c0_177 = arith.constant 0 : index
    %c0_178 = arith.constant 0 : index
    %391 = vector.load %arg6[%c1_176, %c0_177, %c0_178] : memref<2x32x32xf32, #tpu.memory_space<vmem>>, vector<1x32x32xf32>
    %392 = vector.shape_cast %391 : vector<1x32x32xf32> to vector<32x32xf32>
    %cst_179 = arith.constant dense<0.000000e+00> : vector<16x32xf32>
    %393 = tpu.matmul %390, %392, %cst_179 {dimension_numbers = #tpu.dot_dimension_numbers<[1], [0], [0], [1], [0, 0, 1, 1], [], []>} : vector<16x32xf32>, vector<32x32xf32>, vector<16x32xf32> -> vector<16x32xf32>
    %c1_180 = arith.constant 1 : index
    %c0_181 = arith.constant 0 : index
    %c0_182 = arith.constant 0 : index
    %394 = vector.load %arg7[%c1_180, %c0_181, %c0_182] : memref<2x1x32xf32, #tpu.memory_space<vmem>>, vector<1x1x32xf32>
    %395 = vector.shape_cast %394 : vector<1x1x32xf32> to vector<1x32xf32>
    %396 = vector.broadcast %395 : vector<1x32xf32> to vector<16x32xf32>
    %397 = arith.addf %393, %396 : vector<16x32xf32>
    %398 = arith.addf %238, %397 : vector<16x32xf32>
    %c1_183 = arith.constant 1 : index
    %c0_184 = arith.constant 0 : index
    %c0_185 = arith.constant 0 : index
    %399 = vector.load %arg12[%c1_183, %c0_184, %c0_185] : memref<2x1x32xf32, #tpu.memory_space<vmem>>, vector<1x1x32xf32>
    %400 = vector.shape_cast %399 : vector<1x1x32xf32> to vector<1x32xf32>
    %c1_186 = arith.constant 1 : index
    %c0_187 = arith.constant 0 : index
    %c0_188 = arith.constant 0 : index
    %401 = vector.load %arg13[%c1_186, %c0_187, %c0_188] : memref<2x1x32xf32, #tpu.memory_space<vmem>>, vector<1x1x32xf32>
    %402 = vector.shape_cast %401 : vector<1x1x32xf32> to vector<1x32xf32>
    %cst_189 = arith.constant dense<0.000000e+00> : vector<16xf32>
    %403 = vector.multi_reduction <add>, %398, %cst_189 [1] : vector<16x32xf32> to vector<16xf32>
    %404 = vector.shape_cast %403 : vector<16xf32> to vector<16x1xf32>
    %cst_190 = arith.constant 3.200000e+01 : f32
    %405 = vector.broadcast %cst_190 : f32 to vector<16x1xf32>
    %406 = arith.divf %404, %405 : vector<16x1xf32>
    %407 = vector.broadcast %406 : vector<16x1xf32> to vector<16x32xf32>
    %408 = arith.subf %398, %407 : vector<16x32xf32>
    %409 = arith.mulf %408, %408 : vector<16x32xf32>
    %cst_191 = arith.constant dense<0.000000e+00> : vector<16xf32>
    %410 = vector.multi_reduction <add>, %409, %cst_191 [1] : vector<16x32xf32> to vector<16xf32>
    %411 = vector.shape_cast %410 : vector<16xf32> to vector<16x1xf32>
    %cst_192 = arith.constant 3.200000e+01 : f32
    %412 = vector.broadcast %cst_192 : f32 to vector<16x1xf32>
    %413 = arith.divf %411, %412 : vector<16x1xf32>
    %414 = vector.broadcast %406 : vector<16x1xf32> to vector<16x32xf32>
    %415 = arith.subf %398, %414 : vector<16x32xf32>
    %cst_193 = arith.constant 9.99999974E-6 : f32
    %416 = vector.broadcast %cst_193 : f32 to vector<16x1xf32>
    %417 = arith.addf %413, %416 : vector<16x1xf32>
    %418 = math.rsqrt %417 : vector<16x1xf32>
    %419 = vector.broadcast %418 : vector<16x1xf32> to vector<16x32xf32>
    %420 = arith.mulf %415, %419 : vector<16x32xf32>
    %421 = vector.broadcast %400 : vector<1x32xf32> to vector<16x32xf32>
    %422 = arith.mulf %420, %421 : vector<16x32xf32>
    %423 = vector.broadcast %402 : vector<1x32xf32> to vector<16x32xf32>
    %424 = arith.addf %422, %423 : vector<16x32xf32>
    %c1_194 = arith.constant 1 : index
    %c0_195 = arith.constant 0 : index
    %c0_196 = arith.constant 0 : index
    %425 = vector.load %arg8[%c1_194, %c0_195, %c0_196] : memref<2x32x128xf32, #tpu.memory_space<vmem>>, vector<1x32x128xf32>
    %426 = vector.shape_cast %425 : vector<1x32x128xf32> to vector<32x128xf32>
    %cst_197 = arith.constant dense<0.000000e+00> : vector<16x128xf32>
    %427 = tpu.matmul %424, %426, %cst_197 {dimension_numbers = #tpu.dot_dimension_numbers<[1], [0], [0], [1], [0, 0, 1, 1], [], []>} : vector<16x32xf32>, vector<32x128xf32>, vector<16x128xf32> -> vector<16x128xf32>
    %c1_198 = arith.constant 1 : index
    %c0_199 = arith.constant 0 : index
    %c0_200 = arith.constant 0 : index
    %428 = vector.load %arg9[%c1_198, %c0_199, %c0_200] : memref<2x1x128xf32, #tpu.memory_space<vmem>>, vector<1x1x128xf32>
    %429 = vector.shape_cast %428 : vector<1x1x128xf32> to vector<1x128xf32>
    %430 = vector.broadcast %429 : vector<1x128xf32> to vector<16x128xf32>
    %431 = arith.addf %427, %430 : vector<16x128xf32>
    %cst_201 = arith.constant 0.000000e+00 : f32
    %432 = vector.broadcast %cst_201 : f32 to vector<16x128xf32>
    %433 = arith.maximumf %431, %432 : vector<16x128xf32>
    %c1_202 = arith.constant 1 : index
    %c0_203 = arith.constant 0 : index
    %c0_204 = arith.constant 0 : index
    %434 = vector.load %arg10[%c1_202, %c0_203, %c0_204] : memref<2x128x32xf32, #tpu.memory_space<vmem>>, vector<1x128x32xf32>
    %435 = vector.shape_cast %434 : vector<1x128x32xf32> to vector<128x32xf32>
    %cst_205 = arith.constant dense<0.000000e+00> : vector<16x32xf32>
    %436 = tpu.matmul %433, %435, %cst_205 {dimension_numbers = #tpu.dot_dimension_numbers<[1], [0], [0], [1], [0, 0, 1, 1], [], []>} : vector<16x128xf32>, vector<128x32xf32>, vector<16x32xf32> -> vector<16x32xf32>
    %c1_206 = arith.constant 1 : index
    %c0_207 = arith.constant 0 : index
    %c0_208 = arith.constant 0 : index
    %437 = vector.load %arg11[%c1_206, %c0_207, %c0_208] : memref<2x1x32xf32, #tpu.memory_space<vmem>>, vector<1x1x32xf32>
    %438 = vector.shape_cast %437 : vector<1x1x32xf32> to vector<1x32xf32>
    %439 = vector.broadcast %438 : vector<1x32xf32> to vector<16x32xf32>
    %440 = arith.addf %436, %439 : vector<16x32xf32>
    %441 = arith.addf %424, %440 : vector<16x32xf32>
    %c1_209 = arith.constant 1 : index
    %c0_210 = arith.constant 0 : index
    %c0_211 = arith.constant 0 : index
    %442 = vector.load %arg14[%c1_209, %c0_210, %c0_211] : memref<2x1x32xf32, #tpu.memory_space<vmem>>, vector<1x1x32xf32>
    %443 = vector.shape_cast %442 : vector<1x1x32xf32> to vector<1x32xf32>
    %c1_212 = arith.constant 1 : index
    %c0_213 = arith.constant 0 : index
    %c0_214 = arith.constant 0 : index
    %444 = vector.load %arg15[%c1_212, %c0_213, %c0_214] : memref<2x1x32xf32, #tpu.memory_space<vmem>>, vector<1x1x32xf32>
    %445 = vector.shape_cast %444 : vector<1x1x32xf32> to vector<1x32xf32>
    %cst_215 = arith.constant dense<0.000000e+00> : vector<16xf32>
    %446 = vector.multi_reduction <add>, %441, %cst_215 [1] : vector<16x32xf32> to vector<16xf32>
    %447 = vector.shape_cast %446 : vector<16xf32> to vector<16x1xf32>
    %cst_216 = arith.constant 3.200000e+01 : f32
    %448 = vector.broadcast %cst_216 : f32 to vector<16x1xf32>
    %449 = arith.divf %447, %448 : vector<16x1xf32>
    %450 = vector.broadcast %449 : vector<16x1xf32> to vector<16x32xf32>
    %451 = arith.subf %441, %450 : vector<16x32xf32>
    %452 = arith.mulf %451, %451 : vector<16x32xf32>
    %cst_217 = arith.constant dense<0.000000e+00> : vector<16xf32>
    %453 = vector.multi_reduction <add>, %452, %cst_217 [1] : vector<16x32xf32> to vector<16xf32>
    %454 = vector.shape_cast %453 : vector<16xf32> to vector<16x1xf32>
    %cst_218 = arith.constant 3.200000e+01 : f32
    %455 = vector.broadcast %cst_218 : f32 to vector<16x1xf32>
    %456 = arith.divf %454, %455 : vector<16x1xf32>
    %457 = vector.broadcast %449 : vector<16x1xf32> to vector<16x32xf32>
    %458 = arith.subf %441, %457 : vector<16x32xf32>
    %cst_219 = arith.constant 9.99999974E-6 : f32
    %459 = vector.broadcast %cst_219 : f32 to vector<16x1xf32>
    %460 = arith.addf %456, %459 : vector<16x1xf32>
    %461 = math.rsqrt %460 : vector<16x1xf32>
    %462 = vector.broadcast %461 : vector<16x1xf32> to vector<16x32xf32>
    %463 = arith.mulf %458, %462 : vector<16x32xf32>
    %464 = vector.broadcast %443 : vector<1x32xf32> to vector<16x32xf32>
    %465 = arith.mulf %463, %464 : vector<16x32xf32>
    %466 = vector.broadcast %445 : vector<1x32xf32> to vector<16x32xf32>
    %467 = arith.addf %465, %466 : vector<16x32xf32>
    %c0_220 = arith.constant 0 : index
    %c0_221 = arith.constant 0 : index
    %468 = vector.load %arg17[%c0_220, %c0_221] : memref<1x1024xf32, #tpu.memory_space<vmem>>, vector<1x1024xf32>
    %c0_222 = arith.constant 0 : index
    %c0_223 = arith.constant 0 : index
    %c0_224 = arith.constant 0 : index
    %469 = vector.load %arg16[%c0_222, %c0_223, %c0_224] : memref<8x32x1024xf32, #tpu.memory_space<vmem>>, vector<1x32x1024xf32>
    %470 = vector.shape_cast %469 : vector<1x32x1024xf32> to vector<32x1024xf32>
    %471 = vector.extract_strided_slice %467 {offsets = [0, 0], sizes = [1, 32], strides = [1, 1]} : vector<16x32xf32> to vector<1x32xf32>
    %cst_225 = arith.constant dense<0.000000e+00> : vector<1x1024xf32>
    %472 = tpu.matmul %471, %470, %cst_225 {dimension_numbers = #tpu.dot_dimension_numbers<[1], [0], [0], [1], [0, 0, 1, 1], [], []>} : vector<1x32xf32>, vector<32x1024xf32>, vector<1x1024xf32> -> vector<1x1024xf32>
    %473 = arith.addf %468, %472 : vector<1x1024xf32>
    %474 = vector.extract_strided_slice %467 {offsets = [8, 0], sizes = [1, 32], strides = [1, 1]} : vector<16x32xf32> to vector<1x32xf32>
    %cst_226 = arith.constant dense<0.000000e+00> : vector<1x1024xf32>
    %475 = tpu.matmul %474, %470, %cst_226 {dimension_numbers = #tpu.dot_dimension_numbers<[1], [0], [0], [1], [0, 0, 1, 1], [], []>} : vector<1x32xf32>, vector<32x1024xf32>, vector<1x1024xf32> -> vector<1x1024xf32>
    %476 = arith.addf %468, %475 : vector<1x1024xf32>
    %c1_227 = arith.constant 1 : index
    %c0_228 = arith.constant 0 : index
    %c0_229 = arith.constant 0 : index
    %477 = vector.load %arg16[%c1_227, %c0_228, %c0_229] : memref<8x32x1024xf32, #tpu.memory_space<vmem>>, vector<1x32x1024xf32>
    %478 = vector.shape_cast %477 : vector<1x32x1024xf32> to vector<32x1024xf32>
    %479 = vector.extract_strided_slice %467 {offsets = [1, 0], sizes = [1, 32], strides = [1, 1]} : vector<16x32xf32> to vector<1x32xf32>
    %cst_230 = arith.constant dense<0.000000e+00> : vector<1x1024xf32>
    %480 = tpu.matmul %479, %478, %cst_230 {dimension_numbers = #tpu.dot_dimension_numbers<[1], [0], [0], [1], [0, 0, 1, 1], [], []>} : vector<1x32xf32>, vector<32x1024xf32>, vector<1x1024xf32> -> vector<1x1024xf32>
    %481 = arith.addf %473, %480 : vector<1x1024xf32>
    %482 = vector.extract_strided_slice %467 {offsets = [9, 0], sizes = [1, 32], strides = [1, 1]} : vector<16x32xf32> to vector<1x32xf32>
    %cst_231 = arith.constant dense<0.000000e+00> : vector<1x1024xf32>
    %483 = tpu.matmul %482, %478, %cst_231 {dimension_numbers = #tpu.dot_dimension_numbers<[1], [0], [0], [1], [0, 0, 1, 1], [], []>} : vector<1x32xf32>, vector<32x1024xf32>, vector<1x1024xf32> -> vector<1x1024xf32>
    %484 = arith.addf %476, %483 : vector<1x1024xf32>
    %c2 = arith.constant 2 : index
    %c0_232 = arith.constant 0 : index
    %c0_233 = arith.constant 0 : index
    %485 = vector.load %arg16[%c2, %c0_232, %c0_233] : memref<8x32x1024xf32, #tpu.memory_space<vmem>>, vector<1x32x1024xf32>
    %486 = vector.shape_cast %485 : vector<1x32x1024xf32> to vector<32x1024xf32>
    %487 = vector.extract_strided_slice %467 {offsets = [2, 0], sizes = [1, 32], strides = [1, 1]} : vector<16x32xf32> to vector<1x32xf32>
    %cst_234 = arith.constant dense<0.000000e+00> : vector<1x1024xf32>
    %488 = tpu.matmul %487, %486, %cst_234 {dimension_numbers = #tpu.dot_dimension_numbers<[1], [0], [0], [1], [0, 0, 1, 1], [], []>} : vector<1x32xf32>, vector<32x1024xf32>, vector<1x1024xf32> -> vector<1x1024xf32>
    %489 = arith.addf %481, %488 : vector<1x1024xf32>
    %490 = vector.extract_strided_slice %467 {offsets = [10, 0], sizes = [1, 32], strides = [1, 1]} : vector<16x32xf32> to vector<1x32xf32>
    %cst_235 = arith.constant dense<0.000000e+00> : vector<1x1024xf32>
    %491 = tpu.matmul %490, %486, %cst_235 {dimension_numbers = #tpu.dot_dimension_numbers<[1], [0], [0], [1], [0, 0, 1, 1], [], []>} : vector<1x32xf32>, vector<32x1024xf32>, vector<1x1024xf32> -> vector<1x1024xf32>
    %492 = arith.addf %484, %491 : vector<1x1024xf32>
    %c3 = arith.constant 3 : index
    %c0_236 = arith.constant 0 : index
    %c0_237 = arith.constant 0 : index
    %493 = vector.load %arg16[%c3, %c0_236, %c0_237] : memref<8x32x1024xf32, #tpu.memory_space<vmem>>, vector<1x32x1024xf32>
    %494 = vector.shape_cast %493 : vector<1x32x1024xf32> to vector<32x1024xf32>
    %495 = vector.extract_strided_slice %467 {offsets = [3, 0], sizes = [1, 32], strides = [1, 1]} : vector<16x32xf32> to vector<1x32xf32>
    %cst_238 = arith.constant dense<0.000000e+00> : vector<1x1024xf32>
    %496 = tpu.matmul %495, %494, %cst_238 {dimension_numbers = #tpu.dot_dimension_numbers<[1], [0], [0], [1], [0, 0, 1, 1], [], []>} : vector<1x32xf32>, vector<32x1024xf32>, vector<1x1024xf32> -> vector<1x1024xf32>
    %497 = arith.addf %489, %496 : vector<1x1024xf32>
    %498 = vector.extract_strided_slice %467 {offsets = [11, 0], sizes = [1, 32], strides = [1, 1]} : vector<16x32xf32> to vector<1x32xf32>
    %cst_239 = arith.constant dense<0.000000e+00> : vector<1x1024xf32>
    %499 = tpu.matmul %498, %494, %cst_239 {dimension_numbers = #tpu.dot_dimension_numbers<[1], [0], [0], [1], [0, 0, 1, 1], [], []>} : vector<1x32xf32>, vector<32x1024xf32>, vector<1x1024xf32> -> vector<1x1024xf32>
    %500 = arith.addf %492, %499 : vector<1x1024xf32>
    %c4 = arith.constant 4 : index
    %c0_240 = arith.constant 0 : index
    %c0_241 = arith.constant 0 : index
    %501 = vector.load %arg16[%c4, %c0_240, %c0_241] : memref<8x32x1024xf32, #tpu.memory_space<vmem>>, vector<1x32x1024xf32>
    %502 = vector.shape_cast %501 : vector<1x32x1024xf32> to vector<32x1024xf32>
    %503 = vector.extract_strided_slice %467 {offsets = [4, 0], sizes = [1, 32], strides = [1, 1]} : vector<16x32xf32> to vector<1x32xf32>
    %cst_242 = arith.constant dense<0.000000e+00> : vector<1x1024xf32>
    %504 = tpu.matmul %503, %502, %cst_242 {dimension_numbers = #tpu.dot_dimension_numbers<[1], [0], [0], [1], [0, 0, 1, 1], [], []>} : vector<1x32xf32>, vector<32x1024xf32>, vector<1x1024xf32> -> vector<1x1024xf32>
    %505 = arith.addf %497, %504 : vector<1x1024xf32>
    %506 = vector.extract_strided_slice %467 {offsets = [12, 0], sizes = [1, 32], strides = [1, 1]} : vector<16x32xf32> to vector<1x32xf32>
    %cst_243 = arith.constant dense<0.000000e+00> : vector<1x1024xf32>
    %507 = tpu.matmul %506, %502, %cst_243 {dimension_numbers = #tpu.dot_dimension_numbers<[1], [0], [0], [1], [0, 0, 1, 1], [], []>} : vector<1x32xf32>, vector<32x1024xf32>, vector<1x1024xf32> -> vector<1x1024xf32>
    %508 = arith.addf %500, %507 : vector<1x1024xf32>
    %c5 = arith.constant 5 : index
    %c0_244 = arith.constant 0 : index
    %c0_245 = arith.constant 0 : index
    %509 = vector.load %arg16[%c5, %c0_244, %c0_245] : memref<8x32x1024xf32, #tpu.memory_space<vmem>>, vector<1x32x1024xf32>
    %510 = vector.shape_cast %509 : vector<1x32x1024xf32> to vector<32x1024xf32>
    %511 = vector.extract_strided_slice %467 {offsets = [5, 0], sizes = [1, 32], strides = [1, 1]} : vector<16x32xf32> to vector<1x32xf32>
    %cst_246 = arith.constant dense<0.000000e+00> : vector<1x1024xf32>
    %512 = tpu.matmul %511, %510, %cst_246 {dimension_numbers = #tpu.dot_dimension_numbers<[1], [0], [0], [1], [0, 0, 1, 1], [], []>} : vector<1x32xf32>, vector<32x1024xf32>, vector<1x1024xf32> -> vector<1x1024xf32>
    %513 = arith.addf %505, %512 : vector<1x1024xf32>
    %514 = vector.extract_strided_slice %467 {offsets = [13, 0], sizes = [1, 32], strides = [1, 1]} : vector<16x32xf32> to vector<1x32xf32>
    %cst_247 = arith.constant dense<0.000000e+00> : vector<1x1024xf32>
    %515 = tpu.matmul %514, %510, %cst_247 {dimension_numbers = #tpu.dot_dimension_numbers<[1], [0], [0], [1], [0, 0, 1, 1], [], []>} : vector<1x32xf32>, vector<32x1024xf32>, vector<1x1024xf32> -> vector<1x1024xf32>
    %516 = arith.addf %508, %515 : vector<1x1024xf32>
    %c6 = arith.constant 6 : index
    %c0_248 = arith.constant 0 : index
    %c0_249 = arith.constant 0 : index
    %517 = vector.load %arg16[%c6, %c0_248, %c0_249] : memref<8x32x1024xf32, #tpu.memory_space<vmem>>, vector<1x32x1024xf32>
    %518 = vector.shape_cast %517 : vector<1x32x1024xf32> to vector<32x1024xf32>
    %519 = vector.extract_strided_slice %467 {offsets = [6, 0], sizes = [1, 32], strides = [1, 1]} : vector<16x32xf32> to vector<1x32xf32>
    %cst_250 = arith.constant dense<0.000000e+00> : vector<1x1024xf32>
    %520 = tpu.matmul %519, %518, %cst_250 {dimension_numbers = #tpu.dot_dimension_numbers<[1], [0], [0], [1], [0, 0, 1, 1], [], []>} : vector<1x32xf32>, vector<32x1024xf32>, vector<1x1024xf32> -> vector<1x1024xf32>
    %521 = arith.addf %513, %520 : vector<1x1024xf32>
    %522 = vector.extract_strided_slice %467 {offsets = [14, 0], sizes = [1, 32], strides = [1, 1]} : vector<16x32xf32> to vector<1x32xf32>
    %cst_251 = arith.constant dense<0.000000e+00> : vector<1x1024xf32>
    %523 = tpu.matmul %522, %518, %cst_251 {dimension_numbers = #tpu.dot_dimension_numbers<[1], [0], [0], [1], [0, 0, 1, 1], [], []>} : vector<1x32xf32>, vector<32x1024xf32>, vector<1x1024xf32> -> vector<1x1024xf32>
    %524 = arith.addf %516, %523 : vector<1x1024xf32>
    %c7 = arith.constant 7 : index
    %c0_252 = arith.constant 0 : index
    %c0_253 = arith.constant 0 : index
    %525 = vector.load %arg16[%c7, %c0_252, %c0_253] : memref<8x32x1024xf32, #tpu.memory_space<vmem>>, vector<1x32x1024xf32>
    %526 = vector.shape_cast %525 : vector<1x32x1024xf32> to vector<32x1024xf32>
    %527 = vector.extract_strided_slice %467 {offsets = [7, 0], sizes = [1, 32], strides = [1, 1]} : vector<16x32xf32> to vector<1x32xf32>
    %cst_254 = arith.constant dense<0.000000e+00> : vector<1x1024xf32>
    %528 = tpu.matmul %527, %526, %cst_254 {dimension_numbers = #tpu.dot_dimension_numbers<[1], [0], [0], [1], [0, 0, 1, 1], [], []>} : vector<1x32xf32>, vector<32x1024xf32>, vector<1x1024xf32> -> vector<1x1024xf32>
    %529 = arith.addf %521, %528 : vector<1x1024xf32>
    %530 = vector.extract_strided_slice %467 {offsets = [15, 0], sizes = [1, 32], strides = [1, 1]} : vector<16x32xf32> to vector<1x32xf32>
    %cst_255 = arith.constant dense<0.000000e+00> : vector<1x1024xf32>
    %531 = tpu.matmul %530, %526, %cst_255 {dimension_numbers = #tpu.dot_dimension_numbers<[1], [0], [0], [1], [0, 0, 1, 1], [], []>} : vector<1x32xf32>, vector<32x1024xf32>, vector<1x1024xf32> -> vector<1x1024xf32>
    %532 = arith.addf %524, %531 : vector<1x1024xf32>
    %c0_256 = arith.constant 0 : index
    %c0_257 = arith.constant 0 : index
    %533 = vector.load %arg18[%c0_256, %c0_257] : memref<1024x64xf32, #tpu.memory_space<vmem>>, vector<1024x64xf32>
    %c0_258 = arith.constant 0 : index
    %c0_259 = arith.constant 0 : index
    %534 = vector.load %arg19[%c0_258, %c0_259] : memref<1x64xf32, #tpu.memory_space<vmem>>, vector<1x64xf32>
    %c0_260 = arith.constant 0 : index
    %c0_261 = arith.constant 0 : index
    %535 = vector.load %arg20[%c0_260, %c0_261] : memref<64x3xf32, #tpu.memory_space<vmem>>, vector<64x3xf32>
    %c0_262 = arith.constant 0 : index
    %c0_263 = arith.constant 0 : index
    %536 = vector.load %arg21[%c0_262, %c0_263] : memref<1x3xf32, #tpu.memory_space<vmem>>, vector<1x3xf32>
    %cst_264 = arith.constant 0.000000e+00 : f32
    %537 = vector.broadcast %cst_264 : f32 to vector<1x1024xf32>
    %538 = arith.maximumf %529, %537 : vector<1x1024xf32>
    %cst_265 = arith.constant dense<0.000000e+00> : vector<1x64xf32>
    %539 = tpu.matmul %538, %533, %cst_265 {dimension_numbers = #tpu.dot_dimension_numbers<[1], [0], [0], [1], [0, 0, 1, 1], [], []>} : vector<1x1024xf32>, vector<1024x64xf32>, vector<1x64xf32> -> vector<1x64xf32>
    %540 = arith.addf %539, %534 : vector<1x64xf32>
    %cst_266 = arith.constant 0.000000e+00 : f32
    %541 = vector.broadcast %cst_266 : f32 to vector<1x64xf32>
    %542 = arith.maximumf %540, %541 : vector<1x64xf32>
    %cst_267 = arith.constant dense<0.000000e+00> : vector<1x3xf32>
    %543 = tpu.matmul %542, %535, %cst_267 {dimension_numbers = #tpu.dot_dimension_numbers<[1], [0], [0], [1], [0, 0, 1, 1], [], []>} : vector<1x64xf32>, vector<64x3xf32>, vector<1x3xf32> -> vector<1x3xf32>
    %544 = arith.addf %543, %536 : vector<1x3xf32>
    %cst_268 = arith.constant 0.000000e+00 : f32
    %545 = vector.broadcast %cst_268 : f32 to vector<1x3xf32>
    %546 = arith.maximumf %544, %545 : vector<1x3xf32>
    %c0_269 = arith.constant 0 : index
    %c0_270 = arith.constant 0 : index
    %547 = vector.load %arg22[%c0_269, %c0_270] : memref<2x3xf32, #tpu.memory_space<vmem>>, vector<1x3xf32>
    tpu.vector_store %arg22[%c0_269, %c0_270], %546 {strides = array<i32>} : memref<2x3xf32, #tpu.memory_space<vmem>>, vector<1x3xf32>,
    %cst_271 = arith.constant 0.000000e+00 : f32
    %548 = vector.broadcast %cst_271 : f32 to vector<1x1024xf32>
    %549 = arith.maximumf %532, %548 : vector<1x1024xf32>
    %cst_272 = arith.constant dense<0.000000e+00> : vector<1x64xf32>
    %550 = tpu.matmul %549, %533, %cst_272 {dimension_numbers = #tpu.dot_dimension_numbers<[1], [0], [0], [1], [0, 0, 1, 1], [], []>} : vector<1x1024xf32>, vector<1024x64xf32>, vector<1x64xf32> -> vector<1x64xf32>
    %551 = arith.addf %550, %534 : vector<1x64xf32>
    %cst_273 = arith.constant 0.000000e+00 : f32
    %552 = vector.broadcast %cst_273 : f32 to vector<1x64xf32>
    %553 = arith.maximumf %551, %552 : vector<1x64xf32>
    %cst_274 = arith.constant dense<0.000000e+00> : vector<1x3xf32>
    %554 = tpu.matmul %553, %535, %cst_274 {dimension_numbers = #tpu.dot_dimension_numbers<[1], [0], [0], [1], [0, 0, 1, 1], [], []>} : vector<1x64xf32>, vector<64x3xf32>, vector<1x3xf32> -> vector<1x3xf32>
    %555 = arith.addf %554, %536 : vector<1x3xf32>
    %cst_275 = arith.constant 0.000000e+00 : f32
    %556 = vector.broadcast %cst_275 : f32 to vector<1x3xf32>
    %557 = arith.maximumf %555, %556 : vector<1x3xf32>
    %c1_276 = arith.constant 1 : index
    %c0_277 = arith.constant 0 : index
    %558 = vector.load %arg22[%c1_276, %c0_277] : memref<2x3xf32, #tpu.memory_space<vmem>>, vector<1x3xf32>
    tpu.vector_store %arg22[%c1_276, %c0_277], %557 {strides = array<i32>} : memref<2x3xf32, #tpu.memory_space<vmem>>, vector<1x3xf32>,
    return
  }
}

</mosaic_0001>

<bundles_post_ra>
// kernel: xp2label_forward.1
= control target key start
LH: loop header
LB: loop body
LE: loop exit
PB: predicated region body
PF: predicated region fallthrough
CT: control target
= control target key end

     0   :  { %s14709_s0 = inlined_call_operand.vmem [shape: f32[16,1], index: 0, kind: input, shape index: {}]   ;;  %s14710_s1 = inlined_call_operand.vmem [shape: f32[1,32], index: 1, kind: input, shape index: {}]   ;;  %s14711_s2 = inlined_call_operand.vmem [shape: f32[1,32], index: 2, kind: input, shape index: {}]   ;;  %s14712_s3 = inlined_call_operand.vmem [shape: f32[16,32], index: 3, kind: input, shape index: {}]   ;;  %s14713_s4 = inlined_call_operand.vmem [shape: f32[2,32,96], index: 4, kind: input, shape index: {}]   ;;  %s14714_s5 = inlined_call_operand.vmem [shape: f32[2,1,96], index: 5, kind: input, shape index: {}]   ;;  %s14715_s6 = inlined_call_operand.vmem [shape: f32[2,32,32], index: 6, kind: input, shape index: {}]   ;;  %s14716_s7 = inlined_call_operand.vmem [shape: f32[2,1,32], index: 7, kind: input, shape index: {}]   ;;  %s14717_s8 = inlined_call_operand.vmem [shape: f32[2,32,128], index: 8, kind: input, shape index: {}]   ;;  %s14718_s9 = inlined_call_operand.vmem [shape: f32[2,1,128], index: 9, kind: input, shape index: {}]   ;;  %s14719_s10 = inlined_call_operand.vmem [shape: f32[2,128,32], index: 10, kind: input, shape index: {}]   ;;  %s14720_s11 = inlined_call_operand.vmem [shape: f32[2,1,32], index: 11, kind: input, shape index: {}]   ;;  %s14721_s12 = inlined_call_operand.vmem [shape: f32[2,1,32], index: 12, kind: input, shape index: {}]   ;;  %s14722_s13 = inlined_call_operand.vmem [shape: f32[2,1,32], index: 13, kind: input, shape index: {}]   ;;  %s14723_s14 = inlined_call_operand.vmem [shape: f32[2,1,32], index: 14, kind: input, shape index: {}]   ;;  %s14724_s15 = inlined_call_operand.vmem [shape: f32[2,1,32], index: 15, kind: input, shape index: {}]   ;;  %s14725_s16 = inlined_call_operand.hbm [shape: f32[8,32,1024], index: 16, kind: input, shape index: {}]   ;;  %s14726_s17 = inlined_call_operand.vmem [shape: f32[1,1024], index: 17, kind: input, shape index: {}]   ;;  %s14727_s18 = inlined_call_operand.vmem [shape: f32[1024,64], index: 18, kind: input, shape index: {}]   ;;  %s14728_s19 = inlined_call_operand.vmem [shape: f32[1,64], index: 19, kind: input, shape index: {}]   ;;  %s14729_s20 = inlined_call_operand.vmem [shape: f32[64,3], index: 20, kind: input, shape index: {}]   ;;  %s14730_s21 = inlined_call_operand.vmem [shape: f32[1,3], index: 21, kind: input, shape index: {}]   ;;  %s14731_s22 = inlined_call_operand.hbm [shape: f32[2,3], index: 22, kind: output, shape index: {}]  }
   0x1   :  { %14783 = sst [smem:[#allocation29_spill]] %s14709_s0 }
   0x2   :  { %14784 = sst [smem:[#allocation30_spill]] %s14710_s1 }
   0x3   :  { %14785 = sst [smem:[#allocation31_spill]] %s14711_s2 }
   0x4   :  { %14786 = sst [smem:[#allocation32_spill]] %s14712_s3 }
   0x5   :  { %14787 = sst [smem:[#allocation33_spill]] %s14713_s4 }
   0x6   :  { %14788 = sst [smem:[#allocation34_spill]] %s14714_s5 }
   0x7   :  { %14789 = sst [smem:[#allocation35_spill]] %s14715_s6 }
   0x8   :  { %27 = vsyncpa [#allocation4], 0 }
   0x9   :  { %28 = vsyncpa [#allocation5], 0  ;;  %s12548_s3 = smov [#allocation3]   ;;  %s12500_s4 = scalar_lea.hbm %s14725_s16, 32768 }
   0xa   :  { %s66_s28 = sshll.u32 %s12548_s3, 4  ;;  %p12501_p0 = scmp.ne.s32.totalorder %s14725_s16, %s12500_s4  ;;  %s67_s28 = int_to_ptr.vmem [resolvable:$true] %s66_s28 }
   0xb   :  { %p12504_p1 = scmp.lt.u32.totalorder %s12500_s4, %s14725_s16 }
   0xd   :  { %p12506_p2 = pnand %p12504_p1, %p12501_p0 }
   0xf   :  { %12509 = shalt.err (!%p12506_p2)
}
  0x10   :  { %s12510_s24 = scalar_lea.vmem %s67_s28, 32768  ;;  %p12515_p4 = scmp.lt.s32.totalorder %s67_s28, %s67_s28 }
  0x11   :  { %p12511_p3 = scmp.ne.s32.totalorder %s67_s28, %s12510_s24  ;;  %p12516_p5 = scmp.lt.s32.totalorder %s12510_s24, %s12510_s24 }
  0x13   :  { %p12517_p6 = por %p12516_p5, %p12515_p4 }
  0x15   :  { %p12518_p7 = pnand %p12517_p6, %p12511_p3 }
  0x17   :  { %12521 = shalt.err (!%p12518_p7)
}
  0x18   :  { %s12549_s6 = smov 1024   ;;  %s14751_s25 = smov 64  }
  0x19   :  { %72 = dma.hbm_to_vmem [thread:$0]  %s14725_s16, 32768, %s67_s28, [#allocation4], %s12549_s6, %s12549_s6, %s14751_s25  }
  0x1a   :  { %12544 = dma.done.wait [#allocation4], 32768  }
  0x1b   :  { %12545 = vsyncadd [#allocation4], 4294934528  ;;  %v12551_v0 = vmov 0   ;;  %s14790_s29 = sld [smem:[#allocation29_spill]]  ;;  %s14791_s0 = sld [smem:[#allocation33_spill]]  ;;  %vm131_vm0 = vcmask 261120  }
  0x1c   :  { %12419 = vset.pattern.permute.xlu0 %v12551_v0  ;;  %s14792_s3 = sld [smem:[#allocation30_spill]]  ;;  %s14793_s4 = sld [smem:[#allocation31_spill]]  ;;  %v14759_v21 = vmov 0.0   ;;  %vm12553_vm1 = vmmov 0   ;;  %vm216_vm2 = vcmask 64512   ;;  %vm550_vm3 = vcmask 130112  }
  0x1d   :  { %s14794_s5 = sld [smem:[#allocation32_spill]]  ;;  %11170 = vmatprep.subr.mxu1 %v14759_v21  ;;  %11172 = vmatprep.mubr.msk.f32.mxu1 %vm12553_vm1, %v14759_v21  ;;  %s14795_s26 = sld [smem:[#allocation34_spill]]  ;;  %vm722_vm4 = vcmask 195712   ;;  %vm894_vm5 = vcmask 261312   ;;  %vm10055_vm6 = vcmask 523264   ;;  %vm10130_vm7 = vcmask 16384  }
  0x1e   :  { %s14753_s2 = smov 120   ;;  %s12555_s27 = smov 96  }
  0x1f   :  { %s14743_s30 = smov 104   ;;  %s14745_s23 = smov 72  }
  0x20   :  { %s14749_s1 = smov 56   ;;  %s14739_s24 = smov 48  }
  0x21   :  { %v86_v1 = vld [vmem:[%s14790_s29] sm:$0xff]  ;;  %v121_v3 = vld [vmem:[%s14791_s0 + $0x8] sm:$0xff]  ;;  %v122_v6 = vld [vmem:[%s14791_s0 + $0x10] sm:$0xff]  ;;  %s12564_s16 = smov 8   ;;  %s14757_s28 = smov 16  }
  0x22   :  { %91 = vperm.xlu0 %12419, %v86_v1   ;;  %v120_v2 = vld [vmem:[%s14791_s0] sm:$0xff]  ;;  %v87_v4 = vld [vmem:[%s14790_s29 + $0x8] sm:$0xff]  ;;  %v123_v7 = vld [vmem:[%s14791_s0 + $0x18] sm:$0xff]  ;;  %s12557_s29 = smov 88   ;;  %s14755_s6 = smov 24  }
  0x23   :  { %v11493_v5 = vpack.c.bf16 %v121_v3, %v120_v2  ;;  %v11497_v8 = vpack.c.bf16 %v123_v7, %v122_v6  ;;  %v10545_v9 = vld [vmem:[%s14792_s3] ss:$0 sm:$0xff]  ;;  %v117_v18 = vld [vmem:[%s14794_s5 + $0x8] sm:$0xff]  ;;  %s14747_s3 = smov 112  }
  0x24   :  { %v10546_v11 = vld [vmem:[%s14793_s4] ss:$0 sm:$0xff]  ;;  %s14741_s4 = smov 80  }
  0x25   :  { %11494 = vmatprep.subr.bf16.mxu0 %v11493_v5  ;;  %v116_v13 = vld [vmem:[%s14794_s5] sm:$0xff]  ;;  %s14737_s5 = smov 40  }
  0x26   :  { %96 = vperm.xlu0 %12419, %v87_v4   ;;  %11496 = vmatpush3.bf16.msra.mxu0 %v11493_v5  ;;  %v10547_v22 = vld [vmem:[%s14795_s26] ss:$0 sm:$0xff] }
  0x27   :  { %11498 = vmatprep.subr.bf16.mxu0 %v11497_v8 }
  0x2a   :  { %11500 = vmatpush3.bf16.msra.mxu0 %v11497_v8 }
  0x2b   :  { %11180 = vmatprep.subr.mxu0 %v14759_v21 }
  0xa1   :  { %v92_v10 = vpop.permute.xlu0 %91 }
  0xa2   :  { %v105_v12 = vmul.f32 %v10545_v9, %v92_v10 }
  0xa4   :  { %v114_v14 = vadd.f32 %v10546_v11, %v105_v12 }
  0xa5   :  { %v97_v15 = vpop.permute.xlu0 %96 }
  0xa6   :  { %v106_v16 = vmul.f32 %v10545_v9, %v97_v15  ;;  %v12725_v17 = vadd.f32 %v116_v13, %v114_v14 }
  0xa8   :  { %v115_v19 = vadd.f32 %v10546_v11, %v106_v16  ;;  %11167 = vmatprep.mubr.msk.f32.mxu0 %vm131_vm0, %v12725_v17 }
  0xaa   :  { %v12732_v20 = vadd.f32 %v117_v18, %v115_v19 }
  0xac   :  { %11168 = vmatmul.mubr.msk.f32.vlgmr.msra.gmra.mrb[0].mxu0 %vm131_vm0, %v12732_v20 }
  0xad   :  { %11182 = vmatprep.mubr.msk.f32.mxu0 %vm12553_vm1, %v14759_v21 }
 0x17f   :  { %v11169_v23 = vpop.f32.mrb[0].mxu0 }
 0x180   :  { %v204_v24 = vpop.f32.mrb[1].mxu0  ;;  %v12759_v26 = vadd.f32 %v11169_v23, %v10547_v22 }
 0x181   :  { %v12745_v25 = vadd.f32 %v10547_v22, %v204_v24 }
 0x183   :  { %380 = vrot.lane.b32.xlu0 %v12745_v25, %s14753_s2  ;;  %214 = vrot.lane.b32.xlu1 %v12745_v25, %s12555_s27 }
 0x187   :  { %552 = vrot.lane.b32.xlu0 %v12745_v25, %s14747_s3  ;;  %382 = vrot.lane.b32.xlu1 %v12745_v25, %s12557_s29 }
 0x18b   :  { %724 = vrot.lane.b32.xlu0 %v12745_v25, %s14743_s30  ;;  %554 = vrot.lane.b32.xlu1 %v12745_v25, %s14741_s4 }
 0x18f   :  { %1064 = vrot.lane.b32.xlu0 %v12759_v26, %s12557_s29  ;;  %726 = vrot.lane.b32.xlu1 %v12745_v25, %s14745_s23 }
 0x193   :  { %1235 = vrot.lane.b32.xlu0 %v12759_v26, %s14741_s4  ;;  %897 = vrot.lane.b32.xlu1 %v12759_v26, %s12555_s27  ;;  %s14796_s4 = sld [smem:[#allocation35_spill]] }
 0x197   :  { %1406 = vrot.lane.b32.xlu0 %v12759_v26, %s14745_s23  ;;  %1062 = vrot.lane.b32.xlu1 %v12759_v26, %s14753_s2  ;;  %s14799_s23 = smov 56   ;;  %s14806_s2 = smov 16  }
 0x19b   :  { %303 = vrot.lane.b32.xlu0 %v12745_v25, %s14751_s25  ;;  %1233 = vrot.lane.b32.xlu1 %v12759_v26, %s14747_s3 }
 0x19f   :  { %1404 = vrot.lane.b32.xlu1 %v12759_v26, %s14743_s30 }
 0x1a3   :  { %470 = vrot.lane.b32.xlu1 %v12745_v25, %s14749_s1 }
 0x1f5   :  { %v381_v27 = vpop.permute.xlu0 %380  ;;  %v215_v28 = vpop.permute.xlu1 %214 }
 0x1f6   :  { %11171 = vmatpush3.xpose.msk.msra.mxu1 %vm216_vm2, %v215_v28 }
 0x1f7   :  { %11175 = vmatprep.subr.mxu1 %v14759_v21 }
 0x1f9   :  { %v553_v29 = vpop.permute.xlu0 %552  ;;  %11173 = vmatmul.mubr.msk.f32.vlgmr.msra.gmra.mrb[0].mxu1 %vm216_vm2, %v12745_v25  ;;  %v383_v30 = vpop.permute.xlu1 %382 }
 0x1fa   :  { %11181 = vmatpush3.xpose.msk.msra.mxu0 %vm216_vm2, %v383_v30  ;;  %11177 = vmatprep.mubr.msk.f32.mxu1 %vm12553_vm1, %v14759_v21 }
 0x1fb   :  { %11190 = vmatprep.subr.mxu0 %v14759_v21 }
 0x1fd   :  { %v725_v31 = vpop.permute.xlu0 %724  ;;  %11183 = vmatmul.mubr.msk.f32.vlgmr.msra.gmra.mrb[2].mxu0 %vm216_vm2, %v381_v27  ;;  %v555_v32 = vpop.permute.xlu1 %554 }
 0x1fe   :  { %11191 = vmatpush3.xpose.msk.msra.mxu0 %vm216_vm2, %v555_v32  ;;  %11192 = vmatprep.mubr.msk.f32.mxu0 %vm12553_vm1, %v14759_v21 }
 0x1ff   :  { %11200 = vmatprep.subr.mxu0 %v14759_v21 }
 0x201   :  { %v1065_v33 = vpop.permute.xlu0 %1064  ;;  %11193 = vmatmul.mubr.msk.f32.vlgmr.msra.gmra.mrb[4].mxu0 %vm216_vm2, %v553_v29  ;;  %v727_v34 = vpop.permute.xlu1 %726 }
 0x202   :  { %11201 = vmatpush3.xpose.msk.msra.mxu0 %vm216_vm2, %v727_v34  ;;  %11202 = vmatprep.mubr.msk.f32.mxu0 %vm12553_vm1, %v14759_v21 }
 0x203   :  { %11210 = vmatprep.subr.mxu0 %v14759_v21 }
 0x205   :  { %v1236_v35 = vpop.permute.xlu0 %1235  ;;  %11203 = vmatmul.mubr.msk.f32.vlgmr.msra.gmra.mrb[6].mxu0 %vm216_vm2, %v725_v31  ;;  %v898_v36 = vpop.permute.xlu1 %897 }
 0x206   :  { %11211 = vmatpush3.xpose.msk.msra.mxu0 %vm216_vm2, %v898_v36  ;;  %11212 = vmatprep.mubr.msk.f32.mxu0 %vm12553_vm1, %v14759_v21 }
 0x207   :  { %11220 = vmatprep.subr.mxu0 %v14759_v21 }
 0x209   :  { %v1407_v37 = vpop.permute.xlu0 %1406  ;;  %11213 = vmatmul.mubr.msk.f32.vlgmr.msra.gmra.mrb[8].mxu0 %vm216_vm2, %v12759_v26  ;;  %v1063_v38 = vpop.permute.xlu1 %1062 }
 0x20a   :  { %11221 = vmatpush3.xpose.msk.msra.mxu0 %vm216_vm2, %v1065_v33  ;;  %11222 = vmatprep.mubr.msk.f32.mxu0 %vm12553_vm1, %v14759_v21 }
 0x20b   :  { %11230 = vmatprep.subr.mxu0 %v14759_v21 }
 0x20d   :  { %v304_v39 = vpop.permute.xlu0 %303  ;;  %11223 = vmatmul.mubr.msk.f32.vlgmr.msra.gmra.mrb[10].mxu0 %vm216_vm2, %v1063_v38  ;;  %v1234_v40 = vpop.permute.xlu1 %1233 }
 0x20e   :  { %11176 = vmatpush3.msra.mxu1 %v304_v39  ;;  %11231 = vmatpush3.xpose.msk.msra.mxu0 %vm216_vm2, %v1236_v35 }
 0x20f   :  { %11232 = vmatprep.mubr.msk.f32.mxu0 %vm12553_vm1, %v14759_v21  ;;  %11240 = vmatprep.subr.mxu0 %v14759_v21 }
 0x210   :  { %11185 = vmatprep.subr.mxu1 %v14759_v21 }
 0x211   :  { %11233 = vmatmul.mubr.msk.f32.vlgmr.msra.gmra.mrb[12].mxu0 %vm216_vm2, %v1234_v40  ;;  %v1405_v41 = vpop.permute.xlu1 %1404 }
 0x212   :  { %11241 = vmatpush3.xpose.msk.msra.mxu0 %vm216_vm2, %v1407_v37  ;;  %11242 = vmatprep.mubr.msk.f32.mxu0 %vm12553_vm1, %v14759_v21 }
 0x215   :  { %11243 = vmatmul.mubr.msk.f32.vlgmr.msra.gmra.mrb[14].mxu0 %vm216_vm2, %v1405_v41  ;;  %v12833_v10 = vpop.permute.xlu1 %470 }
 0x2cc   :  { %v287_v42 = vpop.f32.mrb[0].mxu1 }
 0x2cd   :  { %v291_v43 = vmul.f32 0.35355338, %v287_v42  ;;  %v11174_v44 = vpop.f32.mrb[1].mxu1 }
 0x2cf   :  { %v292_v45 = vsel %vm216_vm2, %v291_v43, -inf }
 0x2d0   :  { %293 = vmax.xlane.f32.xlu0 %v292_v45  ;;  %v454_v46 = vpop.f32.mrb[2].mxu0 }
 0x2d1   :  { %v458_v47 = vmul.f32 0.35355338, %v454_v46  ;;  %v11184_v48 = vpop.f32.mrb[3].mxu0 }
 0x2d3   :  { %v459_v49 = vsel %vm216_vm2, %v458_v47, -inf }
 0x2d4   :  { %460 = vmax.xlane.f32.xlu1 %v459_v49  ;;  %v626_v50 = vpop.f32.mrb[4].mxu0 }
 0x2d5   :  { %v630_v51 = vmul.f32 0.35355338, %v626_v50  ;;  %v11194_v52 = vpop.f32.mrb[5].mxu0 }
 0x2d7   :  { %v631_v53 = vsel %vm216_vm2, %v630_v51, -inf }
 0x2d8   :  { %632 = vmax.xlane.f32.xlu0 %v631_v53  ;;  %v798_v54 = vpop.f32.mrb[6].mxu0 }
 0x2d9   :  { %v802_v55 = vmul.f32 0.35355338, %v798_v54  ;;  %v11204_v56 = vpop.f32.mrb[7].mxu0 }
 0x2db   :  { %v803_v57 = vsel %vm216_vm2, %v802_v55, -inf }
 0x2dc   :  { %804 = vmax.xlane.f32.xlu0 %v803_v57  ;;  %v969_v58 = vpop.f32.mrb[8].mxu0 }
 0x2dd   :  { %v973_v59 = vmul.f32 0.35355338, %v969_v58  ;;  %v11214_v60 = vpop.f32.mrb[9].mxu0 }
 0x2df   :  { %v974_v61 = vsel %vm216_vm2, %v973_v59, -inf }
 0x2e0   :  { %975 = vmax.xlane.f32.xlu1 %v974_v61  ;;  %v1136_v62 = vpop.f32.mrb[10].mxu0 }
 0x2e1   :  { %v1140_v63 = vmul.f32 0.35355338, %v1136_v62  ;;  %v11224_v0 = vpop.f32.mrb[11].mxu0 }
 0x2e3   :  { %v1141_v1 = vsel %vm216_vm2, %v1140_v63, -inf }
 0x2e4   :  { %1142 = vmax.xlane.f32.xlu0 %v1141_v1  ;;  %v1307_v2 = vpop.f32.mrb[12].mxu0 }
 0x2e5   :  { %v1311_v3 = vmul.f32 0.35355338, %v1307_v2  ;;  %v11234_v4 = vpop.f32.mrb[13].mxu0 }
 0x2e7   :  { %v1312_v5 = vsel %vm216_vm2, %v1311_v3, -inf }
 0x2e8   :  { %1313 = vmax.xlane.f32.xlu1 %v1312_v5  ;;  %v1478_v6 = vpop.f32.mrb[14].mxu0 }
 0x2e9   :  { %v1482_v7 = vmul.f32 0.35355338, %v1478_v6  ;;  %v11244_v8 = vpop.f32.mrb[15].mxu0 }
 0x2eb   :  { %v1483_v9 = vsel %vm216_vm2, %v1482_v7, -inf }
 0x2ec   :  { %1484 = vmax.xlane.f32.xlu0 %v1483_v9 }
 0x2f9   :  { %814 = vrot.lane.b32.xlu1 %v12745_v25, %s14737_s5 }
 0x302   :  { %642 = vrot.lane.b32.xlu0 %v12745_v25, %s14739_s24 }
 0x35d   :  { %v294_v11 = vpop.xlane.xlu0 %293 }
 0x35e   :  { %v295_v12 = vsub.f32 %v291_v43, %v294_v11 }
 0x360   :  { %v296_v13 = vmul.f32 1.442695, %v295_v12 }
 0x361   :  { %v461_v14 = vpop.xlane.xlu1 %460 }
 0x362   :  { %12420 = vpow2.f32 %v296_v13  ;;  %v462_v15 = vsub.f32 %v458_v47, %v461_v14 }
 0x364   :  { %v463_v16 = vmul.f32 1.442695, %v462_v15 }
 0x365   :  { %v633_v18 = vpop.xlane.xlu0 %632 }
 0x366   :  { %12422 = vpow2.f32 %v463_v16  ;;  %v634_v19 = vsub.f32 %v630_v51, %v633_v18 }
 0x368   :  { %v635_v22 = vmul.f32 1.442695, %v634_v19 }
 0x369   :  { %v805_v23 = vpop.xlane.xlu0 %804 }
 0x36a   :  { %12424 = vpow2.f32 %v635_v22  ;;  %v806_v24 = vsub.f32 %v802_v55, %v805_v23 }
 0x36c   :  { %v12421_v27 = vpop.eup %12420  ;;  %v807_v28 = vmul.f32 1.442695, %v806_v24 }
 0x36d   :  { %v298_v25 = vsel %vm216_vm2, %v12421_v27, 0.0  ;;  %v976_v35 = vpop.xlane.xlu1 %975 }
 0x36e   :  { %12426 = vpow2.f32 %v807_v28  ;;  %299 = vadd.xlane.f32.xlu1 %v298_v25  ;;  %v977_v36 = vsub.f32 %v973_v59, %v976_v35 }
 0x370   :  { %v12423_v29 = vpop.eup %12422  ;;  %v978_v40 = vmul.f32 1.442695, %v977_v36  ;;  %v1579_v36 = vld [vmem:[%s14796_s4 + $0x10] sm:$0xff] }
 0x371   :  { %v465_v30 = vsel %vm216_vm2, %v12423_v29, 0.0  ;;  %v1143_v37 = vpop.xlane.xlu0 %1142 }
 0x372   :  { %466 = vadd.xlane.f32.xlu0 %v465_v30  ;;  %v1144_v39 = vsub.f32 %v1140_v63, %v1143_v37  ;;  %12428 = vpow2.f32 %v978_v40  ;;  %v1580_v37 = vld [vmem:[%s14796_s4 + $0x18] sm:$0xff] }
 0x374   :  { %v12425_v31 = vpop.eup %12424  ;;  %v1145_v43 = vmul.f32 1.442695, %v1144_v39  ;;  %v11505_v39 = vpack.c.bf16 %v1580_v37, %v1579_v36 }
 0x375   :  { %v637_v32 = vsel %vm216_vm2, %v12425_v31, 0.0  ;;  %v1314_v38 = vpop.xlane.xlu1 %1313 }
 0x376   :  { %638 = vadd.xlane.f32.xlu1 %v637_v32  ;;  %v1315_v41 = vsub.f32 %v1311_v3, %v1314_v38  ;;  %12430 = vpow2.f32 %v1145_v43  ;;  %v1577_v32 = vld [vmem:[%s14796_s4] sm:$0xff] }
 0x378   :  { %v12838_v33 = vpop.eup %12426  ;;  %v1316_v44 = vmul.f32 1.442695, %v1315_v41 }
 0x379   :  { %v809_v34 = vsel %vm216_vm2, %v12838_v33, 0.0  ;;  %v1485_v42 = vpop.xlane.xlu0 %1484  ;;  %v815_v55 = vpop.permute.xlu1 %814 }
 0x37a   :  { %810 = vadd.xlane.f32.xlu0 %v809_v34  ;;  %v1486_v45 = vsub.f32 %v1482_v7, %v1485_v42  ;;  %12432 = vpow2.f32 %v1316_v44 }
 0x37c   :  { %v1487_v46 = vmul.f32 1.442695, %v1486_v45  ;;  %v12429_v47 = vpop.eup %12428 }
 0x37d   :  { %v980_v49 = vsel %vm216_vm2, %v12429_v47, 0.0  ;;  %v643_v56 = vpop.permute.xlu0 %642 }
 0x37e   :  { %12434 = vpow2.f32 %v1487_v46 }
 0x380   :  { %v12846_v48 = vpop.eup %12430 }
 0x381   :  { %v1147_v51 = vsel %vm216_vm2, %v12846_v48, 0.0 }
 0x384   :  { %v12849_v50 = vpop.eup %12432 }
 0x385   :  { %v1318_v52 = vsel %vm216_vm2, %v12849_v50, 0.0 }
 0x387   :  { %1152 = vrot.lane.b32.xlu1 %v12759_v26, %s14749_s1  ;;  %s14800_s1 = smov 112  }
 0x388   :  { %v12855_v53 = vpop.eup %12434 }
 0x389   :  { %v1489_v54 = vsel %vm216_vm2, %v12855_v53, 0.0 }
 0x390   :  { %985 = vrot.lane.b32.xlu0 %v12759_v26, %s14751_s25  ;;  %s14805_s25 = smov 40  }
 0x3ab   :  { %981 = vadd.xlane.f32.xlu1 %v980_v49 }
 0x3af   :  { %1148 = vadd.xlane.f32.xlu0 %v1147_v51  ;;  %1319 = vadd.xlane.f32.xlu1 %v1318_v52 }
 0x3b3   :  { %1490 = vadd.xlane.f32.xlu1 %v1489_v54  ;;  %v10574_v54 = vld [vmem:[%s14716_s7] ss:$0 sm:$0xff] }
 0x3c4   :  { %1494 = vrot.lane.b32.xlu1 %v12759_v26, %s14737_s5  ;;  %s14801_s5 = smov 72  }
 0x3c5   :  { %1323 = vrot.lane.b32.xlu0 %v12759_v26, %s14739_s24  ;;  %s14802_s24 = smov 104  }
 0x3fb   :  { %v300_v57 = vpop.xlane.xlu1 %299 }
 0x3fc   :  { %12436 = vrcp.f32 %v300_v57 }
 0x3ff   :  { %v467_v58 = vpop.xlane.xlu0 %466 }
 0x400   :  { %12438 = vrcp.f32 %v467_v58 }
 0x403   :  { %v639_v59 = vpop.xlane.xlu1 %638 }
 0x404   :  { %12440 = vrcp.f32 %v639_v59 }
 0x406   :  { %v12437_v60 = vpop.eup %12436 }
 0x407   :  { %v302_v61 = vmul.f32 %v12437_v60, %v12421_v27  ;;  %v811_v62 = vpop.xlane.xlu0 %810  ;;  %v1153_v5 = vpop.permute.xlu1 %1152 }
 0x408   :  { %12442 = vrcp.f32 %v811_v62 }
 0x409   :  { %11178 = vmatmul.mubr.msk.f32.vlgmr.msra.gmra.mrb[2].mxu1 %vm216_vm2, %v302_v61 }
 0x40a   :  { %v12439_v63 = vpop.eup %12438  ;;  %11186 = vmatpush3.msra.mxu1 %v12833_v10  ;;  %11187 = vmatprep.mubr.msk.f32.mxu1 %vm12553_vm1, %v14759_v21 }
 0x40b   :  { %v469_v26 = vmul.f32 %v12439_v63, %v12423_v29  ;;  %11195 = vmatprep.subr.mxu1 %v14759_v21  ;;  %v986_v4 = vpop.permute.xlu0 %985 }
 0x40d   :  { %11188 = vmatmul.mubr.msk.f32.vlgmr.msra.gmra.mrb[4].mxu1 %vm216_vm2, %v469_v26 }
 0x40e   :  { %v12441_v0 = vpop.eup %12440  ;;  %11196 = vmatpush3.msra.mxu1 %v643_v56  ;;  %11197 = vmatprep.mubr.msk.f32.mxu1 %vm12553_vm1, %v14759_v21 }
 0x40f   :  { %v641_v1 = vmul.f32 %v12441_v0, %v12425_v31  ;;  %11205 = vmatprep.subr.mxu1 %v14759_v21 }
 0x411   :  { %11198 = vmatmul.mubr.msk.f32.vlgmr.msra.gmra.mrb[6].mxu1 %vm216_vm2, %v641_v1 }
 0x412   :  { %v12443_v2 = vpop.eup %12442  ;;  %11206 = vmatpush3.msra.mxu1 %v815_v55  ;;  %11207 = vmatprep.mubr.msk.f32.mxu1 %vm12553_vm1, %v14759_v21 }
 0x413   :  { %v813_v3 = vmul.f32 %v12443_v2, %v12838_v33  ;;  %11215 = vmatprep.subr.mxu1 %v14759_v21  ;;  %v1578_v33 = vld [vmem:[%s14796_s4 + $0x8] sm:$0xff] }
 0x414   :  { %v11501_v34 = vpack.c.bf16 %v1578_v33, %v1577_v32  ;;  %v1821_v32 = vld [vmem:[%s14719_s10 + $0x58] sm:$0xff] }
 0x415   :  { %11208 = vmatmul.mubr.msk.f32.vlgmr.msra.gmra.mrb[8].mxu1 %vm216_vm2, %v813_v3 }
 0x416   :  { %11216 = vmatpush3.msra.mxu1 %v986_v4  ;;  %11217 = vmatprep.mubr.msk.f32.mxu1 %vm12553_vm1, %v14759_v21 }
 0x417   :  { %11225 = vmatprep.subr.mxu1 %v14759_v21  ;;  %11502 = vmatprep.subr.bf16.mxu0 %v11501_v34 }
 0x418   :  { %11504 = vmatpush3.bf16.msra.mxu0 %v11501_v34  ;;  %v1822_v34 = vld [vmem:[%s14719_s10 + $0x60] sm:$0xff] }
 0x419   :  { %11506 = vmatprep.subr.bf16.mxu0 %v11505_v39 }
 0x41c   :  { %11508 = vmatpush3.bf16.msra.mxu0 %v11505_v39 }
 0x438   :  { %v982_v6 = vpop.xlane.xlu1 %981 }
 0x439   :  { %12444 = vrcp.f32 %v982_v6  ;;  %v1716_v6 = vld [vmem:[%s14717_s8] sm:$0xff] }
 0x43c   :  { %v1149_v7 = vpop.xlane.xlu0 %1148  ;;  %v1320_v8 = vpop.xlane.xlu1 %1319 }
 0x43d   :  { %12446 = vrcp.f32 %v1149_v7  ;;  %v1717_v7 = vld [vmem:[%s14717_s8 + $0x8] sm:$0xff] }
 0x43e   :  { %12448 = vrcp.f32 %v1320_v8  ;;  %v11509_v8 = vpack.c.bf16 %v1717_v7, %v1716_v6 }
 0x440   :  { %v1491_v9 = vpop.xlane.xlu1 %1490  ;;  %v1324_v15 = vpop.permute.xlu0 %1323 }
 0x441   :  { %12450 = vrcp.f32 %v1491_v9  ;;  %v1718_v9 = vld [vmem:[%s14717_s8 + $0x10] sm:$0xff] }
 0x443   :  { %v12445_v10 = vpop.eup %12444 }
 0x444   :  { %v984_v11 = vmul.f32 %v12445_v10, %v12429_v47  ;;  %v1495_v19 = vpop.permute.xlu1 %1494  ;;  %v1719_v10 = vld [vmem:[%s14717_s8 + $0x18] sm:$0xff] }
 0x446   :  { %11218 = vmatmul.mubr.msk.f32.vlgmr.msra.gmra.mrb[10].mxu1 %vm216_vm2, %v984_v11  ;;  %v11513_v11 = vpack.c.bf16 %v1719_v10, %v1718_v9 }
 0x447   :  { %v12447_v12 = vpop.eup %12446  ;;  %11226 = vmatpush3.msra.mxu1 %v1153_v5  ;;  %11227 = vmatprep.mubr.msk.f32.mxu1 %vm12553_vm1, %v14759_v21 }
 0x448   :  { %v1151_v13 = vmul.f32 %v12447_v12, %v12846_v48  ;;  %11235 = vmatprep.subr.mxu1 %v14759_v21  ;;  %v12449_v14 = vpop.eup %12448  ;;  %v1810_v12 = vld [vmem:[%s14719_s10] sm:$0xff] }
 0x449   :  { %v1322_v16 = vmul.f32 %v12449_v14, %v12849_v50  ;;  %v1812_v14 = vld [vmem:[%s14719_s10 + $0x10] sm:$0xff] }
 0x44a   :  { %11228 = vmatmul.mubr.msk.f32.vlgmr.msra.gmra.mrb[12].mxu1 %vm216_vm2, %v1151_v13  ;;  %v1811_v13 = vld [vmem:[%s14719_s10 + $0x8] sm:$0xff] }
 0x44b   :  { %11236 = vmatpush3.msra.mxu1 %v1324_v15  ;;  %11237 = vmatprep.mubr.msk.f32.mxu1 %vm12553_vm1, %v14759_v21  ;;  %v12451_v18 = vpop.eup %12450  ;;  %v11517_v15 = vpack.c.bf16 %v1811_v13, %v1810_v12 }
 0x44c   :  { %11245 = vmatprep.subr.mxu1 %v14759_v21  ;;  %v1493_v22 = vmul.f32 %v12451_v18, %v12855_v53 }
 0x44d   :  { %11518 = vmatprep.subr.bf16.mxu0 %v11517_v15 }
 0x44e   :  { %11238 = vmatmul.mubr.msk.f32.vlgmr.msra.gmra.mrb[14].mxu1 %vm216_vm2, %v1322_v16  ;;  %v1813_v16 = vld [vmem:[%s14719_s10 + $0x18] sm:$0xff] }
 0x44f   :  { %11246 = vmatpush3.msra.mxu1 %v1495_v19  ;;  %11247 = vmatprep.mubr.msk.f32.mxu1 %vm12553_vm1, %v14759_v21  ;;  %v11521_v18 = vpack.c.bf16 %v1813_v16, %v1812_v14  ;;  %v1814_v19 = vld [vmem:[%s14719_s10 + $0x20] sm:$0xff]  ;;  %v10586_v16 = vld [vmem:[%s14791_s0 + $0x28] sm:$0xff] }
 0x450   :  { %11510 = vmatprep.subr.bf16.mxu1 %v11509_v8 }
 0x452   :  { %11248 = vmatmul.mubr.msk.f32.vlgmr.msra.gmra.mrb[16].mxu1 %vm216_vm2, %v1493_v22  ;;  %v1815_v22 = vld [vmem:[%s14719_s10 + $0x28] sm:$0xff] }
 0x453   :  { %11512 = vmatpush3.bf16.msra.mxu1 %v11509_v8 }
 0x454   :  { %11514 = vmatprep.subr.bf16.mxu1 %v11513_v11 }
 0x457   :  { %11516 = vmatpush3.bf16.msra.mxu1 %v11513_v11 }
 0x4dc   :  { %v375_v23 = vpop.f32.mrb[2].mxu1 }
 0x4dd   :  { %379 = vst.msk [vmem:[#allocation2] sm:$0xff] %vm216_vm2, %v375_v23  ;;  %v11179_v24 = vpop.f32.mrb[3].mxu1  ;;  %v11525_v23 = vpack.c.bf16 %v1815_v22, %v1814_v19  ;;  %v10587_v19 = vld [vmem:[%s14791_s0 + $0x30] sm:$0xff]  ;;  %v10588_v22 = vld [vmem:[%s14791_s0 + $0x38] sm:$0xff] }
 0x4de   :  { %v1816_v24 = vld [vmem:[%s14719_s10 + $0x30] sm:$0xff] }
 0x4e0   :  { %v542_v27 = vpop.f32.mrb[4].mxu1 }
 0x4e1   :  { %547 = vrot.lane.b32.xlu0 %v542_v27, %s12564_s16  ;;  %v11189_v28 = vpop.f32.mrb[5].mxu1  ;;  %v1817_v27 = vld [vmem:[%s14719_s10 + $0x38] sm:$0xff] }
 0x4e2   :  { %v11529_v28 = vpack.c.bf16 %v1817_v27, %v1816_v24 }
 0x4e4   :  { %v714_v25 = vpop.f32.mrb[6].mxu1 }
 0x4e5   :  { %719 = vrot.lane.b32.xlu1 %v714_v25, %s14757_s28  ;;  %v11199_v29 = vpop.f32.mrb[7].mxu1  ;;  %v1818_v25 = vld [vmem:[%s14719_s10 + $0x40] sm:$0xff] }
 0x4e6   :  { %v1819_v29 = vld [vmem:[%s14719_s10 + $0x48] sm:$0xff] }
 0x4e8   :  { %v886_v30 = vpop.f32.mrb[8].mxu1 }
 0x4e9   :  { %891 = vrot.lane.b32.xlu1 %v886_v30, %s14755_s6  ;;  %v11209_v31 = vpop.f32.mrb[9].mxu1  ;;  %v11533_v30 = vpack.c.bf16 %v1819_v29, %v1818_v25 }
 0x4ea   :  { %v1820_v31 = vld [vmem:[%s14719_s10 + $0x50] sm:$0xff] }
 0x4eb   :  { %v11537_v33 = vpack.c.bf16 %v1821_v32, %v1820_v31  ;;  %v10583_v32 = vld [vmem:[%s14723_s14] ss:$0 sm:$0xff] }
 0x519   :  { %v1057_v35 = vpop.f32.mrb[10].mxu1 }
 0x51a   :  { %1061 = vst.msk [vmem:[#allocation2 + $0x8] sm:$0xff] %vm216_vm2, %v1057_v35  ;;  %v11219_v38 = vpop.f32.mrb[11].mxu1  ;;  %v1823_v35 = vld [vmem:[%s14719_s10 + $0x68] sm:$0xff] }
 0x51b   :  { %v11541_v36 = vpack.c.bf16 %v1823_v35, %v1822_v34 }
 0x51d   :  { %v1224_v40 = vpop.f32.mrb[12].mxu1 }
 0x51e   :  { %1229 = vrot.lane.b32.xlu0 %v1224_v40, %s12564_s16  ;;  %v11229_v41 = vpop.f32.mrb[13].mxu1 }
 0x521   :  { %v1395_v42 = vpop.f32.mrb[14].mxu1 }
 0x522   :  { %1400 = vrot.lane.b32.xlu0 %v1395_v42, %s14757_s28  ;;  %v11239_v43 = vpop.f32.mrb[15].mxu1 }
 0x525   :  { %v1566_v44 = vpop.f32.mrb[16].mxu1 }
 0x526   :  { %1571 = vrot.lane.b32.xlu1 %v1566_v44, %s14755_s6  ;;  %v11249_v45 = vpop.f32.mrb[17].mxu1  ;;  %v10577_v44 = vld [vmem:[%s14721_s12] ss:$0 sm:$0xff]  ;;  %s14797_s6 = smov 120  }
 0x553   :  { %v548_v46 = vpop.permute.xlu0 %547 }
 0x554   :  { %551 = vst.msk [vmem:[#allocation2] sm:$0xff] %vm550_vm3, %v548_v46  ;;  %v10578_v46 = vld [vmem:[%s14722_s13] ss:$0 sm:$0xff] }
 0x557   :  { %v720_v47 = vpop.permute.xlu1 %719 }
 0x558   :  { %723 = vst.msk [vmem:[#allocation2] sm:$0xff] %vm722_vm4, %v720_v47 }
 0x55b   :  { %v892_v48 = vpop.permute.xlu1 %891 }
 0x55c   :  { %895 = vst.msk [vmem:[#allocation2] sm:$0xff] %vm894_vm5, %v892_v48 }
 0x563   :  { %v1575_v49 = vld [vmem:[#allocation2] sm:$0xff] }
 0x564   :  { %11258 = vmatprep.mubr.msk.f32.mxu0 %vm131_vm0, %v1575_v49 }
 0x590   :  { %v1230_v50 = vpop.permute.xlu0 %1229 }
 0x591   :  { %1232 = vst.msk [vmem:[#allocation2 + $0x8] sm:$0xff] %vm550_vm3, %v1230_v50 }
 0x594   :  { %v1401_v51 = vpop.permute.xlu0 %1400 }
 0x595   :  { %1403 = vst.msk [vmem:[#allocation2 + $0x8] sm:$0xff] %vm722_vm4, %v1401_v51 }
 0x598   :  { %v1572_v52 = vpop.permute.xlu1 %1571 }
 0x599   :  { %1574 = vst.msk [vmem:[#allocation2 + $0x8] sm:$0xff] %vm894_vm5, %v1572_v52 }
 0x5a0   :  { %v1576_v53 = vld [vmem:[#allocation2 + $0x8] sm:$0xff] }
 0x5a1   :  { %11259 = vmatmul.mubr.msk.f32.vlgmr.msra.gmra.mrb[16].mxu0 %vm131_vm0, %v1576_v53  ;;  %v1824_v53 = vld [vmem:[%s14719_s10 + $0x70] sm:$0xff] }
 0x5a2   :  { %11520 = vmatpush3.bf16.msra.mxu0 %v11517_v15  ;;  %v10585_v15 = vld [vmem:[%s14791_s0 + $0x20] sm:$0xff]  ;;  %s14807_s0 = smov 24  }
 0x5a3   :  { %11522 = vmatprep.subr.bf16.mxu0 %v11521_v18 }
 0x5a6   :  { %11524 = vmatpush3.bf16.msra.mxu0 %v11521_v18  ;;  %v11549_v18 = vpack.c.bf16 %v10586_v16, %v10585_v15 }
 0x5a7   :  { %11526 = vmatprep.subr.bf16.mxu0 %v11525_v23 }
 0x5a8   :  { %11550 = vmatprep.subr.bf16.mxu1 %v11549_v18 }
 0x5aa   :  { %11528 = vmatpush3.bf16.msra.mxu0 %v11525_v23  ;;  %v11553_v23 = vpack.c.bf16 %v10588_v22, %v10587_v19 }
 0x5ab   :  { %11530 = vmatprep.subr.bf16.mxu0 %v11529_v28 }
 0x5ae   :  { %11532 = vmatpush3.bf16.msra.mxu0 %v11529_v28 }
 0x5af   :  { %11534 = vmatprep.subr.bf16.mxu0 %v11533_v30 }
 0x5b2   :  { %11536 = vmatpush3.bf16.msra.mxu0 %v11533_v30 }
 0x5b3   :  { %11538 = vmatprep.subr.bf16.mxu0 %v11537_v33 }
 0x5b6   :  { %11540 = vmatpush3.bf16.msra.mxu0 %v11537_v33 }
 0x5b7   :  { %11542 = vmatprep.subr.bf16.mxu0 %v11541_v36 }
 0x5ba   :  { %11544 = vmatpush3.bf16.msra.mxu0 %v11541_v36  ;;  %v10584_v36 = vld [vmem:[%s14724_s15] ss:$0 sm:$0xff] }
 0x674   :  { %v11260_v55 = vpop.f32.mrb[16].mxu0 }
 0x675   :  { %v1666_v56 = vadd.f32 %v11260_v55, %v10574_v54  ;;  %v1660_v57 = vpop.f32.mrb[17].mxu0 }
 0x676   :  { %v1661_v58 = vadd.f32 %v10574_v54, %v1660_v57  ;;  %v1825_v54 = vld [vmem:[%s14719_s10 + $0x78] sm:$0xff] }
 0x677   :  { %v1670_v59 = vadd.f32 %v1666_v56, %v12732_v20  ;;  %v11545_v55 = vpack.c.bf16 %v1825_v54, %v1824_v53  ;;  %v10579_v56 = vld [vmem:[%s14718_s9] ss:$0 sm:$0xff] }
 0x678   :  { %v1669_v60 = vadd.f32 %v1661_v58, %v12725_v17 }
 0x679   :  { %v1676_v61 = vsel %vm131_vm0, %v1670_v59, 0.0  ;;  %11546 = vmatprep.subr.bf16.mxu0 %v11545_v55 }
 0x67a   :  { %1677 = vadd.xlane.f32.xlu1 %v1676_v61  ;;  %v1673_v62 = vsel %vm131_vm0, %v1669_v60, 0.0  ;;  %11548 = vmatpush3.bf16.msra.mxu0 %v11545_v55 }
 0x67b   :  { %1674 = vadd.xlane.f32.xlu0 %v1673_v62  ;;  %11348 = vmatprep.subr.mxu0 %v14759_v21 }
 0x707   :  { %v1678_v63 = vpop.xlane.xlu1 %1677 }
 0x708   :  { %v1681_v26 = vmul.f32 0.03125, %v1678_v63  ;;  %v1675_v0 = vpop.xlane.xlu0 %1674  ;;  %v10582_v63 = vld [vmem:[%s14720_s11] ss:$0 sm:$0xff] }
 0x709   :  { %v1680_v1 = vmul.f32 0.03125, %v1675_v0 }
 0x70a   :  { %v12931_v2 = vsub.f32 %v1670_v59, %v1681_v26 }
 0x70b   :  { %v1682_v3 = vsub.f32 %v1669_v60, %v1680_v1 }
 0x70c   :  { %v1685_v20 = vmul.f32 %v12931_v2, %v12931_v2 }
 0x70d   :  { %v1684_v4 = vmul.f32 %v1682_v3, %v1682_v3 }
 0x70e   :  { %v1689_v17 = vsel %vm131_vm0, %v1685_v20, 0.0 }
 0x70f   :  { %v1686_v5 = vsel %vm131_vm0, %v1684_v4, 0.0 }
 0x710   :  { %1687 = vadd.xlane.f32.xlu0 %v1686_v5 }
 0x714   :  { %1690 = vadd.xlane.f32.xlu0 %v1689_v17 }
 0x79d   :  { %v1688_v37 = vpop.xlane.xlu0 %1687 }
 0x79e   :  { %v1692_v38 = vmul.f32 0.03125, %v1688_v37 }
 0x7a0   :  { %v1694_v39 = vadd.f32 1e-05, %v1692_v38 }
 0x7a1   :  { %v1691_v40 = vpop.xlane.xlu0 %1690 }
 0x7a2   :  { %12452 = vrsqrt.f32 %v1694_v39  ;;  %v1693_v41 = vmul.f32 0.03125, %v1691_v40 }
 0x7a4   :  { %v1695_v42 = vadd.f32 1e-05, %v1693_v41  ;;  %v10590_v41 = vld [vmem:[%s14795_s26 + $0x1] ss:$0 sm:$0xff]  ;;  %s14798_s26 = smov 64  }
 0x7a6   :  { %12454 = vrsqrt.f32 %v1695_v42 }
 0x7ac   :  { %v12453_v43 = vpop.eup %12452 }
 0x7ad   :  { %v1698_v45 = vmul.f32 %v12453_v43, %v1682_v3 }
 0x7af   :  { %v1706_v47 = vmul.f32 %v10577_v44, %v1698_v45 }
 0x7b0   :  { %v12455_v48 = vpop.eup %12454 }
 0x7b1   :  { %v1699_v49 = vmul.f32 %v12455_v48, %v12931_v2  ;;  %v1714_v50 = vadd.f32 %v10578_v46, %v1706_v47 }
 0x7b3   :  { %v1707_v51 = vmul.f32 %v10577_v44, %v1699_v49  ;;  %11269 = vmatprep.mubr.msk.f32.mxu1 %vm131_vm0, %v1714_v50 }
 0x7b5   :  { %v1715_v52 = vadd.f32 %v10578_v46, %v1707_v51 }
 0x7b7   :  { %11270 = vmatmul.mubr.msk.f32.vlgmr.msra.gmra.mrb[18].mxu1 %vm131_vm0, %v1715_v52 }
 0x7b8   :  { %11552 = vmatpush3.bf16.msra.mxu1 %v11549_v18 }
 0x7b9   :  { %11554 = vmatprep.subr.bf16.mxu1 %v11553_v23 }
 0x7bc   :  { %11556 = vmatpush3.bf16.msra.mxu1 %v11553_v23 }
 0x7bd   :  { %11318 = vmatprep.subr.mxu1 %v14759_v21 }
 0x88a   :  { %v11271_v57 = vpop.f32.mrb[18].mxu1 }
 0x88b   :  { %v1805_v58 = vadd.f32 %v11271_v57, %v10579_v56  ;;  %v1799_v59 = vpop.f32.mrb[19].mxu1 }
 0x88c   :  { %v1800_v60 = vadd.f32 %v10579_v56, %v1799_v59 }
 0x88d   :  { %v1809_v62 = vmax.f32 %v1805_v58, 0.0 }
 0x88e   :  { %v1808_v61 = vmax.f32 %v1800_v60, 0.0 }
 0x890   :  { %11304 = vmatprep.mubr.f32.mxu0 %v1808_v61 }
 0x891   :  { %11305 = vmatmul.mubr.f32.vlgmr.msra.gmra.mrb[18].mxu0 %v1809_v62 }
 0x892   :  { %11350 = vmatprep.mubr.msk.f32.mxu0 %vm12553_vm1, %v14759_v21 }
 0x964   :  { %v11306_v26 = vpop.f32.mrb[18].mxu0 }
 0x965   :  { %v1905_v0 = vadd.f32 %v11306_v26, %v10582_v63  ;;  %v1899_v1 = vpop.f32.mrb[19].mxu0 }
 0x966   :  { %v1900_v2 = vadd.f32 %v10582_v63, %v1899_v1 }
 0x967   :  { %v1909_v3 = vadd.f32 %v1905_v0, %v1715_v52 }
 0x968   :  { %v1908_v4 = vadd.f32 %v1900_v2, %v1714_v50 }
 0x969   :  { %v1915_v5 = vsel %vm131_vm0, %v1909_v3, 0.0 }
 0x96a   :  { %1916 = vadd.xlane.f32.xlu0 %v1915_v5  ;;  %v1912_v20 = vsel %vm131_vm0, %v1908_v4, 0.0 }
 0x96b   :  { %1913 = vadd.xlane.f32.xlu1 %v1912_v20 }
 0x9f7   :  { %v1917_v17 = vpop.xlane.xlu0 %1916 }
 0x9f8   :  { %v1919_v6 = vmul.f32 0.03125, %v1917_v17  ;;  %v1914_v7 = vpop.xlane.xlu1 %1913 }
 0x9f9   :  { %v1918_v8 = vmul.f32 0.03125, %v1914_v7 }
 0x9fa   :  { %v1921_v9 = vsub.f32 %v1909_v3, %v1919_v6 }
 0x9fb   :  { %v1920_v10 = vsub.f32 %v1908_v4, %v1918_v8 }
 0x9fc   :  { %v1923_v11 = vmul.f32 %v1921_v9, %v1921_v9 }
 0x9fd   :  { %v1922_v12 = vmul.f32 %v1920_v10, %v1920_v10 }
 0x9fe   :  { %v1927_v13 = vsel %vm131_vm0, %v1923_v11, 0.0 }
 0x9ff   :  { %1928 = vadd.xlane.f32.xlu0 %v1927_v13  ;;  %v1924_v14 = vsel %vm131_vm0, %v1922_v12, 0.0 }
 0xa00   :  { %1925 = vadd.xlane.f32.xlu1 %v1924_v14 }
 0xa8c   :  { %v1929_v24 = vpop.xlane.xlu0 %1928 }
 0xa8d   :  { %v1931_v27 = vmul.f32 0.03125, %v1929_v24  ;;  %v1926_v28 = vpop.xlane.xlu1 %1925 }
 0xa8e   :  { %v1930_v25 = vmul.f32 0.03125, %v1926_v28 }
 0xa8f   :  { %v1933_v29 = vadd.f32 1e-05, %v1931_v27 }
 0xa90   :  { %v1932_v30 = vadd.f32 1e-05, %v1930_v25 }
 0xa91   :  { %12456 = vrsqrt.f32 %v1933_v29 }
 0xa92   :  { %12458 = vrsqrt.f32 %v1932_v30 }
 0xa9b   :  { %v12457_v31 = vpop.eup %12456 }
 0xa9c   :  { %v12459_v33 = vpop.eup %12458  ;;  %v1937_v34 = vmul.f32 %v12457_v31, %v1921_v9 }
 0xa9d   :  { %v1936_v35 = vmul.f32 %v12459_v33, %v1920_v10 }
 0xa9e   :  { %v1945_v37 = vmul.f32 %v10583_v32, %v1937_v34 }
 0xa9f   :  { %v1944_v38 = vmul.f32 %v10583_v32, %v1936_v35 }
 0xaa0   :  { %v13040_v40 = vadd.f32 %v10584_v36, %v1945_v37 }
 0xaa1   :  { %v13038_v39 = vadd.f32 %v10584_v36, %v1944_v38 }
 0xaa3   :  { %11315 = vmatprep.mubr.msk.f32.mxu1 %vm131_vm0, %v13038_v39 }
 0xaa4   :  { %11316 = vmatmul.mubr.msk.f32.vlgmr.msra.gmra.mrb[20].mxu1 %vm131_vm0, %v13040_v40 }
 0xaa5   :  { %11320 = vmatprep.mubr.msk.f32.mxu1 %vm12553_vm1, %v14759_v21 }
 0xb77   :  { %v11317_v42 = vpop.f32.mrb[20].mxu1 }
 0xb78   :  { %v13051_v43 = vadd.f32 %v11317_v42, %v10590_v41  ;;  %v2039_v44 = vpop.f32.mrb[21].mxu1 }
 0xb79   :  { %v13053_v45 = vadd.f32 %v10590_v41, %v2039_v44 }
 0xb7b   :  { %2049 = vrot.lane.b32.xlu1 %v13053_v45, %s12555_s27 }
 0xb7f   :  { %2216 = vrot.lane.b32.xlu1 %v13053_v45, %s12557_s29 }
 0xb83   :  { %2214 = vrot.lane.b32.xlu1 %v13053_v45, %s14797_s6 }
 0xbed   :  { %v2050_v46 = vpop.permute.xlu1 %2049 }
 0xbee   :  { %11319 = vmatpush3.xpose.msk.msra.mxu1 %vm216_vm2, %v2050_v46 }
 0xbef   :  { %11323 = vmatprep.subr.mxu1 %v14759_v21 }
 0xbf1   :  { %11321 = vmatmul.mubr.msk.f32.vlgmr.msra.gmra.mrb[22].mxu1 %vm216_vm2, %v13053_v45  ;;  %v2217_v59 = vpop.permute.xlu1 %2216 }
 0xbf2   :  { %11325 = vmatprep.mubr.msk.f32.mxu1 %vm12553_vm1, %v14759_v21 }
 0xbf5   :  { %v2215_v61 = vpop.permute.xlu1 %2214 }
 0xcc4   :  { %v2121_v47 = vpop.f32.mrb[22].mxu1 }
 0xcc5   :  { %v2125_v48 = vmul.f32 0.35355338, %v2121_v47  ;;  %v11322_v49 = vpop.f32.mrb[23].mxu1 }
 0xcc7   :  { %v2126_v50 = vsel %vm216_vm2, %v2125_v48, -inf }
 0xcc8   :  { %2127 = vmax.xlane.f32.xlu0 %v2126_v50 }
 0xd55   :  { %v2128_v51 = vpop.xlane.xlu0 %2127 }
 0xd56   :  { %v2129_v52 = vsub.f32 %v2125_v48, %v2128_v51 }
 0xd58   :  { %v2130_v53 = vmul.f32 1.442695, %v2129_v52 }
 0xd5a   :  { %12460 = vpow2.f32 %v2130_v53 }
 0xd64   :  { %v12461_v54 = vpop.eup %12460 }
 0xd65   :  { %v2132_v55 = vsel %vm216_vm2, %v12461_v54, 0.0 }
 0xd66   :  { %2133 = vadd.xlane.f32.xlu0 %v2132_v55 }
 0xd7c   :  { %2137 = vrot.lane.b32.xlu0 %v13053_v45, %s14798_s26 }
 0xdf3   :  { %v2134_v56 = vpop.xlane.xlu0 %2133 }
 0xdf4   :  { %12462 = vrcp.f32 %v2134_v56 }
 0xdf7   :  { %v2138_v57 = vpop.permute.xlu0 %2137 }
 0xdf8   :  { %11324 = vmatpush3.msra.mxu1 %v2138_v57 }
 0xdf9   :  { %11328 = vmatprep.subr.mxu1 %v14759_v21 }
 0xdfe   :  { %v12463_v58 = vpop.eup %12462 }
 0xdff   :  { %v2136_v60 = vmul.f32 %v12463_v58, %v12461_v54 }
 0xe01   :  { %11326 = vmatmul.mubr.msk.f32.vlgmr.msra.gmra.mrb[24].mxu1 %vm216_vm2, %v2136_v60 }
 0xe02   :  { %11329 = vmatpush3.xpose.msk.msra.mxu1 %vm216_vm2, %v2217_v59  ;;  %11330 = vmatprep.mubr.msk.f32.mxu1 %vm12553_vm1, %v14759_v21 }
 0xe03   :  { %11333 = vmatprep.subr.mxu1 %v14759_v21 }
 0xe05   :  { %11331 = vmatmul.mubr.msk.f32.vlgmr.msra.gmra.mrb[26].mxu1 %vm216_vm2, %v2215_v61 }
 0xe06   :  { %11335 = vmatprep.mubr.msk.f32.mxu1 %vm12553_vm1, %v14759_v21 }
 0xed4   :  { %v2209_v62 = vpop.f32.mrb[24].mxu1 }
 0xed5   :  { %2213 = vst.msk [vmem:[#allocation2] sm:$0xff] %vm216_vm2, %v2209_v62  ;;  %v11327_v63 = vpop.f32.mrb[25].mxu1 }
 0xed8   :  { %v2288_v26 = vpop.f32.mrb[26].mxu1 }
 0xed9   :  { %v2292_v0 = vmul.f32 0.35355338, %v2288_v26  ;;  %v11332_v1 = vpop.f32.mrb[27].mxu1 }
 0xedb   :  { %v2293_v2 = vsel %vm216_vm2, %v2292_v0, -inf }
 0xedc   :  { %2294 = vmax.xlane.f32.xlu1 %v2293_v2 }
 0xeed   :  { %2304 = vrot.lane.b32.xlu1 %v13053_v45, %s14799_s23 }
 0xef1   :  { %2385 = vrot.lane.b32.xlu1 %v13053_v45, %s14800_s1 }
 0xef5   :  { %2558 = vrot.lane.b32.xlu1 %v13053_v45, %s14801_s5 }
 0xef9   :  { %2728 = vrot.lane.b32.xlu1 %v13051_v43, %s12555_s27  ;;  %s14803_s27 = smov 80  }
 0xefd   :  { %2893 = vrot.lane.b32.xlu1 %v13051_v43, %s14797_s6 }
 0xf01   :  { %3064 = vrot.lane.b32.xlu1 %v13051_v43, %s14800_s1 }
 0xf05   :  { %3235 = vrot.lane.b32.xlu1 %v13051_v43, %s14802_s24 }
 0xf69   :  { %v2295_v3 = vpop.xlane.xlu1 %2294 }
 0xf6a   :  { %v2296_v4 = vsub.f32 %v2292_v0, %v2295_v3 }
 0xf6c   :  { %v2297_v5 = vmul.f32 1.442695, %v2296_v4 }
 0xf6d   :  { %v2305_v20 = vpop.permute.xlu1 %2304 }
 0xf6e   :  { %12464 = vpow2.f32 %v2297_v5  ;;  %11334 = vmatpush3.msra.mxu1 %v2305_v20 }
 0xf6f   :  { %11338 = vmatprep.subr.mxu1 %v14759_v21 }
 0xf71   :  { %v2386_v17 = vpop.permute.xlu1 %2385 }
 0xf75   :  { %v2559_v6 = vpop.permute.xlu1 %2558 }
 0xf76   :  { %11349 = vmatpush3.xpose.msk.msra.mxu0 %vm216_vm2, %v2559_v6 }
 0xf77   :  { %11358 = vmatprep.subr.mxu0 %v14759_v21 }
 0xf78   :  { %v12465_v7 = vpop.eup %12464 }
 0xf79   :  { %v2299_v8 = vsel %vm216_vm2, %v12465_v7, 0.0  ;;  %v2729_v11 = vpop.permute.xlu1 %2728 }
 0xf7a   :  { %2300 = vadd.xlane.f32.xlu0 %v2299_v8 }
 0xf7d   :  { %v2894_v14 = vpop.permute.xlu1 %2893 }
 0xf81   :  { %v3065_v19 = vpop.permute.xlu1 %3064 }
 0xf85   :  { %v3236_v23 = vpop.permute.xlu1 %3235 }
 0xf90   :  { %2387 = vrot.lane.b32.xlu0 %v13053_v45, %s14803_s27 }
 0xf94   :  { %2556 = vrot.lane.b32.xlu0 %v13053_v45, %s14802_s24 }
 0xf98   :  { %2895 = vrot.lane.b32.xlu0 %v13051_v43, %s12557_s29  ;;  %s14804_s29 = smov 48  }
 0xf9c   :  { %3066 = vrot.lane.b32.xlu0 %v13051_v43, %s14803_s27 }
 0xfa0   :  { %3237 = vrot.lane.b32.xlu0 %v13051_v43, %s14801_s5 }
0x1007   :  { %v2301_v9 = vpop.xlane.xlu0 %2300 }
0x1008   :  { %12466 = vrcp.f32 %v2301_v9 }
0x100b   :  { %v2388_v10 = vpop.permute.xlu0 %2387 }
0x100f   :  { %v2557_v12 = vpop.permute.xlu0 %2556 }
0x1010   :  { %11351 = vmatmul.mubr.msk.f32.vlgmr.msra.gmra.mrb[20].mxu0 %vm216_vm2, %v2557_v12 }
0x1011   :  { %11359 = vmatpush3.xpose.msk.msra.mxu0 %vm216_vm2, %v2729_v11  ;;  %11360 = vmatprep.mubr.msk.f32.mxu0 %vm12553_vm1, %v14759_v21 }
0x1012   :  { %v12467_v13 = vpop.eup %12466  ;;  %11368 = vmatprep.subr.mxu0 %v14759_v21 }
0x1013   :  { %v2303_v15 = vmul.f32 %v12467_v13, %v12465_v7  ;;  %v2896_v16 = vpop.permute.xlu0 %2895 }
0x1014   :  { %11361 = vmatmul.mubr.msk.f32.vlgmr.msra.gmra.mrb[22].mxu0 %vm216_vm2, %v13051_v43 }
0x1015   :  { %11369 = vmatpush3.xpose.msk.msra.mxu0 %vm216_vm2, %v2896_v16  ;;  %11336 = vmatmul.mubr.msk.f32.vlgmr.msra.gmra.mrb[28].mxu1 %vm216_vm2, %v2303_v15 }
0x1016   :  { %11339 = vmatpush3.xpose.msk.msra.mxu1 %vm216_vm2, %v2388_v10  ;;  %11370 = vmatprep.mubr.msk.f32.mxu0 %vm12553_vm1, %v14759_v21 }
0x1017   :  { %v3067_v18 = vpop.permute.xlu0 %3066  ;;  %11378 = vmatprep.subr.mxu0 %v14759_v21  ;;  %11340 = vmatprep.mubr.msk.f32.mxu1 %vm12553_vm1, %v14759_v21 }
0x1018   :  { %11371 = vmatmul.mubr.msk.f32.vlgmr.msra.gmra.mrb[24].mxu0 %vm216_vm2, %v2894_v14  ;;  %11343 = vmatprep.subr.mxu1 %v14759_v21 }
0x1019   :  { %11379 = vmatpush3.xpose.msk.msra.mxu0 %vm216_vm2, %v3067_v18  ;;  %11341 = vmatmul.mubr.msk.f32.vlgmr.msra.gmra.mrb[30].mxu1 %vm216_vm2, %v2386_v17 }
0x101a   :  { %11380 = vmatprep.mubr.msk.f32.mxu0 %vm12553_vm1, %v14759_v21  ;;  %11388 = vmatprep.subr.mxu0 %v14759_v21 }
0x101b   :  { %v3238_v22 = vpop.permute.xlu0 %3237  ;;  %11345 = vmatprep.mubr.msk.f32.mxu1 %vm12553_vm1, %v14759_v21 }
0x101c   :  { %11381 = vmatmul.mubr.msk.f32.vlgmr.msra.gmra.mrb[26].mxu0 %vm216_vm2, %v3065_v19 }
0x101d   :  { %11389 = vmatpush3.xpose.msk.msra.mxu0 %vm216_vm2, %v3238_v22  ;;  %11390 = vmatprep.mubr.msk.f32.mxu0 %vm12553_vm1, %v14759_v21 }
0x1020   :  { %11391 = vmatmul.mubr.msk.f32.vlgmr.msra.gmra.mrb[28].mxu0 %vm216_vm2, %v3236_v23 }
0x10e3   :  { %v2630_v24 = vpop.f32.mrb[20].mxu0 }
0x10e4   :  { %v2634_v27 = vmul.f32 0.35355338, %v2630_v24  ;;  %v11352_v28 = vpop.f32.mrb[21].mxu0 }
0x10e6   :  { %v2635_v25 = vsel %vm216_vm2, %v2634_v27, -inf }
0x10e7   :  { %2636 = vmax.xlane.f32.xlu1 %v2635_v25  ;;  %v2800_v29 = vpop.f32.mrb[22].mxu0 }
0x10e8   :  { %v13140_v30 = vpop.f32.mrb[28].mxu1  ;;  %v11362_v31 = vpop.f32.mrb[23].mxu0  ;;  %v2804_v38 = vmul.f32 0.35355338, %v2800_v29 }
0x10e9   :  { %v11337_v32 = vpop.f32.mrb[29].mxu1 }
0x10ea   :  { %v2805_v50 = vsel %vm216_vm2, %v2804_v38, -inf }
0x10eb   :  { %v2967_v33 = vpop.f32.mrb[24].mxu0 }
0x10ec   :  { %v2459_v34 = vpop.f32.mrb[30].mxu1  ;;  %v11372_v35 = vpop.f32.mrb[25].mxu0  ;;  %v2971_v48 = vmul.f32 0.35355338, %v2967_v33 }
0x10ed   :  { %v2463_v36 = vmul.f32 0.35355338, %v2459_v34  ;;  %v11342_v37 = vpop.f32.mrb[31].mxu1 }
0x10ee   :  { %v2972_v53 = vsel %vm216_vm2, %v2971_v48, -inf }
0x10ef   :  { %v3138_v41 = vpop.f32.mrb[26].mxu0  ;;  %v2464_v42 = vsel %vm216_vm2, %v2463_v36, -inf }
0x10f0   :  { %v3142_v44 = vmul.f32 0.35355338, %v3138_v41  ;;  %v11382_v46 = vpop.f32.mrb[27].mxu0  ;;  %2465 = vmax.xlane.f32.xlu0 %v2464_v42 }
0x10f2   :  { %v3143_v47 = vsel %vm216_vm2, %v3142_v44, -inf }
0x10f3   :  { %3144 = vmax.xlane.f32.xlu1 %v3143_v47  ;;  %v3309_v49 = vpop.f32.mrb[28].mxu0 }
0x10f4   :  { %v11392_v51 = vpop.f32.mrb[29].mxu0  ;;  %2806 = vmax.xlane.f32.xlu0 %v2805_v50  ;;  %v3313_v52 = vmul.f32 0.35355338, %v3309_v49 }
0x10f6   :  { %v3314_v54 = vsel %vm216_vm2, %v3313_v52, -inf }
0x10f8   :  { %2973 = vmax.xlane.f32.xlu0 %v2972_v53  ;;  %v10617_v53 = vld [vmem:[%s14796_s4 + $0x20] sm:$0xff] }
0x10fc   :  { %3315 = vmax.xlane.f32.xlu0 %v3314_v54  ;;  %v10618_v54 = vld [vmem:[%s14796_s4 + $0x28] sm:$0xff] }
0x1174   :  { %v2637_v55 = vpop.xlane.xlu1 %2636 }
0x1175   :  { %v2638_v56 = vsub.f32 %v2634_v27, %v2637_v55  ;;  %v11557_v55 = vpack.c.bf16 %v10618_v54, %v10617_v53  ;;  %v10649_v54 = vld [vmem:[%s14719_s10 + $0xe0] sm:$0xff] }
0x1177   :  { %v2639_v57 = vmul.f32 1.442695, %v2638_v56  ;;  %11558 = vmatprep.subr.bf16.mxu0 %v11557_v55 }
0x1178   :  { %11560 = vmatpush3.bf16.msra.mxu0 %v11557_v55  ;;  %v10650_v55 = vld [vmem:[%s14719_s10 + $0xe8] sm:$0xff] }
0x1179   :  { %12468 = vpow2.f32 %v2639_v57  ;;  %v10619_v57 = vld [vmem:[%s14796_s4 + $0x30] sm:$0xff] }
0x117d   :  { %v2466_v58 = vpop.xlane.xlu0 %2465 }
0x117e   :  { %v2467_v14 = vsub.f32 %v2463_v36, %v2466_v58  ;;  %v10620_v58 = vld [vmem:[%s14796_s4 + $0x38] sm:$0xff] }
0x1180   :  { %v3145_v59 = vpop.xlane.xlu1 %3144  ;;  %v2468_v15 = vmul.f32 1.442695, %v2467_v14 }
0x1181   :  { %v3146_v60 = vsub.f32 %v3142_v44, %v3145_v59  ;;  %v2807_v61 = vpop.xlane.xlu0 %2806 }
0x1182   :  { %v2808_v62 = vsub.f32 %v2804_v38, %v2807_v61 }
0x1183   :  { %v13147_v63 = vpop.eup %12468  ;;  %v3147_v26 = vmul.f32 1.442695, %v3146_v60  ;;  %v11561_v60 = vpack.c.bf16 %v10620_v58, %v10619_v57 }
0x1184   :  { %v2809_v0 = vmul.f32 1.442695, %v2808_v62  ;;  %v2641_v1 = vsel %vm216_vm2, %v13147_v63, 0.0 }
0x1185   :  { %2642 = vadd.xlane.f32.xlu0 %v2641_v1  ;;  %v2974_v2 = vpop.xlane.xlu0 %2973  ;;  %11562 = vmatprep.subr.bf16.mxu0 %v11561_v60 }
0x1186   :  { %12470 = vpow2.f32 %v2809_v0  ;;  %v2975_v3 = vsub.f32 %v2971_v48, %v2974_v2  ;;  %11564 = vmatpush3.bf16.msra.mxu0 %v11561_v60 }
0x1187   :  { %12472 = vpow2.f32 %v3147_v26 }
0x1188   :  { %v2976_v4 = vmul.f32 1.442695, %v2975_v3 }
0x1189   :  { %v3316_v5 = vpop.xlane.xlu0 %3315 }
0x118a   :  { %12474 = vpow2.f32 %v2976_v4  ;;  %v3317_v20 = vsub.f32 %v3313_v52, %v3316_v5 }
0x118c   :  { %v3318_v17 = vmul.f32 1.442695, %v3317_v20 }
0x118e   :  { %12476 = vpow2.f32 %v3318_v17 }
0x118f   :  { %12478 = vpow2.f32 %v2468_v15 }
0x1190   :  { %v12471_v6 = vpop.eup %12470 }
0x1191   :  { %v2811_v7 = vsel %vm216_vm2, %v12471_v6, 0.0  ;;  %v13152_v8 = vpop.eup %12472 }
0x1192   :  { %2812 = vadd.xlane.f32.xlu1 %v2811_v7  ;;  %v3149_v10 = vsel %vm216_vm2, %v13152_v8, 0.0  ;;  %v10622_v7 = vld [vmem:[%s14716_s7 + $0x1] ss:$0 sm:$0xff] }
0x1194   :  { %v12475_v9 = vpop.eup %12474 }
0x1195   :  { %v2978_v11 = vsel %vm216_vm2, %v12475_v9, 0.0 }
0x1196   :  { %3150 = vadd.xlane.f32.xlu1 %v3149_v10  ;;  %2979 = vadd.xlane.f32.xlu0 %v2978_v11 }
0x1198   :  { %v13157_v12 = vpop.eup %12476 }
0x1199   :  { %v3320_v13 = vsel %vm216_vm2, %v13157_v12, 0.0  ;;  %v12479_v16 = vpop.eup %12478 }
0x119a   :  { %3321 = vadd.xlane.f32.xlu0 %v3320_v13  ;;  %v2470_v18 = vsel %vm216_vm2, %v12479_v16, 0.0 }
0x11a7   :  { %2475 = vrot.lane.b32.xlu1 %v13053_v45, %s14804_s29 }
0x11b0   :  { %2646 = vrot.lane.b32.xlu0 %v13053_v45, %s14805_s25 }
0x11b4   :  { %3154 = vrot.lane.b32.xlu0 %v13051_v43, %s14804_s29 }
0x11b8   :  { %2381 = vrot.lane.b32.xlu0 %v13140_v30, %s12564_s16 }
0x11cb   :  { %2471 = vadd.xlane.f32.xlu1 %v2470_v18 }
0x11dc   :  { %2816 = vrot.lane.b32.xlu1 %v13051_v43, %s14798_s26 }
0x11e0   :  { %2983 = vrot.lane.b32.xlu1 %v13051_v43, %s14799_s23 }
0x11e4   :  { %3325 = vrot.lane.b32.xlu1 %v13051_v43, %s14805_s25 }
0x1212   :  { %v2643_v45 = vpop.xlane.xlu0 %2642 }
0x121f   :  { %v2813_v19 = vpop.xlane.xlu1 %2812 }
0x1223   :  { %v3151_v22 = vpop.xlane.xlu1 %3150  ;;  %v2980_v23 = vpop.xlane.xlu0 %2979 }
0x1227   :  { %v2476_v24 = vpop.permute.xlu1 %2475  ;;  %v3322_v27 = vpop.xlane.xlu0 %3321 }
0x1228   :  { %11344 = vmatpush3.msra.mxu1 %v2476_v24 }
0x1229   :  { %11353 = vmatprep.subr.mxu1 %v14759_v21 }
0x122b   :  { %v2647_v28 = vpop.permute.xlu0 %2646 }
0x122f   :  { %v3155_v25 = vpop.permute.xlu0 %3154 }
0x1233   :  { %v2382_v29 = vpop.permute.xlu0 %2381 }
0x1234   :  { %2384 = vst.msk [vmem:[#allocation2] sm:$0xff] %vm550_vm3, %v2382_v29 }
0x1258   :  { %v2472_v30 = vpop.xlane.xlu1 %2471 }
0x1259   :  { %12480 = vrcp.f32 %v2472_v30  ;;  %v10631_v30 = vld [vmem:[%s14717_s8 + $0x30] sm:$0xff] }
0x125a   :  { %12482 = vrcp.f32 %v2643_v45 }
0x125b   :  { %12484 = vrcp.f32 %v2813_v19 }
0x125c   :  { %12486 = vrcp.f32 %v2980_v23  ;;  %v2817_v34 = vpop.permute.xlu1 %2816 }
0x125d   :  { %12488 = vrcp.f32 %v3151_v22 }
0x125e   :  { %12490 = vrcp.f32 %v3322_v27 }
0x1260   :  { %v2984_v38 = vpop.permute.xlu1 %2983 }
0x1263   :  { %v12481_v31 = vpop.eup %12480 }
0x1264   :  { %v2474_v43 = vmul.f32 %v12481_v31, %v12479_v16  ;;  %v12483_v32 = vpop.eup %12482  ;;  %v3326_v47 = vpop.permute.xlu1 %3325  ;;  %v10632_v31 = vld [vmem:[%s14717_s8 + $0x38] sm:$0xff] }
0x1265   :  { %v2645_v33 = vmul.f32 %v12483_v32, %v13147_v63  ;;  %v12485_v35 = vpop.eup %12484  ;;  %v10637_v32 = vld [vmem:[%s14719_s10 + $0x80] sm:$0xff] }
0x1266   :  { %11346 = vmatmul.mubr.msk.f32.vlgmr.msra.gmra.mrb[32].mxu1 %vm216_vm2, %v2474_v43  ;;  %v2815_v36 = vmul.f32 %v12485_v35, %v12471_v6  ;;  %v12487_v37 = vpop.eup %12486  ;;  %v11569_v43 = vpack.c.bf16 %v10632_v31, %v10631_v30 }
0x1267   :  { %11354 = vmatpush3.msra.mxu1 %v2647_v28  ;;  %11355 = vmatprep.mubr.msk.f32.mxu1 %vm12553_vm1, %v14759_v21  ;;  %v2982_v41 = vmul.f32 %v12487_v37, %v12475_v9  ;;  %v12489_v42 = vpop.eup %12488  ;;  %v10629_v28 = vld [vmem:[%s14717_s8 + $0x20] sm:$0xff] }
0x1268   :  { %11363 = vmatprep.subr.mxu1 %v14759_v21  ;;  %v3153_v44 = vmul.f32 %v12489_v42, %v13152_v8  ;;  %v12491_v46 = vpop.eup %12490 }
0x1269   :  { %v3324_v48 = vmul.f32 %v12491_v46, %v13157_v12  ;;  %v10644_v46 = vld [vmem:[%s14719_s10 + $0xb8] sm:$0xff] }
0x126a   :  { %11356 = vmatmul.mubr.msk.f32.vlgmr.msra.gmra.mrb[34].mxu1 %vm216_vm2, %v2645_v33  ;;  %v10638_v33 = vld [vmem:[%s14719_s10 + $0x88] sm:$0xff] }
0x126b   :  { %11364 = vmatpush3.msra.mxu1 %v2817_v34  ;;  %11365 = vmatprep.mubr.msk.f32.mxu1 %vm12553_vm1, %v14759_v21  ;;  %v10639_v34 = vld [vmem:[%s14719_s10 + $0x90] sm:$0xff]  ;;  %v11573_v35 = vpack.c.bf16 %v10638_v33, %v10637_v32 }
0x126c   :  { %11373 = vmatprep.subr.mxu1 %v14759_v21 }
0x126d   :  { %11574 = vmatprep.subr.bf16.mxu0 %v11573_v35 }
0x126e   :  { %11366 = vmatmul.mubr.msk.f32.vlgmr.msra.gmra.mrb[36].mxu1 %vm216_vm2, %v2815_v36  ;;  %v10640_v36 = vld [vmem:[%s14719_s10 + $0x98] sm:$0xff] }
0x126f   :  { %11374 = vmatpush3.msra.mxu1 %v2984_v38  ;;  %11375 = vmatprep.mubr.msk.f32.mxu1 %vm12553_vm1, %v14759_v21  ;;  %v11577_v37 = vpack.c.bf16 %v10640_v36, %v10639_v34  ;;  %v10641_v38 = vld [vmem:[%s14719_s10 + $0xa0] sm:$0xff]  ;;  %v3804_v36 = vld [vmem:[#allocation3 + $0x48] sm:$0xff] }
0x1270   :  { %11383 = vmatprep.subr.mxu1 %v14759_v21 }
0x1272   :  { %11376 = vmatmul.mubr.msk.f32.vlgmr.msra.gmra.mrb[38].mxu1 %vm216_vm2, %v2982_v41  ;;  %v10642_v41 = vld [vmem:[%s14719_s10 + $0xa8] sm:$0xff] }
0x1273   :  { %11384 = vmatpush3.msra.mxu1 %v3155_v25  ;;  %11385 = vmatprep.mubr.msk.f32.mxu1 %vm12553_vm1, %v14759_v21  ;;  %v10630_v25 = vld [vmem:[%s14717_s8 + $0x28] sm:$0xff]  ;;  %v11581_v42 = vpack.c.bf16 %v10642_v41, %v10641_v38  ;;  %v3795_v38 = vld [vmem:[#allocation3] sm:$0xff] }
0x1274   :  { %11393 = vmatprep.subr.mxu1 %v14759_v21  ;;  %v11565_v29 = vpack.c.bf16 %v10630_v25, %v10629_v28  ;;  %v3803_v41 = vld [vmem:[#allocation3 + $0x40] sm:$0xff] }
0x1276   :  { %11386 = vmatmul.mubr.msk.f32.vlgmr.msra.gmra.mrb[40].mxu1 %vm216_vm2, %v3153_v44  ;;  %v10643_v44 = vld [vmem:[%s14719_s10 + $0xb0] sm:$0xff] }
0x1277   :  { %11394 = vmatpush3.msra.mxu1 %v3326_v47  ;;  %11395 = vmatprep.mubr.msk.f32.mxu1 %vm12553_vm1, %v14759_v21  ;;  %v11585_v47 = vpack.c.bf16 %v10644_v46, %v10643_v44  ;;  %v3812_v44 = vld [vmem:[#allocation3 + $0x88] sm:$0xff] }
0x1278   :  { %11566 = vmatprep.subr.bf16.mxu1 %v11565_v29  ;;  %v3820_v46 = vld [vmem:[#allocation3 + $0xc8] sm:$0xff] }
0x127a   :  { %11396 = vmatmul.mubr.msk.f32.vlgmr.msra.gmra.mrb[42].mxu1 %vm216_vm2, %v3324_v48  ;;  %v10645_v48 = vld [vmem:[%s14719_s10 + $0xc0] sm:$0xff] }
0x127b   :  { %11568 = vmatpush3.bf16.msra.mxu1 %v11565_v29 }
0x127c   :  { %11570 = vmatprep.subr.bf16.mxu1 %v11569_v43 }
0x127f   :  { %11572 = vmatpush3.bf16.msra.mxu1 %v11569_v43 }
0x1339   :  { %v2547_v49 = vpop.f32.mrb[32].mxu1 }
0x133a   :  { %2552 = vrot.lane.b32.xlu1 %v2547_v49, %s14806_s2  ;;  %v11347_v50 = vpop.f32.mrb[33].mxu1  ;;  %v10646_v49 = vld [vmem:[%s14719_s10 + $0xc8] sm:$0xff] }
0x133b   :  { %v11589_v50 = vpack.c.bf16 %v10646_v49, %v10645_v48  ;;  %v3811_v48 = vld [vmem:[#allocation3 + $0x80] sm:$0xff] }
0x133c   :  { %v3819_v49 = vld [vmem:[#allocation3 + $0xc0] sm:$0xff] }
0x133d   :  { %v2718_v51 = vpop.f32.mrb[34].mxu1 }
0x133e   :  { %2723 = vrot.lane.b32.xlu1 %v2718_v51, %s14807_s0  ;;  %v11357_v52 = vpop.f32.mrb[35].mxu1  ;;  %v10647_v51 = vld [vmem:[%s14719_s10 + $0xd0] sm:$0xff] }
0x133f   :  { %v10648_v52 = vld [vmem:[%s14719_s10 + $0xd8] sm:$0xff] }
0x1340   :  { %v11593_v53 = vpack.c.bf16 %v10648_v52, %v10647_v51  ;;  %v3800_v51 = vld [vmem:[#allocation3 + $0x28] sm:$0xff] }
0x1341   :  { %v2888_v56 = vpop.f32.mrb[36].mxu1  ;;  %v3808_v52 = vld [vmem:[#allocation3 + $0x68] sm:$0xff] }
0x1342   :  { %2892 = vst.msk [vmem:[#allocation2 + $0x8] sm:$0xff] %vm216_vm2, %v2888_v56  ;;  %v11367_v59 = vpop.f32.mrb[37].mxu1  ;;  %v11597_v56 = vpack.c.bf16 %v10650_v55, %v10649_v54  ;;  %v3798_v54 = vld [vmem:[#allocation3 + $0x18] sm:$0xff] }
0x1343   :  { %v3806_v55 = vld [vmem:[#allocation3 + $0x58] sm:$0xff] }
0x1345   :  { %v3055_v61 = vpop.f32.mrb[38].mxu1 }
0x1346   :  { %3060 = vrot.lane.b32.xlu0 %v3055_v61, %s12564_s16  ;;  %v11377_v62 = vpop.f32.mrb[39].mxu1 }
0x1349   :  { %v3226_v63 = vpop.f32.mrb[40].mxu1 }
0x134a   :  { %3231 = vrot.lane.b32.xlu0 %v3226_v63, %s14806_s2  ;;  %v11387_v26 = vpop.f32.mrb[41].mxu1 }
0x134b   :  { %v10627_v26 = vld [vmem:[%s14721_s12 + $0x1] ss:$0 sm:$0xff] }
0x134d   :  { %v3397_v0 = vpop.f32.mrb[42].mxu1 }
0x134e   :  { %3402 = vrot.lane.b32.xlu1 %v3397_v0, %s14807_s0  ;;  %v11397_v1 = vpop.f32.mrb[43].mxu1 }
0x134f   :  { %v10628_v1 = vld [vmem:[%s14722_s13 + $0x1] ss:$0 sm:$0xff] }
0x13ac   :  { %v2553_v2 = vpop.permute.xlu1 %2552 }
0x13ad   :  { %2555 = vst.msk [vmem:[#allocation2] sm:$0xff] %vm722_vm4, %v2553_v2 }
0x13b0   :  { %v2724_v3 = vpop.permute.xlu1 %2723 }
0x13b1   :  { %2726 = vst.msk [vmem:[#allocation2] sm:$0xff] %vm894_vm5, %v2724_v3 }
0x13b8   :  { %v3061_v4 = vpop.permute.xlu0 %3060  ;;  %v3406_v5 = vld [vmem:[#allocation2] sm:$0xff] }
0x13b9   :  { %3063 = vst.msk [vmem:[#allocation2 + $0x8] sm:$0xff] %vm550_vm3, %v3061_v4  ;;  %11406 = vmatprep.mubr.msk.f32.mxu0 %vm131_vm0, %v3406_v5 }
0x13bc   :  { %v3232_v20 = vpop.permute.xlu0 %3231 }
0x13bd   :  { %3234 = vst.msk [vmem:[#allocation2 + $0x8] sm:$0xff] %vm722_vm4, %v3232_v20 }
0x13c0   :  { %v3403_v17 = vpop.permute.xlu1 %3402 }
0x13c1   :  { %3405 = vst.msk [vmem:[#allocation2 + $0x8] sm:$0xff] %vm894_vm5, %v3403_v17 }
0x13c8   :  { %v3407_v6 = vld [vmem:[#allocation2 + $0x8] sm:$0xff] }
0x13c9   :  { %11407 = vmatmul.mubr.msk.f32.vlgmr.msra.gmra.mrb[30].mxu0 %vm131_vm0, %v3407_v6  ;;  %v10651_v6 = vld [vmem:[%s14719_s10 + $0xf0] sm:$0xff] }
0x13ca   :  { %11576 = vmatpush3.bf16.msra.mxu0 %v11573_v35  ;;  %v3796_v35 = vld [vmem:[#allocation3 + $0x8] sm:$0xff] }
0x13cb   :  { %11578 = vmatprep.subr.bf16.mxu0 %v11577_v37 }
0x13ce   :  { %11580 = vmatpush3.bf16.msra.mxu0 %v11577_v37  ;;  %v11605_v37 = vpack.c.bf16 %v3804_v36, %v3796_v35  ;;  %v4525_v35 = vld [vmem:[#allocation3 + $0x128] sm:$0xff] }
0x13cf   :  { %11582 = vmatprep.subr.bf16.mxu0 %v11581_v42  ;;  %v4533_v36 = vld [vmem:[#allocation3 + $0x168] sm:$0xff] }
0x13d0   :  { %11606 = vmatprep.subr.bf16.mxu1 %v11605_v37 }
0x13d2   :  { %11584 = vmatpush3.bf16.msra.mxu0 %v11581_v42  ;;  %v11607_v42 = vpack.c.bf16 %v3803_v41, %v3795_v38  ;;  %v3810_v38 = vld [vmem:[#allocation3 + $0x78] sm:$0xff] }
0x13d3   :  { %11586 = vmatprep.subr.bf16.mxu0 %v11585_v47 }
0x13d6   :  { %11588 = vmatpush3.bf16.msra.mxu0 %v11585_v47  ;;  %v11609_v47 = vpack.c.bf16 %v3820_v46, %v3812_v44  ;;  %v4524_v44 = vld [vmem:[#allocation3 + $0x120] sm:$0xff] }
0x13d7   :  { %11590 = vmatprep.subr.bf16.mxu0 %v11589_v50  ;;  %v4532_v46 = vld [vmem:[#allocation3 + $0x160] sm:$0xff] }
0x13da   :  { %11592 = vmatpush3.bf16.msra.mxu0 %v11589_v50  ;;  %v11611_v50 = vpack.c.bf16 %v3819_v49, %v3811_v48  ;;  %v3809_v49 = vld [vmem:[#allocation3 + $0x70] sm:$0xff] }
0x13db   :  { %11594 = vmatprep.subr.bf16.mxu0 %v11593_v53 }
0x13de   :  { %11596 = vmatpush3.bf16.msra.mxu0 %v11593_v53  ;;  %v13320_v53 = vpack.c.bf16 %v3808_v52, %v3800_v51  ;;  %v4549_v51 = vld [vmem:[#allocation3 + $0x1e8] sm:$0xff]  ;;  %v3818_v52 = vld [vmem:[#allocation3 + $0xb8] sm:$0xff] }
0x13df   :  { %11598 = vmatprep.subr.bf16.mxu0 %v11597_v56 }
0x13e2   :  { %11600 = vmatpush3.bf16.msra.mxu0 %v11597_v56  ;;  %v13322_v56 = vpack.c.bf16 %v3806_v55, %v3798_v54  ;;  %v11687_v54 = vpack.c.bf16 %v4532_v46, %v4524_v44 }
0x149c   :  { %v11408_v8 = vpop.f32.mrb[30].mxu0 }
0x149d   :  { %v3499_v9 = vadd.f32 %v11408_v8, %v10622_v7  ;;  %v3493_v10 = vpop.f32.mrb[31].mxu0 }
0x149e   :  { %v3494_v11 = vadd.f32 %v10622_v7, %v3493_v10  ;;  %v10652_v7 = vld [vmem:[%s14719_s10 + $0xf8] sm:$0xff] }
0x149f   :  { %v3503_v12 = vadd.f32 %v3499_v9, %v13040_v40  ;;  %v11601_v8 = vpack.c.bf16 %v10652_v7, %v10651_v6  ;;  %v10634_v9 = vld [vmem:[%s14718_s9 + $0x1] ss:$0 sm:$0xff]  ;;  %v3816_v6 = vld [vmem:[#allocation3 + $0xa8] sm:$0xff] }
0x14a0   :  { %v3502_v13 = vadd.f32 %v3494_v11, %v13038_v39  ;;  %v3824_v7 = vld [vmem:[#allocation3 + $0xe8] sm:$0xff] }
0x14a1   :  { %v3511_v14 = vsel %vm131_vm0, %v3503_v12, 0.0  ;;  %11602 = vmatprep.subr.bf16.mxu0 %v11601_v8 }
0x14a2   :  { %3512 = vadd.xlane.f32.xlu1 %v3511_v14  ;;  %v3508_v15 = vsel %vm131_vm0, %v3502_v13, 0.0  ;;  %11604 = vmatpush3.bf16.msra.mxu0 %v11601_v8 }
0x14a3   :  { %3509 = vadd.xlane.f32.xlu0 %v3508_v15  ;;  %11638 = vmatprep.subr.bf16.mxu0 %v11605_v37  ;;  %v3802_v37 = vld [vmem:[#allocation3 + $0x38] sm:$0xff] }
0x14a4   :  { %v11629_v48 = vpack.c.bf16 %v3810_v38, %v3802_v37  ;;  %v4543_v37 = vld [vmem:[#allocation3 + $0x1b8] sm:$0xff] }
0x14a5   :  { %v4551_v38 = vld [vmem:[#allocation3 + $0x1f8] sm:$0xff] }
0x152f   :  { %v3513_v16 = vpop.xlane.xlu1 %3512 }
0x1530   :  { %v3515_v18 = vmul.f32 0.03125, %v3513_v16  ;;  %v3510_v45 = vpop.xlane.xlu0 %3509  ;;  %v10654_v16 = vld [vmem:[%s14720_s11 + $0x1] ss:$0 sm:$0xff] }
0x1531   :  { %v3514_v19 = vmul.f32 0.03125, %v3510_v45 }
0x1532   :  { %v13233_v22 = vsub.f32 %v3503_v12, %v3515_v18 }
0x1533   :  { %v3516_v23 = vsub.f32 %v3502_v13, %v3514_v19 }
0x1534   :  { %v3519_v40 = vmul.f32 %v13233_v22, %v13233_v22 }
0x1535   :  { %v3518_v24 = vmul.f32 %v3516_v23, %v3516_v23 }
0x1536   :  { %v3523_v39 = vsel %vm131_vm0, %v3519_v40, 0.0 }
0x1537   :  { %v3520_v27 = vsel %vm131_vm0, %v3518_v24, 0.0 }
0x1538   :  { %3521 = vadd.xlane.f32.xlu0 %v3520_v27 }
0x153c   :  { %3524 = vadd.xlane.f32.xlu0 %v3523_v39 }
0x15c5   :  { %v3522_v57 = vpop.xlane.xlu0 %3521 }
0x15c6   :  { %v3526_v58 = vmul.f32 0.03125, %v3522_v57 }
0x15c8   :  { %v3528_v59 = vadd.f32 1e-05, %v3526_v58 }
0x15c9   :  { %v3525_v60 = vpop.xlane.xlu0 %3524 }
0x15ca   :  { %12492 = vrsqrt.f32 %v3528_v59  ;;  %v3527_v61 = vmul.f32 0.03125, %v3525_v60 }
0x15cc   :  { %v3529_v62 = vadd.f32 1e-05, %v3527_v61 }
0x15ce   :  { %12494 = vrsqrt.f32 %v3529_v62 }
0x15d4   :  { %v12493_v63 = vpop.eup %12492 }
0x15d5   :  { %v3532_v0 = vmul.f32 %v12493_v63, %v3516_v23 }
0x15d7   :  { %v3540_v2 = vmul.f32 %v10627_v26, %v3532_v0  ;;  %v10658_v0 = vld [vmem:[%s14724_s15 + $0x1] ss:$0 sm:$0xff] }
0x15d8   :  { %v12495_v3 = vpop.eup %12494 }
0x15d9   :  { %v3533_v4 = vmul.f32 %v12495_v3, %v13233_v22  ;;  %v3548_v5 = vadd.f32 %v10628_v1, %v3540_v2  ;;  %v3799_v3 = vld [vmem:[#allocation3 + $0x20] sm:$0xff] }
0x15db   :  { %v3541_v20 = vmul.f32 %v10627_v26, %v3533_v4  ;;  %11417 = vmatprep.mubr.msk.f32.mxu1 %vm131_vm0, %v3548_v5  ;;  %v10657_v26 = vld [vmem:[%s14723_s14 + $0x1] ss:$0 sm:$0xff]  ;;  %v3807_v4 = vld [vmem:[#allocation3 + $0x60] sm:$0xff] }
0x15dd   :  { %v3549_v17 = vadd.f32 %v10628_v1, %v3541_v20 }
0x15df   :  { %11418 = vmatmul.mubr.msk.f32.vlgmr.msra.gmra.mrb[44].mxu1 %vm131_vm0, %v3549_v17 }
0x15e0   :  { %3894 = vmatprep.mubr.f32.mxu1 %v14759_v21  ;;  %11608 = vmatpush1.bf16.msra.mxu1 %v11607_v42 }
0x15e1   :  { %11610 = vmatprep.subr.bf16.mxu1 %v11609_v47 }
0x15e4   :  { %11612 = vmatpush1.bf16.msra.mxu1 %v11611_v50 }
0x15e5   :  { %11614 = vmatprep.subr.bf16.mxu1 %v13322_v56 }
0x16b2   :  { %v11419_v10 = vpop.f32.mrb[44].mxu1 }
0x16b3   :  { %v3641_v11 = vadd.f32 %v11419_v10, %v10634_v9  ;;  %v3635_v12 = vpop.f32.mrb[45].mxu1  ;;  %v3822_v10 = vld [vmem:[#allocation3 + $0xd8] sm:$0xff] }
0x16b4   :  { %v3636_v13 = vadd.f32 %v10634_v9, %v3635_v12  ;;  %v3814_v9 = vld [vmem:[#allocation3 + $0x98] sm:$0xff]  ;;  %v11623_v12 = vpack.c.bf16 %v3807_v4, %v3799_v3 }
0x16b5   :  { %v3645_v15 = vmax.f32 %v3641_v11, 0.0  ;;  %v4523_v3 = vld [vmem:[#allocation3 + $0x118] sm:$0xff] }
0x16b6   :  { %v3644_v14 = vmax.f32 %v3636_v13, 0.0  ;;  %v4531_v4 = vld [vmem:[#allocation3 + $0x158] sm:$0xff] }
0x16b8   :  { %11452 = vmatprep.mubr.f32.mxu0 %v3644_v14 }
0x16b9   :  { %11453 = vmatmul.mubr.f32.vlgmr.msra.gmra.mrb[32].mxu0 %v3645_v15  ;;  %v11625_v15 = vpack.c.bf16 %v3824_v7, %v3816_v6  ;;  %v4522_v6 = vld [vmem:[#allocation3 + $0x110] sm:$0xff]  ;;  %v13391_v7 = vpack.c.bf16 %v4531_v4, %v4523_v3  ;;  %v5264_v3 = vld [vmem:[#allocation3 + $0x298] sm:$0xff] }
0x16ba   :  { %4240 = vmatprep.mubr.f32.mxu0 %v14759_v21  ;;  %11640 = vmatpush1.bf16.msra.mxu0 %v11607_v42  ;;  %v11685_v42 = vpack.c.bf16 %v4533_v36, %v4525_v35  ;;  %v5266_v35 = vld [vmem:[#allocation3 + $0x2a8] sm:$0xff]  ;;  %v5272_v4 = vld [vmem:[#allocation3 + $0x2d8] sm:$0xff] }
0x16bb   :  { %11642 = vmatprep.subr.bf16.mxu0 %v11609_v47  ;;  %v3801_v47 = vld [vmem:[#allocation3 + $0x30] sm:$0xff]  ;;  %v5274_v36 = vld [vmem:[#allocation3 + $0x2e8] sm:$0xff] }
0x16bc   :  { %v11753_v46 = vpack.c.bf16 %v5274_v36, %v5266_v35  ;;  %v5267_v35 = vld [vmem:[#allocation3 + $0x2b0] sm:$0xff] }
0x16bd   :  { %v5275_v36 = vld [vmem:[#allocation3 + $0x2f0] sm:$0xff] }
0x16be   :  { %11644 = vmatpush1.bf16.msra.mxu0 %v11611_v50  ;;  %v4541_v50 = vld [vmem:[#allocation3 + $0x1a8] sm:$0xff] }
0x16bf   :  { %11654 = vmatprep.subr.bf16.mxu0 %v13320_v53 }
0x178c   :  { %v11454_v18 = vpop.f32.mrb[32].mxu0 }
0x178d   :  { %v3743_v45 = vadd.f32 %v11454_v18, %v10654_v16  ;;  %v3737_v19 = vpop.f32.mrb[33].mxu0  ;;  %v3823_v18 = vld [vmem:[#allocation3 + $0xe0] sm:$0xff] }
0x178e   :  { %v3738_v22 = vadd.f32 %v10654_v16, %v3737_v19  ;;  %v3815_v16 = vld [vmem:[#allocation3 + $0xa0] sm:$0xff] }
0x178f   :  { %v3747_v23 = vadd.f32 %v3743_v45, %v3549_v17  ;;  %v3805_v17 = vld [vmem:[#allocation3 + $0x50] sm:$0xff] }
0x1790   :  { %v3746_v24 = vadd.f32 %v3738_v22, %v3548_v5  ;;  %v3797_v5 = vld [vmem:[#allocation3 + $0x10] sm:$0xff]  ;;  %v13338_v22 = vpack.c.bf16 %v3822_v10, %v3814_v9  ;;  %v5262_v9 = vld [vmem:[#allocation3 + $0x288] sm:$0xff] }
0x1791   :  { %v3755_v27 = vsel %vm131_vm0, %v3747_v23, 0.0  ;;  %v13334_v14 = vpack.c.bf16 %v3805_v17, %v3797_v5  ;;  %v3813_v45 = vld [vmem:[#allocation3 + $0x90] sm:$0xff]  ;;  %v5253_v17 = vld [vmem:[#allocation3 + $0x240] sm:$0xff]  ;;  %v5270_v10 = vld [vmem:[#allocation3 + $0x2c8] sm:$0xff] }
0x1792   :  { %3756 = vadd.xlane.f32.xlu0 %v3755_v27  ;;  %v3752_v40 = vsel %vm131_vm0, %v3746_v24, 0.0  ;;  %v4529_v27 = vld [vmem:[#allocation3 + $0x148] sm:$0xff] }
0x1793   :  { %3753 = vadd.xlane.f32.xlu1 %v3752_v40  ;;  %v11627_v40 = vpack.c.bf16 %v3823_v18, %v3815_v16  ;;  %v11737_v16 = vpack.c.bf16 %v5270_v10, %v5262_v9  ;;  %v5261_v18 = vld [vmem:[#allocation3 + $0x280] sm:$0xff]  ;;  %v11745_v9 = vpack.c.bf16 %v5272_v4, %v5264_v3  ;;  %v5271_v10 = vld [vmem:[#allocation3 + $0x2d0] sm:$0xff]  ;;  %v6700_v3 = vld [vmem:[#allocation3 + $0x428] sm:$0xff] }
0x1794   :  { %v6708_v4 = vld [vmem:[#allocation3 + $0x468] sm:$0xff] }
0x181f   :  { %v3757_v39 = vpop.xlane.xlu0 %3756 }
0x1820   :  { %v3759_v28 = vmul.f32 0.03125, %v3757_v39  ;;  %v3754_v25 = vpop.xlane.xlu1 %3753 }
0x1821   :  { %v3758_v29 = vmul.f32 0.03125, %v3754_v25  ;;  %v4520_v25 = vld [vmem:[#allocation3 + $0x100] sm:$0xff] }
0x1822   :  { %v3761_v30 = vsub.f32 %v3747_v23, %v3759_v28  ;;  %v3821_v23 = vld [vmem:[#allocation3 + $0xd0] sm:$0xff] }
0x1823   :  { %v3760_v31 = vsub.f32 %v3746_v24, %v3758_v29  ;;  %v4521_v24 = vld [vmem:[#allocation3 + $0x108] sm:$0xff]  ;;  %v13345_v39 = vpack.c.bf16 %v3821_v23, %v3813_v45  ;;  %v4528_v29 = vld [vmem:[#allocation3 + $0x140] sm:$0xff] }
0x1824   :  { %v3763_v43 = vmul.f32 %v3761_v30, %v3761_v30  ;;  %v13347_v28 = vpack.c.bf16 %v4529_v27, %v4521_v24  ;;  %v5269_v45 = vld [vmem:[#allocation3 + $0x2c0] sm:$0xff]  ;;  %v4546_v24 = vld [vmem:[#allocation3 + $0x1d0] sm:$0xff]  ;;  %v5250_v27 = vld [vmem:[#allocation3 + $0x228] sm:$0xff] }
0x1825   :  { %v3762_v32 = vmul.f32 %v3760_v31, %v3760_v31 }
0x1826   :  { %v3767_v33 = vsel %vm131_vm0, %v3763_v43, 0.0  ;;  %v11671_v43 = vpack.c.bf16 %v4528_v29, %v4520_v25  ;;  %v11739_v25 = vpack.c.bf16 %v5269_v45, %v5261_v18 }
0x1827   :  { %3768 = vadd.xlane.f32.xlu0 %v3767_v33  ;;  %v3764_v34 = vsel %vm131_vm0, %v3762_v32, 0.0  ;;  %v4536_v33 = vld [vmem:[#allocation3 + $0x180] sm:$0xff] }
0x1828   :  { %3765 = vadd.xlane.f32.xlu1 %v3764_v34  ;;  %v4544_v34 = vld [vmem:[#allocation3 + $0x1c0] sm:$0xff] }
0x1829   :  { %v11675_v41 = vpack.c.bf16 %v4544_v34, %v4536_v33  ;;  %v4534_v34 = vld [vmem:[#allocation3 + $0x170] sm:$0xff] }
0x18b4   :  { %v3769_v57 = vpop.xlane.xlu0 %3768 }
0x18b5   :  { %v3771_v58 = vmul.f32 0.03125, %v3769_v57  ;;  %v3766_v59 = vpop.xlane.xlu1 %3765  ;;  %v11631_v57 = vpack.c.bf16 %v3809_v49, %v3801_v47  ;;  %v5265_v47 = vld [vmem:[#allocation3 + $0x2a0] sm:$0xff]  ;;  %v11697_v49 = vpack.c.bf16 %v4551_v38, %v4543_v37  ;;  %v11763_v38 = vpack.c.bf16 %v5275_v36, %v5267_v35  ;;  %v6697_v36 = vld [vmem:[#allocation3 + $0x410] sm:$0xff] }
0x18b6   :  { %v3770_v60 = vmul.f32 0.03125, %v3766_v59  ;;  %v4540_v59 = vld [vmem:[#allocation3 + $0x1a0] sm:$0xff] }
0x18b7   :  { %v3773_v61 = vadd.f32 1e-05, %v3771_v58  ;;  %v11689_v58 = vpack.c.bf16 %v4549_v51, %v4541_v50  ;;  %v4542_v50 = vld [vmem:[#allocation3 + $0x1b0] sm:$0xff]  ;;  %v7428_v35 = vld [vmem:[#allocation3 + $0x540] sm:$0xff] }
0x18b8   :  { %v3772_v62 = vadd.f32 1e-05, %v3770_v60  ;;  %v4548_v60 = vld [vmem:[#allocation3 + $0x1e0] sm:$0xff]  ;;  %v4550_v51 = vld [vmem:[#allocation3 + $0x1f0] sm:$0xff] }
0x18b9   :  { %12496 = vrsqrt.f32 %v3773_v61 }
0x18ba   :  { %12498 = vrsqrt.f32 %v3772_v62  ;;  %v3817_v62 = vld [vmem:[#allocation3 + $0xb0] sm:$0xff] }
0x18c3   :  { %v12497_v63 = vpop.eup %12496 }
0x18c4   :  { %v12499_v1 = vpop.eup %12498  ;;  %v3777_v2 = vmul.f32 %v12497_v63, %v3761_v30  ;;  %v4537_v30 = vld [vmem:[#allocation3 + $0x188] sm:$0xff]  ;;  %v3825_v63 = vld [vmem:[#allocation3 + $0xf0] sm:$0xff] }
0x18c5   :  { %v3776_v20 = vmul.f32 %v12499_v1, %v3760_v31  ;;  %v4545_v31 = vld [vmem:[#allocation3 + $0x1c8] sm:$0xff] }
0x18c6   :  { %v3785_v8 = vmul.f32 %v10657_v26, %v3777_v2  ;;  %v11673_v32 = vpack.c.bf16 %v4545_v31, %v4537_v30  ;;  %v5246_v1 = vld [vmem:[#allocation3 + $0x208] sm:$0xff]  ;;  %v5249_v31 = vld [vmem:[#allocation3 + $0x220] sm:$0xff] }
0x18c7   :  { %v3784_v11 = vmul.f32 %v10657_v26, %v3776_v20  ;;  %v11691_v26 = vpack.c.bf16 %v4548_v60, %v4540_v59  ;;  %v5254_v2 = vld [vmem:[#allocation3 + $0x248] sm:$0xff]  ;;  %v5245_v20 = vld [vmem:[#allocation3 + $0x200] sm:$0xff]  ;;  %v5256_v59 = vld [vmem:[#allocation3 + $0x258] sm:$0xff] }
0x18c8   :  { %v13332_v13 = vadd.f32 %v10658_v0, %v3785_v8  ;;  %v13388_v5 = vpack.c.bf16 %v5254_v2, %v5246_v1  ;;  %v4530_v8 = vld [vmem:[#allocation3 + $0x150] sm:$0xff]  ;;  %v5987_v1 = vld [vmem:[#allocation3 + $0x388] sm:$0xff] }
0x18c9   :  { %v13336_v19 = vadd.f32 %v10658_v0, %v3784_v11  ;;  %v11635_v0 = vpack.c.bf16 %v3825_v63, %v3817_v62  ;;  %v4539_v11 = vld [vmem:[#allocation3 + $0x198] sm:$0xff]  ;;  %v5978_v62 = vld [vmem:[#allocation3 + $0x340] sm:$0xff]  ;;  %v5247_v63 = vld [vmem:[#allocation3 + $0x210] sm:$0xff] }
0x18ca   :  { %10663 = vmatmul.mubr.msk.f32.vlgmr.msra.gmra.mrb[34].mxu0 %vm131_vm0, %v13332_v13  ;;  %v5995_v2 = vld [vmem:[#allocation3 + $0x3c8] sm:$0xff] }
0x18cb   :  { %11656 = vmatpush1.bf16.msra.mxu0 %v11623_v12  ;;  %10659 = vmatmul.mubr.msk.f32.vlgmr.msra.gmra.mrb[46].mxu1 %vm131_vm0, %v13336_v19  ;;  %v13362_v55 = vrot.slane %v13336_v19, 1 }
0x18cc   :  { %11616 = vmatpush1.bf16.msra.mxu1 %v13334_v14  ;;  %11658 = vmatprep.subr.bf16.mxu0 %v11625_v15 }
0x18cd   :  { %11618 = vmatprep.subr.bf16.mxu1 %v13338_v22  ;;  %4382 = vmatprep.mubr.f32.mxu0 %v14759_v21 }
0x18ce   :  { %3965 = vmatprep.mubr.f32.mxu1 %v14759_v21 }
0x18cf   :  { %11660 = vmatpush1.bf16.msra.mxu0 %v11627_v40 }
0x18d0   :  { %11620 = vmatpush1.bf16.msra.mxu1 %v13345_v39  ;;  %11670 = vmatprep.subr.bf16.mxu0 %v13347_v28 }
0x18d1   :  { %11622 = vmatprep.subr.bf16.mxu1 %v13320_v53  ;;  %v3826_v53 = vld [vmem:[#allocation3 + $0xf8] sm:$0xff] }
0x18d2   :  { %10665 = vmatmul.mubr.msk.f32.vlgmr.msra.gmra.mrb[36].mxu0 %vm131_vm0, %v13332_v13  ;;  %v11633_v61 = vpack.c.bf16 %v3826_v53, %v3818_v52  ;;  %v11699_v53 = vpack.c.bf16 %v4550_v51, %v4542_v50  ;;  %v6703_v50 = vld [vmem:[#allocation3 + $0x440] sm:$0xff]  ;;  %v5972_v51 = vld [vmem:[#allocation3 + $0x310] sm:$0xff] }
0x18d3   :  { %10660 = vmatmul.mubr.msk.f32.vlgmr.msra.gmra.mrb[48].mxu1 %vm131_vm0, %v13336_v19  ;;  %11672 = vmatpush1.bf16.msra.mxu0 %v11671_v43 }
0x18d4   :  { %11624 = vmatpush1.bf16.msra.mxu1 %v11623_v12  ;;  %11674 = vmatprep.subr.bf16.mxu0 %v11673_v32  ;;  %v4547_v12 = vld [vmem:[#allocation3 + $0x1d8] sm:$0xff] }
0x18d5   :  { %11626 = vmatprep.subr.bf16.mxu1 %v11625_v15  ;;  %4619 = vmatprep.mubr.f32.mxu0 %v14759_v21  ;;  %v11679_v15 = vpack.c.bf16 %v4530_v8, %v4522_v6  ;;  %v11681_v23 = vpack.c.bf16 %v4547_v12, %v4539_v11  ;;  %v5986_v6 = vld [vmem:[#allocation3 + $0x380] sm:$0xff]  ;;  %v5263_v8 = vld [vmem:[#allocation3 + $0x290] sm:$0xff]  ;;  %v5975_v11 = vld [vmem:[#allocation3 + $0x328] sm:$0xff] }
0x18d6   :  { %4036 = vmatprep.mubr.f32.mxu1 %v14759_v21  ;;  %v5983_v12 = vld [vmem:[#allocation3 + $0x368] sm:$0xff]  ;;  %v11747_v18 = vpack.c.bf16 %v5271_v10, %v5263_v8  ;;  %v6699_v8 = vld [vmem:[#allocation3 + $0x420] sm:$0xff]  ;;  %v5976_v10 = vld [vmem:[#allocation3 + $0x330] sm:$0xff] }
0x18d7   :  { %11676 = vmatpush1.bf16.msra.mxu0 %v11675_v41  ;;  %v11813_v45 = vpack.c.bf16 %v5983_v12, %v5975_v11  ;;  %v5984_v12 = vld [vmem:[#allocation3 + $0x370] sm:$0xff] }
0x18d8   :  { %11628 = vmatpush1.bf16.msra.mxu1 %v11627_v40  ;;  %11686 = vmatprep.subr.bf16.mxu0 %v11685_v42  ;;  %v5258_v40 = vld [vmem:[#allocation3 + $0x268] sm:$0xff] }
0x18d9   :  { %11630 = vmatprep.subr.bf16.mxu1 %v11629_v48  ;;  %v11749_v30 = vpack.c.bf16 %v5258_v40, %v5250_v27  ;;  %v5259_v40 = vld [vmem:[#allocation3 + $0x270] sm:$0xff] }
0x18da   :  { %10667 = vmatmul.mubr.msk.f32.vlgmr.msra.gmra.mrb[38].mxu0 %vm131_vm0, %v13362_v55 }
0x18db   :  { %10661 = vmatmul.mubr.msk.f32.vlgmr.msra.gmra.mrb[50].mxu1 %vm131_vm0, %v13336_v19  ;;  %11688 = vmatpush1.bf16.msra.mxu0 %v11687_v54 }
0x18dc   :  { %11632 = vmatpush1.bf16.msra.mxu1 %v11631_v57  ;;  %11690 = vmatprep.subr.bf16.mxu0 %v11689_v58 }
0x18dd   :  { %11634 = vmatprep.subr.bf16.mxu1 %v11633_v61  ;;  %4761 = vmatprep.mubr.f32.mxu0 %v14759_v21 }
0x18de   :  { %4107 = vmatprep.mubr.f32.mxu1 %v14759_v21 }
0x18df   :  { %11692 = vmatpush1.bf16.msra.mxu0 %v11691_v26 }
0x18e0   :  { %11636 = vmatpush1.bf16.msra.mxu1 %v11635_v0  ;;  %11702 = vmatprep.subr.bf16.mxu0 %v13347_v28  ;;  %v4535_v28 = vld [vmem:[#allocation3 + $0x178] sm:$0xff] }
0x18e1   :  { %11646 = vmatprep.subr.bf16.mxu1 %v13322_v56  ;;  %v13382_v56 = vrot.slane %v13332_v13, 1 }
0x18e2   :  { %10669 = vmatmul.mubr.msk.f32.vlgmr.msra.gmra.mrb[40].mxu0 %vm131_vm0, %v13362_v55 }
0x18e3   :  { %10662 = vmatmul.mubr.msk.f32.vlgmr.msra.gmra.mrb[52].mxu1 %vm131_vm0, %v13336_v19  ;;  %11704 = vmatpush1.bf16.msra.mxu0 %v11671_v43  ;;  %v5257_v43 = vld [vmem:[#allocation3 + $0x260] sm:$0xff] }
0x18e4   :  { %11648 = vmatpush1.bf16.msra.mxu1 %v13334_v14  ;;  %11706 = vmatprep.subr.bf16.mxu0 %v11673_v32  ;;  %v13394_v14 = vpack.c.bf16 %v5253_v17, %v5245_v20  ;;  %v4526_v32 = vld [vmem:[#allocation3 + $0x130] sm:$0xff]  ;;  %v11801_v17 = vpack.c.bf16 %v5995_v2, %v5987_v1 }
0x18e5   :  { %11650 = vmatprep.subr.bf16.mxu1 %v13338_v22  ;;  %4965 = vmatprep.mubr.f32.mxu0 %v14759_v21  ;;  %v4538_v22 = vld [vmem:[#allocation3 + $0x190] sm:$0xff]  ;;  %v11695_v44 = vpack.c.bf16 %v4534_v34, %v4526_v32  ;;  %v5990_v32 = vld [vmem:[#allocation3 + $0x3a0] sm:$0xff] }
0x18e6   :  { %4311 = vmatprep.mubr.f32.mxu1 %v14759_v21  ;;  %v11683_v29 = vpack.c.bf16 %v4546_v24, %v4538_v22  ;;  %v5974_v22 = vld [vmem:[#allocation3 + $0x320] sm:$0xff]  ;;  %v5251_v24 = vld [vmem:[#allocation3 + $0x230] sm:$0xff] }
0x18e7   :  { %11708 = vmatpush1.bf16.msra.mxu0 %v11675_v41  ;;  %v11751_v41 = vpack.c.bf16 %v5257_v43, %v5249_v31  ;;  %v11759_v31 = vpack.c.bf16 %v5259_v40, %v5251_v24  ;;  %v5996_v2 = vld [vmem:[#allocation3 + $0x3d0] sm:$0xff]  ;;  %v6715_v24 = vld [vmem:[#allocation3 + $0x4a0] sm:$0xff] }
0x18e8   :  { %11652 = vmatpush1.bf16.msra.mxu1 %v13345_v39  ;;  %11718 = vmatprep.subr.bf16.mxu0 %v11685_v42  ;;  %v4527_v39 = vld [vmem:[#allocation3 + $0x138] sm:$0xff]  ;;  %v13406_v42 = vrot.slane %v13336_v19, 2 }
0x18e9   :  { %11662 = vmatprep.subr.bf16.mxu1 %v11629_v48  ;;  %v11693_v33 = vpack.c.bf16 %v4535_v28, %v4527_v39  ;;  %v5273_v48 = vld [vmem:[#allocation3 + $0x2e0] sm:$0xff]  ;;  %v5991_v39 = vld [vmem:[#allocation3 + $0x3a8] sm:$0xff] }
0x18ea   :  { %10671 = vmatmul.mubr.msk.f32.vlgmr.msra.gmra.mrb[42].mxu0 %vm131_vm0, %v13382_v56  ;;  %v11755_v52 = vpack.c.bf16 %v5273_v48, %v5265_v47  ;;  %v5999_v28 = vld [vmem:[#allocation3 + $0x3e8] sm:$0xff]  ;;  %v5981_v47 = vld [vmem:[#allocation3 + $0x358] sm:$0xff] }
0x18eb   :  { %10664 = vmatmul.mubr.msk.f32.vlgmr.msra.gmra.mrb[54].mxu1 %vm131_vm0, %v13332_v13  ;;  %11720 = vmatpush1.bf16.msra.mxu0 %v11687_v54  ;;  %v13424_v54 = vrot.slane %v13332_v13, 2  ;;  %v11817_v43 = vpack.c.bf16 %v5999_v28, %v5991_v39  ;;  %v5992_v39 = vld [vmem:[#allocation3 + $0x3b0] sm:$0xff] }
0x18ec   :  { %11664 = vmatpush1.bf16.msra.mxu1 %v11631_v57  ;;  %11722 = vmatprep.subr.bf16.mxu0 %v11689_v58  ;;  %v5971_v57 = vld [vmem:[#allocation3 + $0x308] sm:$0xff]  ;;  %v6000_v28 = vld [vmem:[#allocation3 + $0x3f0] sm:$0xff] }
0x18ed   :  { %11666 = vmatprep.subr.bf16.mxu1 %v11633_v61  ;;  %5107 = vmatprep.mubr.f32.mxu0 %v14759_v21  ;;  %v5979_v58 = vld [vmem:[#allocation3 + $0x348] sm:$0xff]  ;;  %v5970_v61 = vld [vmem:[#allocation3 + $0x300] sm:$0xff] }
0x18ee   :  { %4453 = vmatprep.mubr.f32.mxu1 %v14759_v21  ;;  %v13430_v60 = vpack.c.bf16 %v5979_v58, %v5971_v57  ;;  %v6712_v57 = vld [vmem:[#allocation3 + $0x488] sm:$0xff] }
0x18ef   :  { %11724 = vmatpush1.bf16.msra.mxu0 %v11691_v26  ;;  %v6720_v58 = vld [vmem:[#allocation3 + $0x4c8] sm:$0xff] }
0x18f0   :  { %11668 = vmatpush1.bf16.msra.mxu1 %v11635_v0  ;;  %11734 = vmatprep.subr.bf16.mxu0 %v13388_v5  ;;  %v5255_v0 = vld [vmem:[#allocation3 + $0x250] sm:$0xff] }
0x18f1   :  { %11678 = vmatprep.subr.bf16.mxu1 %v13391_v7  ;;  %v11743_v20 = vpack.c.bf16 %v5255_v0, %v5247_v63  ;;  %v6711_v63 = vld [vmem:[#allocation3 + $0x480] sm:$0xff]  ;;  %v5988_v0 = vld [vmem:[#allocation3 + $0x390] sm:$0xff] }
0x18f2   :  { %10673 = vmatmul.mubr.msk.f32.vlgmr.msra.gmra.mrb[44].mxu0 %vm131_vm0, %v13382_v56 }
0x18f3   :  { %10666 = vmatmul.mubr.msk.f32.vlgmr.msra.gmra.mrb[56].mxu1 %vm131_vm0, %v13332_v13  ;;  %11736 = vmatpush1.bf16.msra.mxu0 %v13394_v14 }
0x18f4   :  { %11680 = vmatpush1.bf16.msra.mxu1 %v11679_v15  ;;  %11738 = vmatprep.subr.bf16.mxu0 %v11737_v16 }
0x18f5   :  { %11682 = vmatprep.subr.bf16.mxu1 %v11681_v23  ;;  %5344 = vmatprep.mubr.f32.mxu0 %v14759_v21 }
0x18f6   :  { %4690 = vmatprep.mubr.f32.mxu1 %v14759_v21 }
0x18f7   :  { %11740 = vmatpush1.bf16.msra.mxu0 %v11739_v25 }
0x18f8   :  { %11684 = vmatpush1.bf16.msra.mxu1 %v11683_v29  ;;  %11750 = vmatprep.subr.bf16.mxu0 %v11749_v30 }
0x18f9   :  { %11694 = vmatprep.subr.bf16.mxu1 %v11693_v33 }
0x18fa   :  { %10675 = vmatmul.mubr.msk.f32.vlgmr.msra.gmra.mrb[46].mxu0 %vm131_vm0, %v13406_v42 }
0x18fb   :  { %10668 = vmatmul.mubr.msk.f32.vlgmr.msra.gmra.mrb[58].mxu1 %vm131_vm0, %v13362_v55  ;;  %11752 = vmatpush1.bf16.msra.mxu0 %v11751_v41 }
0x18fc   :  { %11696 = vmatpush1.bf16.msra.mxu1 %v11695_v44  ;;  %11754 = vmatprep.subr.bf16.mxu0 %v11753_v46 }
0x18fd   :  { %11698 = vmatprep.subr.bf16.mxu1 %v11697_v49  ;;  %5486 = vmatprep.mubr.f32.mxu0 %v14759_v21 }
0x18fe   :  { %4832 = vmatprep.mubr.f32.mxu1 %v14759_v21 }
0x18ff   :  { %11756 = vmatpush1.bf16.msra.mxu0 %v11755_v52 }
0x1900   :  { %11700 = vmatpush1.bf16.msra.mxu1 %v11699_v53  ;;  %11766 = vmatprep.subr.bf16.mxu0 %v13388_v5  ;;  %v13436_v5 = vpack.c.bf16 %v5978_v62, %v5970_v61  ;;  %v11865_v62 = vpack.c.bf16 %v6720_v58, %v6712_v57  ;;  %v6721_v58 = vld [vmem:[#allocation3 + $0x4d0] sm:$0xff] }
0x1901   :  { %11710 = vmatprep.subr.bf16.mxu1 %v13391_v7  ;;  %v5994_v7 = vld [vmem:[#allocation3 + $0x3c0] sm:$0xff] }
0x1902   :  { %10677 = vmatmul.mubr.msk.f32.vlgmr.msra.gmra.mrb[48].mxu0 %vm131_vm0, %v13406_v42 }
0x1903   :  { %10670 = vmatmul.mubr.msk.f32.vlgmr.msra.gmra.mrb[60].mxu1 %vm131_vm0, %v13362_v55  ;;  %11768 = vmatpush1.bf16.msra.mxu0 %v13394_v14  ;;  %v5248_v55 = vld [vmem:[#allocation3 + $0x218] sm:$0xff] }
0x1904   :  { %11712 = vmatpush1.bf16.msra.mxu1 %v11679_v15  ;;  %11770 = vmatprep.subr.bf16.mxu0 %v11737_v16  ;;  %v13433_v26 = vpack.c.bf16 %v5256_v59, %v5248_v55  ;;  %v5252_v14 = vld [vmem:[#allocation3 + $0x238] sm:$0xff]  ;;  %v11803_v16 = vpack.c.bf16 %v5994_v7, %v5986_v6  ;;  %v11811_v6 = vpack.c.bf16 %v5996_v2, %v5988_v0  ;;  %v7424_v0 = vld [vmem:[#allocation3 + $0x520] sm:$0xff]  ;;  %v6701_v2 = vld [vmem:[#allocation3 + $0x430] sm:$0xff] }
0x1905   :  { %11714 = vmatprep.subr.bf16.mxu1 %v11681_v23  ;;  %5690 = vmatprep.mubr.f32.mxu0 %v14759_v21  ;;  %v5260_v15 = vld [vmem:[#allocation3 + $0x278] sm:$0xff]  ;;  %v5982_v23 = vld [vmem:[#allocation3 + $0x360] sm:$0xff]  ;;  %v11877_v7 = vpack.c.bf16 %v6708_v4, %v6700_v3  ;;  %v6709_v4 = vld [vmem:[#allocation3 + $0x470] sm:$0xff] }
0x1906   :  { %5036 = vmatprep.mubr.f32.mxu1 %v14759_v21  ;;  %v11757_v27 = vpack.c.bf16 %v5260_v15, %v5252_v14  ;;  %v5989_v55 = vld [vmem:[#allocation3 + $0x398] sm:$0xff]  ;;  %v6716_v14 = vld [vmem:[#allocation3 + $0x4a8] sm:$0xff] }
0x1907   :  { %11772 = vmatpush1.bf16.msra.mxu0 %v11739_v25  ;;  %v5276_v25 = vld [vmem:[#allocation3 + $0x2f8] sm:$0xff]  ;;  %v6724_v15 = vld [vmem:[#allocation3 + $0x4e8] sm:$0xff] }
0x1908   :  { %11716 = vmatpush1.bf16.msra.mxu1 %v11683_v29  ;;  %11782 = vmatprep.subr.bf16.mxu0 %v11749_v30  ;;  %v11815_v29 = vpack.c.bf16 %v5982_v23, %v5974_v22  ;;  %v13448_v30 = vrot.slane %v13336_v19, 3  ;;  %v5997_v59 = vld [vmem:[#allocation3 + $0x3d8] sm:$0xff]  ;;  %v11823_v22 = vpack.c.bf16 %v5984_v12, %v5976_v10  ;;  %v11881_v23 = vpack.c.bf16 %v6724_v15, %v6716_v14  ;;  %v7440_v10 = vld [vmem:[#allocation3 + $0x5a0] sm:$0xff]  ;;  %v6717_v14 = vld [vmem:[#allocation3 + $0x4b0] sm:$0xff] }
0x1909   :  { %11726 = vmatprep.subr.bf16.mxu1 %v11693_v33  ;;  %v5998_v33 = vld [vmem:[#allocation3 + $0x3e0] sm:$0xff]  ;;  %v11809_v1 = vpack.c.bf16 %v5997_v59, %v5989_v55  ;;  %v7425_v55 = vld [vmem:[#allocation3 + $0x528] sm:$0xff]  ;;  %v6725_v15 = vld [vmem:[#allocation3 + $0x4f0] sm:$0xff] }
0x190a   :  { %10679 = vmatmul.mubr.msk.f32.vlgmr.msra.gmra.mrb[50].mxu0 %vm131_vm0, %v13424_v54  ;;  %v11819_v37 = vpack.c.bf16 %v5998_v33, %v5990_v32  ;;  %v6706_v32 = vld [vmem:[#allocation3 + $0x458] sm:$0xff]  ;;  %v7433_v59 = vld [vmem:[#allocation3 + $0x568] sm:$0xff] }
0x190b   :  { %10672 = vmatmul.mubr.msk.f32.vlgmr.msra.gmra.mrb[62].mxu1 %vm131_vm0, %v13382_v56  ;;  %11784 = vmatpush1.bf16.msra.mxu0 %v11751_v41  ;;  %v13466_v41 = vrot.slane %v13332_v13, 3 }
0x190c   :  { %11728 = vmatpush1.bf16.msra.mxu1 %v11695_v44  ;;  %11786 = vmatprep.subr.bf16.mxu0 %v11753_v46  ;;  %v6696_v44 = vld [vmem:[#allocation3 + $0x408] sm:$0xff] }
0x190d   :  { %11730 = vmatprep.subr.bf16.mxu1 %v11697_v49  ;;  %5832 = vmatprep.mubr.f32.mxu0 %v14759_v21  ;;  %v6704_v46 = vld [vmem:[#allocation3 + $0x448] sm:$0xff]  ;;  %v6695_v49 = vld [vmem:[#allocation3 + $0x400] sm:$0xff] }
0x190e   :  { %5178 = vmatprep.mubr.f32.mxu1 %v14759_v21  ;;  %v13472_v48 = vpack.c.bf16 %v6704_v46, %v6696_v44  ;;  %v7437_v44 = vld [vmem:[#allocation3 + $0x588] sm:$0xff] }
0x190f   :  { %11788 = vmatpush1.bf16.msra.mxu0 %v11755_v52  ;;  %v7445_v46 = vld [vmem:[#allocation3 + $0x5c8] sm:$0xff] }
0x1910   :  { %11732 = vmatpush1.bf16.msra.mxu1 %v11699_v53  ;;  %11798 = vmatprep.subr.bf16.mxu0 %v13430_v60  ;;  %v5980_v53 = vld [vmem:[#allocation3 + $0x350] sm:$0xff] }
0x1911   :  { %11742 = vmatprep.subr.bf16.mxu1 %v13433_v26  ;;  %v11807_v61 = vpack.c.bf16 %v5980_v53, %v5972_v51  ;;  %v7436_v51 = vld [vmem:[#allocation3 + $0x580] sm:$0xff]  ;;  %v6713_v53 = vld [vmem:[#allocation3 + $0x490] sm:$0xff] }
0x1912   :  { %10681 = vmatmul.mubr.msk.f32.vlgmr.msra.gmra.mrb[52].mxu0 %vm131_vm0, %v13424_v54 }
0x1913   :  { %10674 = vmatmul.mubr.msk.f32.vlgmr.msra.gmra.mrb[64].mxu1 %vm131_vm0, %v13382_v56  ;;  %11800 = vmatpush1.bf16.msra.mxu0 %v13436_v5  ;;  %v5268_v56 = vld [vmem:[#allocation3 + $0x2b8] sm:$0xff] }
0x1914   :  { %11744 = vmatpush1.bf16.msra.mxu1 %v11743_v20  ;;  %11802 = vmatprep.subr.bf16.mxu0 %v11801_v17  ;;  %v11761_v34 = vpack.c.bf16 %v5276_v25, %v5268_v56  ;;  %v11827_v25 = vpack.c.bf16 %v6000_v28, %v5992_v39  ;;  %v8153_v39 = vld [vmem:[#allocation3 + $0x640] sm:$0xff]  ;;  %v7422_v28 = vld [vmem:[#allocation3 + $0x510] sm:$0xff] }
0x1915   :  { %11746 = vmatprep.subr.bf16.mxu1 %v11745_v9  ;;  %6069 = vmatprep.mubr.f32.mxu0 %v14759_v21 }
0x1916   :  { %5415 = vmatprep.mubr.f32.mxu1 %v14759_v21 }
0x1917   :  { %11804 = vmatpush1.bf16.msra.mxu0 %v11803_v16 }
0x1918   :  { %11748 = vmatpush1.bf16.msra.mxu1 %v11747_v18  ;;  %11814 = vmatprep.subr.bf16.mxu0 %v11813_v45 }
0x1919   :  { %11758 = vmatprep.subr.bf16.mxu1 %v11757_v27 }
0x191a   :  { %10683 = vmatmul.mubr.msk.f32.vlgmr.msra.gmra.mrb[54].mxu0 %vm131_vm0, %v13448_v30 }
0x191b   :  { %10676 = vmatmul.mubr.msk.f32.vlgmr.msra.gmra.mrb[66].mxu1 %vm131_vm0, %v13406_v42  ;;  %11816 = vmatpush1.bf16.msra.mxu0 %v11815_v29 }
0x191c   :  { %11760 = vmatpush1.bf16.msra.mxu1 %v11759_v31  ;;  %11818 = vmatprep.subr.bf16.mxu0 %v11817_v43 }
0x191d   :  { %11762 = vmatprep.subr.bf16.mxu1 %v11761_v34  ;;  %6211 = vmatprep.mubr.f32.mxu0 %v14759_v21 }
0x191e   :  { %5557 = vmatprep.mubr.f32.mxu1 %v14759_v21 }
0x191f   :  { %11820 = vmatpush1.bf16.msra.mxu0 %v11819_v37 }
0x1920   :  { %11764 = vmatpush1.bf16.msra.mxu1 %v11763_v38  ;;  %11830 = vmatprep.subr.bf16.mxu0 %v13430_v60  ;;  %v13478_v60 = vpack.c.bf16 %v6703_v50, %v6695_v49  ;;  %v11929_v50 = vpack.c.bf16 %v7445_v46, %v7437_v44  ;;  %v7446_v46 = vld [vmem:[#allocation3 + $0x5d0] sm:$0xff] }
0x1921   :  { %11774 = vmatprep.subr.bf16.mxu1 %v13433_v26  ;;  %v6719_v26 = vld [vmem:[#allocation3 + $0x4c0] sm:$0xff] }
0x1922   :  { %10685 = vmatmul.mubr.msk.f32.vlgmr.msra.gmra.mrb[56].mxu0 %vm131_vm0, %v13448_v30 }
0x1923   :  { %10678 = vmatmul.mubr.msk.f32.vlgmr.msra.gmra.mrb[68].mxu1 %vm131_vm0, %v13406_v42  ;;  %11832 = vmatpush1.bf16.msra.mxu0 %v13436_v5  ;;  %v5973_v42 = vld [vmem:[#allocation3 + $0x318] sm:$0xff] }
0x1924   :  { %11776 = vmatpush1.bf16.msra.mxu1 %v11743_v20  ;;  %11834 = vmatprep.subr.bf16.mxu0 %v11801_v17  ;;  %v13475_v52 = vpack.c.bf16 %v5981_v47, %v5973_v42  ;;  %v5977_v5 = vld [vmem:[#allocation3 + $0x338] sm:$0xff]  ;;  %v11867_v17 = vpack.c.bf16 %v6719_v26, %v6711_v63  ;;  %v11875_v63 = vpack.c.bf16 %v6721_v58, %v6713_v53  ;;  %v8149_v53 = vld [vmem:[#allocation3 + $0x620] sm:$0xff]  ;;  %v7426_v58 = vld [vmem:[#allocation3 + $0x530] sm:$0xff] }
0x1925   :  { %11778 = vmatprep.subr.bf16.mxu1 %v11745_v9  ;;  %6415 = vmatprep.mubr.f32.mxu0 %v14759_v21  ;;  %v5985_v20 = vld [vmem:[#allocation3 + $0x378] sm:$0xff]  ;;  %v6707_v9 = vld [vmem:[#allocation3 + $0x460] sm:$0xff]  ;;  %v11941_v26 = vpack.c.bf16 %v7433_v59, %v7425_v55  ;;  %v7434_v59 = vld [vmem:[#allocation3 + $0x570] sm:$0xff] }
0x1926   :  { %5761 = vmatprep.mubr.f32.mxu1 %v14759_v21  ;;  %v11821_v11 = vpack.c.bf16 %v5985_v20, %v5977_v5  ;;  %v6714_v42 = vld [vmem:[#allocation3 + $0x498] sm:$0xff]  ;;  %v7441_v5 = vld [vmem:[#allocation3 + $0x5a8] sm:$0xff] }
0x1927   :  { %11836 = vmatpush1.bf16.msra.mxu0 %v11803_v16  ;;  %v6001_v16 = vld [vmem:[#allocation3 + $0x3f8] sm:$0xff]  ;;  %v7449_v20 = vld [vmem:[#allocation3 + $0x5e8] sm:$0xff] }
0x1928   :  { %11780 = vmatpush1.bf16.msra.mxu1 %v11747_v18  ;;  %11846 = vmatprep.subr.bf16.mxu0 %v11813_v45  ;;  %v11879_v18 = vpack.c.bf16 %v6707_v9, %v6699_v8  ;;  %v13490_v45 = vrot.slane %v13336_v19, 4  ;;  %v6722_v47 = vld [vmem:[#allocation3 + $0x4d8] sm:$0xff]  ;;  %v11887_v8 = vpack.c.bf16 %v6709_v4, %v6701_v2  ;;  %v11945_v9 = vpack.c.bf16 %v7449_v20, %v7441_v5  ;;  %v8165_v2 = vld [vmem:[#allocation3 + $0x6a0] sm:$0xff]  ;;  %v7442_v5 = vld [vmem:[#allocation3 + $0x5b0] sm:$0xff] }
0x1929   :  { %11790 = vmatprep.subr.bf16.mxu1 %v11757_v27  ;;  %v6723_v27 = vld [vmem:[#allocation3 + $0x4e0] sm:$0xff]  ;;  %v11873_v57 = vpack.c.bf16 %v6722_v47, %v6714_v42  ;;  %v8150_v42 = vld [vmem:[#allocation3 + $0x628] sm:$0xff]  ;;  %v7450_v20 = vld [vmem:[#allocation3 + $0x5f0] sm:$0xff] }
0x192a   :  { %10687 = vmatmul.mubr.msk.f32.vlgmr.msra.gmra.mrb[58].mxu0 %vm131_vm0, %v13466_v41  ;;  %v11883_v56 = vpack.c.bf16 %v6723_v27, %v6715_v24  ;;  %v7431_v24 = vld [vmem:[#allocation3 + $0x558] sm:$0xff]  ;;  %v8158_v47 = vld [vmem:[#allocation3 + $0x668] sm:$0xff] }
0x192b   :  { %10680 = vmatmul.mubr.msk.f32.vlgmr.msra.gmra.mrb[70].mxu1 %vm131_vm0, %v13424_v54  ;;  %11848 = vmatpush1.bf16.msra.mxu0 %v11815_v29  ;;  %v13508_v29 = vrot.slane %v13332_v13, 4 }
0x192c   :  { %11792 = vmatpush1.bf16.msra.mxu1 %v11759_v31  ;;  %11850 = vmatprep.subr.bf16.mxu0 %v11817_v43  ;;  %v7421_v31 = vld [vmem:[#allocation3 + $0x508] sm:$0xff] }
0x192d   :  { %11794 = vmatprep.subr.bf16.mxu1 %v11761_v34  ;;  %6557 = vmatprep.mubr.f32.mxu0 %v14759_v21  ;;  %v7429_v43 = vld [vmem:[#allocation3 + $0x548] sm:$0xff]  ;;  %v7420_v34 = vld [vmem:[#allocation3 + $0x500] sm:$0xff] }
0x192e   :  { %5903 = vmatprep.mubr.f32.mxu1 %v14759_v21  ;;  %v13514_v33 = vpack.c.bf16 %v7429_v43, %v7421_v31  ;;  %v8162_v31 = vld [vmem:[#allocation3 + $0x688] sm:$0xff] }
0x192f   :  { %11852 = vmatpush1.bf16.msra.mxu0 %v11819_v37  ;;  %v8170_v43 = vld [vmem:[#allocation3 + $0x6c8] sm:$0xff] }
0x1930   :  { %11796 = vmatpush1.bf16.msra.mxu1 %v11763_v38  ;;  %11862 = vmatprep.subr.bf16.mxu0 %v13472_v48  ;;  %v6705_v38 = vld [vmem:[#allocation3 + $0x450] sm:$0xff] }
0x1931   :  { %11806 = vmatprep.subr.bf16.mxu1 %v13475_v52  ;;  %v11871_v49 = vpack.c.bf16 %v6705_v38, %v6697_v36  ;;  %v8161_v36 = vld [vmem:[#allocation3 + $0x680] sm:$0xff]  ;;  %v7438_v38 = vld [vmem:[#allocation3 + $0x590] sm:$0xff] }
0x1932   :  { %10689 = vmatmul.mubr.msk.f32.vlgmr.msra.gmra.mrb[60].mxu0 %vm131_vm0, %v13466_v41 }
0x1933   :  { %10682 = vmatmul.mubr.msk.f32.vlgmr.msra.gmra.mrb[72].mxu1 %vm131_vm0, %v13424_v54  ;;  %11864 = vmatpush1.bf16.msra.mxu0 %v13478_v60  ;;  %v5993_v54 = vld [vmem:[#allocation3 + $0x3b8] sm:$0xff] }
0x1934   :  { %11808 = vmatpush1.bf16.msra.mxu1 %v11807_v61  ;;  %11866 = vmatprep.subr.bf16.mxu0 %v11865_v62  ;;  %v11825_v40 = vpack.c.bf16 %v6001_v16, %v5993_v54  ;;  %v11891_v16 = vpack.c.bf16 %v6725_v15, %v6717_v14  ;;  %v8878_v14 = vld [vmem:[#allocation3 + $0x740] sm:$0xff]  ;;  %v8147_v15 = vld [vmem:[#allocation3 + $0x610] sm:$0xff] }
0x1935   :  { %11810 = vmatprep.subr.bf16.mxu1 %v11809_v1  ;;  %6794 = vmatprep.mubr.f32.mxu0 %v14759_v21 }
0x1936   :  { %6140 = vmatprep.mubr.f32.mxu1 %v14759_v21 }
0x1937   :  { %11868 = vmatpush1.bf16.msra.mxu0 %v11867_v17 }
0x1938   :  { %11812 = vmatpush1.bf16.msra.mxu1 %v11811_v6  ;;  %11878 = vmatprep.subr.bf16.mxu0 %v11877_v7 }
0x1939   :  { %11822 = vmatprep.subr.bf16.mxu1 %v11821_v11 }
0x193a   :  { %10691 = vmatmul.mubr.msk.f32.vlgmr.msra.gmra.mrb[62].mxu0 %vm131_vm0, %v13490_v45 }
0x193b   :  { %10684 = vmatmul.mubr.msk.f32.vlgmr.msra.gmra.mrb[74].mxu1 %vm131_vm0, %v13448_v30  ;;  %11880 = vmatpush1.bf16.msra.mxu0 %v11879_v18 }
0x193c   :  { %11824 = vmatpush1.bf16.msra.mxu1 %v11823_v22  ;;  %11882 = vmatprep.subr.bf16.mxu0 %v11881_v23 }
0x193d   :  { %11826 = vmatprep.subr.bf16.mxu1 %v11825_v40  ;;  %6936 = vmatprep.mubr.f32.mxu0 %v14759_v21 }
0x193e   :  { %6282 = vmatprep.mubr.f32.mxu1 %v14759_v21 }
0x193f   :  { %11884 = vmatpush1.bf16.msra.mxu0 %v11883_v56 }
0x1940   :  { %11828 = vmatpush1.bf16.msra.mxu1 %v11827_v25  ;;  %11894 = vmatprep.subr.bf16.mxu0 %v13472_v48  ;;  %v13520_v48 = vpack.c.bf16 %v7428_v35, %v7420_v34  ;;  %v11993_v35 = vpack.c.bf16 %v8170_v43, %v8162_v31  ;;  %v8171_v43 = vld [vmem:[#allocation3 + $0x6d0] sm:$0xff] }
0x1941   :  { %11838 = vmatprep.subr.bf16.mxu1 %v13475_v52  ;;  %v7444_v52 = vld [vmem:[#allocation3 + $0x5c0] sm:$0xff] }
0x1942   :  { %10693 = vmatmul.mubr.msk.f32.vlgmr.msra.gmra.mrb[64].mxu0 %vm131_vm0, %v13490_v45 }
0x1943   :  { %10686 = vmatmul.mubr.msk.f32.vlgmr.msra.gmra.mrb[76].mxu1 %vm131_vm0, %v13448_v30  ;;  %11896 = vmatpush1.bf16.msra.mxu0 %v13478_v60  ;;  %v6698_v30 = vld [vmem:[#allocation3 + $0x418] sm:$0xff] }
0x1944   :  { %11840 = vmatpush1.bf16.msra.mxu1 %v11807_v61  ;;  %11898 = vmatprep.subr.bf16.mxu0 %v11865_v62  ;;  %v13517_v37 = vpack.c.bf16 %v6706_v32, %v6698_v30  ;;  %v6702_v60 = vld [vmem:[#allocation3 + $0x438] sm:$0xff]  ;;  %v11931_v62 = vpack.c.bf16 %v7444_v52, %v7436_v51  ;;  %v11939_v51 = vpack.c.bf16 %v7446_v46, %v7438_v38  ;;  %v8874_v38 = vld [vmem:[#allocation3 + $0x720] sm:$0xff]  ;;  %v8151_v46 = vld [vmem:[#allocation3 + $0x630] sm:$0xff] }
0x1945   :  { %11842 = vmatprep.subr.bf16.mxu1 %v11809_v1  ;;  %7140 = vmatprep.mubr.f32.mxu0 %v14759_v21  ;;  %v6710_v61 = vld [vmem:[#allocation3 + $0x478] sm:$0xff]  ;;  %v7432_v1 = vld [vmem:[#allocation3 + $0x560] sm:$0xff]  ;;  %v12005_v52 = vpack.c.bf16 %v8158_v47, %v8150_v42  ;;  %v8159_v42 = vld [vmem:[#allocation3 + $0x670] sm:$0xff] }
0x1946   :  { %6486 = vmatprep.mubr.f32.mxu1 %v14759_v21  ;;  %v11885_v3 = vpack.c.bf16 %v6710_v61, %v6702_v60  ;;  %v7439_v30 = vld [vmem:[#allocation3 + $0x598] sm:$0xff]  ;;  %v8166_v60 = vld [vmem:[#allocation3 + $0x6a8] sm:$0xff] }
0x1947   :  { %11900 = vmatpush1.bf16.msra.mxu0 %v11867_v17  ;;  %v6726_v17 = vld [vmem:[#allocation3 + $0x4f8] sm:$0xff]  ;;  %v8174_v61 = vld [vmem:[#allocation3 + $0x6e8] sm:$0xff] }
0x1948   :  { %11844 = vmatpush1.bf16.msra.mxu1 %v11811_v6  ;;  %11910 = vmatprep.subr.bf16.mxu0 %v11877_v7  ;;  %v11943_v6 = vpack.c.bf16 %v7432_v1, %v7424_v0  ;;  %v13532_v7 = vrot.slane %v13336_v19, 5  ;;  %v7447_v32 = vld [vmem:[#allocation3 + $0x5d8] sm:$0xff]  ;;  %v11951_v0 = vpack.c.bf16 %v7434_v59, %v7426_v58  ;;  %v12009_v1 = vpack.c.bf16 %v8174_v61, %v8166_v60  ;;  %v8891_v47 = vld [vmem:[#allocation3 + $0x7a8] sm:$0xff]  ;;  %v8890_v58 = vld [vmem:[#allocation3 + $0x7a0] sm:$0xff] }
0x1949   :  { %11854 = vmatprep.subr.bf16.mxu1 %v11821_v11  ;;  %v7448_v11 = vld [vmem:[#allocation3 + $0x5e0] sm:$0xff]  ;;  %v11937_v44 = vpack.c.bf16 %v7447_v32, %v7439_v30  ;;  %v8875_v30 = vld [vmem:[#allocation3 + $0x728] sm:$0xff]  ;;  %v8167_v60 = vld [vmem:[#allocation3 + $0x6b0] sm:$0xff] }
0x194a   :  { %10695 = vmatmul.mubr.msk.f32.vlgmr.msra.gmra.mrb[66].mxu0 %vm131_vm0, %v13508_v29  ;;  %v11947_v54 = vpack.c.bf16 %v7448_v11, %v7440_v10  ;;  %v8156_v10 = vld [vmem:[#allocation3 + $0x658] sm:$0xff]  ;;  %v8883_v32 = vld [vmem:[#allocation3 + $0x768] sm:$0xff]  ;;  %v8175_v61 = vld [vmem:[#allocation3 + $0x6f0] sm:$0xff] }
0x194b   :  { %10688 = vmatmul.mubr.msk.f32.vlgmr.msra.gmra.mrb[78].mxu1 %vm131_vm0, %v13466_v41  ;;  %11912 = vmatpush1.bf16.msra.mxu0 %v11879_v18  ;;  %v13550_v18 = vrot.slane %v13332_v13, 5 }
0x194c   :  { %11856 = vmatpush1.bf16.msra.mxu1 %v11823_v22  ;;  %11914 = vmatprep.subr.bf16.mxu0 %v11881_v23  ;;  %v8146_v22 = vld [vmem:[#allocation3 + $0x608] sm:$0xff] }
0x194d   :  { %11858 = vmatprep.subr.bf16.mxu1 %v11825_v40  ;;  %7282 = vmatprep.mubr.f32.mxu0 %v14759_v21  ;;  %v8154_v23 = vld [vmem:[#allocation3 + $0x648] sm:$0xff]  ;;  %v8145_v40 = vld [vmem:[#allocation3 + $0x600] sm:$0xff] }
0x194e   :  { %6628 = vmatprep.mubr.f32.mxu1 %v14759_v21  ;;  %v13556_v27 = vpack.c.bf16 %v8154_v23, %v8146_v22  ;;  %v8887_v22 = vld [vmem:[#allocation3 + $0x788] sm:$0xff] }
0x194f   :  { %11916 = vmatpush1.bf16.msra.mxu0 %v11883_v56  ;;  %v8895_v23 = vld [vmem:[#allocation3 + $0x7c8] sm:$0xff] }
0x1950   :  { %11860 = vmatpush1.bf16.msra.mxu1 %v11827_v25  ;;  %11926 = vmatprep.subr.bf16.mxu0 %v13514_v33  ;;  %v7430_v25 = vld [vmem:[#allocation3 + $0x550] sm:$0xff] }
0x1951   :  { %11870 = vmatprep.subr.bf16.mxu1 %v13517_v37  ;;  %v11935_v34 = vpack.c.bf16 %v7430_v25, %v7422_v28  ;;  %v8886_v28 = vld [vmem:[#allocation3 + $0x780] sm:$0xff]  ;;  %v8163_v25 = vld [vmem:[#allocation3 + $0x690] sm:$0xff] }
0x1952   :  { %10697 = vmatmul.mubr.msk.f32.vlgmr.msra.gmra.mrb[68].mxu0 %vm131_vm0, %v13508_v29 }
0x1953   :  { %10690 = vmatmul.mubr.msk.f32.vlgmr.msra.gmra.mrb[80].mxu1 %vm131_vm0, %v13466_v41  ;;  %11928 = vmatpush1.bf16.msra.mxu0 %v13520_v48  ;;  %v6718_v41 = vld [vmem:[#allocation3 + $0x4b8] sm:$0xff] }
0x1954   :  { %11872 = vmatpush1.bf16.msra.mxu1 %v11871_v49  ;;  %11930 = vmatprep.subr.bf16.mxu0 %v11929_v50  ;;  %v11889_v12 = vpack.c.bf16 %v6726_v17, %v6718_v41  ;;  %v11955_v17 = vpack.c.bf16 %v7450_v20, %v7442_v5 }
0x1955   :  { %11874 = vmatprep.subr.bf16.mxu1 %v11873_v57  ;;  %7519 = vmatprep.mubr.f32.mxu0 %v14759_v21 }
0x1956   :  { %6865 = vmatprep.mubr.f32.mxu1 %v14759_v21 }
0x1957   :  { %11932 = vmatpush1.bf16.msra.mxu0 %v11931_v62 }
0x1958   :  { %11876 = vmatpush1.bf16.msra.mxu1 %v11875_v63  ;;  %11942 = vmatprep.subr.bf16.mxu0 %v11941_v26 }
0x1959   :  { %11886 = vmatprep.subr.bf16.mxu1 %v11885_v3 }
0x195a   :  { %10699 = vmatmul.mubr.msk.f32.vlgmr.msra.gmra.mrb[70].mxu0 %vm131_vm0, %v13532_v7 }
0x195b   :  { %10692 = vmatmul.mubr.msk.f32.vlgmr.msra.gmra.mrb[82].mxu1 %vm131_vm0, %v13490_v45  ;;  %11944 = vmatpush1.bf16.msra.mxu0 %v11943_v6 }
0x195c   :  { %11888 = vmatpush1.bf16.msra.mxu1 %v11887_v8  ;;  %11946 = vmatprep.subr.bf16.mxu0 %v11945_v9 }
0x195d   :  { %11890 = vmatprep.subr.bf16.mxu1 %v11889_v12  ;;  %7661 = vmatprep.mubr.f32.mxu0 %v14759_v21 }
0x195e   :  { %7007 = vmatprep.mubr.f32.mxu1 %v14759_v21 }
0x195f   :  { %11948 = vmatpush1.bf16.msra.mxu0 %v11947_v54 }
0x1960   :  { %11892 = vmatpush1.bf16.msra.mxu1 %v11891_v16  ;;  %11958 = vmatprep.subr.bf16.mxu0 %v13514_v33  ;;  %v13562_v33 = vpack.c.bf16 %v8153_v39, %v8145_v40  ;;  %v13609_v39 = vpack.c.bf16 %v8895_v23, %v8887_v22  ;;  %v8881_v22 = vld [vmem:[#allocation3 + $0x758] sm:$0xff] }
0x1961   :  { %11902 = vmatprep.subr.bf16.mxu1 %v13517_v37  ;;  %v8169_v37 = vld [vmem:[#allocation3 + $0x6c0] sm:$0xff] }
0x1962   :  { %10701 = vmatmul.mubr.msk.f32.vlgmr.msra.gmra.mrb[72].mxu0 %vm131_vm0, %v13532_v7 }
0x1963   :  { %10694 = vmatmul.mubr.msk.f32.vlgmr.msra.gmra.mrb[84].mxu1 %vm131_vm0, %v13490_v45  ;;  %11960 = vmatpush1.bf16.msra.mxu0 %v13520_v48  ;;  %v7423_v45 = vld [vmem:[#allocation3 + $0x518] sm:$0xff] }
0x1964   :  { %11904 = vmatpush1.bf16.msra.mxu1 %v11871_v49  ;;  %11962 = vmatprep.subr.bf16.mxu0 %v11929_v50  ;;  %v13559_v56 = vpack.c.bf16 %v7431_v24, %v7423_v45  ;;  %v7427_v48 = vld [vmem:[#allocation3 + $0x538] sm:$0xff]  ;;  %v11995_v50 = vpack.c.bf16 %v8169_v37, %v8161_v36  ;;  %v13623_v36 = vpack.c.bf16 %v8171_v43, %v8163_v25 }
0x1965   :  { %11906 = vmatprep.subr.bf16.mxu1 %v11873_v57  ;;  %7865 = vmatprep.mubr.f32.mxu0 %v14759_v21  ;;  %v7435_v49 = vld [vmem:[#allocation3 + $0x578] sm:$0xff]  ;;  %v8157_v57 = vld [vmem:[#allocation3 + $0x660] sm:$0xff]  ;;  %v13625_v37 = vpack.c.bf16 %v8883_v32, %v8875_v30 }
0x1966   :  { %7211 = vmatprep.mubr.f32.mxu1 %v14759_v21  ;;  %v11949_v55 = vpack.c.bf16 %v7435_v49, %v7427_v48  ;;  %v8164_v45 = vld [vmem:[#allocation3 + $0x698] sm:$0xff]  ;;  %v8899_v48 = vld [vmem:[#allocation3 + $0x7e8] sm:$0xff] }
0x1967   :  { %11964 = vmatpush1.bf16.msra.mxu0 %v11931_v62  ;;  %v7451_v62 = vld [vmem:[#allocation3 + $0x5f8] sm:$0xff] }
0x1968   :  { %11908 = vmatpush1.bf16.msra.mxu1 %v11875_v63  ;;  %11974 = vmatprep.subr.bf16.mxu0 %v11941_v26  ;;  %v12007_v63 = vpack.c.bf16 %v8157_v57, %v8149_v53  ;;  %v13574_v26 = vrot.slane %v13336_v19, 6  ;;  %v8172_v24 = vld [vmem:[#allocation3 + $0x6d8] sm:$0xff]  ;;  %v12015_v53 = vpack.c.bf16 %v8159_v42, %v8151_v46  ;;  %v12073_v57 = vpack.c.bf16 %v8899_v48, %v8891_v47  ;;  %v8876_v46 = vld [vmem:[#allocation3 + $0x730] sm:$0xff] }
0x1969   :  { %11918 = vmatprep.subr.bf16.mxu1 %v11885_v3  ;;  %v8173_v3 = vld [vmem:[#allocation3 + $0x6e0] sm:$0xff]  ;;  %v13612_v31 = vpack.c.bf16 %v8172_v24, %v8164_v45  ;;  %v8168_v49 = vld [vmem:[#allocation3 + $0x6b8] sm:$0xff]  ;;  %v8872_v24 = vld [vmem:[#allocation3 + $0x710] sm:$0xff] }
0x196a   :  { %10703 = vmatmul.mubr.msk.f32.vlgmr.msra.gmra.mrb[74].mxu0 %vm131_vm0, %v13550_v18  ;;  %v12011_v41 = vpack.c.bf16 %v8173_v3, %v8165_v2  ;;  %v4129_v2 = vlaneseq  ;;  %v8893_v48 = vld [vmem:[#allocation3 + $0x7b8] sm:$0xff] }
0x196b   :  { %10696 = vmatmul.mubr.msk.f32.vlgmr.msra.gmra.mrb[86].mxu1 %vm131_vm0, %v13508_v29  ;;  %11976 = vmatpush1.bf16.msra.mxu0 %v11943_v6  ;;  %v13592_v6 = vrot.slane %v13332_v13, 6 }
0x196c   :  { %11920 = vmatpush1.bf16.msra.mxu1 %v11887_v8  ;;  %11978 = vmatprep.subr.bf16.mxu0 %v11945_v9  ;;  %v8871_v8 = vld [vmem:[#allocation3 + $0x708] sm:$0xff] }
0x196d   :  { %11922 = vmatprep.subr.bf16.mxu1 %v11889_v12  ;;  %8007 = vmatprep.mubr.f32.mxu0 %v14759_v21  ;;  %v8879_v9 = vld [vmem:[#allocation3 + $0x748] sm:$0xff]  ;;  %v8870_v12 = vld [vmem:[#allocation3 + $0x700] sm:$0xff] }
0x196e   :  { %7353 = vmatprep.mubr.f32.mxu1 %v14759_v21  ;;  %v13598_v11 = vpack.c.bf16 %v8879_v9, %v8871_v8 }
0x196f   :  { %11980 = vmatpush1.bf16.msra.mxu0 %v11947_v54 }
0x1970   :  { %11924 = vmatpush1.bf16.msra.mxu1 %v11891_v16  ;;  %11990 = vmatprep.subr.bf16.mxu0 %v13556_v27  ;;  %v8155_v16 = vld [vmem:[#allocation3 + $0x650] sm:$0xff] }
0x1971   :  { %11934 = vmatprep.subr.bf16.mxu1 %v13559_v56  ;;  %v13607_v40 = vpack.c.bf16 %v8155_v16, %v8147_v15  ;;  %v8873_v16 = vld [vmem:[#allocation3 + $0x718] sm:$0xff] }
0x1972   :  { %10705 = vmatmul.mubr.msk.f32.vlgmr.msra.gmra.mrb[76].mxu0 %vm131_vm0, %v13550_v18  ;;  %v12061_v45 = vpack.c.bf16 %v8881_v22, %v8873_v16 }
0x1973   :  { %10698 = vmatmul.mubr.msk.f32.vlgmr.msra.gmra.mrb[88].mxu1 %vm131_vm0, %v13508_v29  ;;  %11992 = vmatpush1.bf16.msra.mxu0 %v13562_v33  ;;  %v7443_v29 = vld [vmem:[#allocation3 + $0x5b8] sm:$0xff] }
0x1974   :  { %11936 = vmatpush1.bf16.msra.mxu1 %v11935_v34  ;;  %11994 = vmatprep.subr.bf16.mxu0 %v11993_v35  ;;  %v11953_v4 = vpack.c.bf16 %v7451_v62, %v7443_v29  ;;  %v13648_v29 = vpack.c.bf16 %v8175_v61, %v8167_v60 }
0x1975   :  { %11938 = vmatprep.subr.bf16.mxu1 %v11937_v44  ;;  %8244 = vmatprep.mubr.f32.mxu0 %v14759_v21 }
0x1976   :  { %7590 = vmatprep.mubr.f32.mxu1 %v14759_v21 }
0x1977   :  { %11996 = vmatpush1.bf16.msra.mxu0 %v11995_v50 }
0x1978   :  { %11940 = vmatpush1.bf16.msra.mxu1 %v11939_v51  ;;  %12006 = vmatprep.subr.bf16.mxu0 %v12005_v52 }
0x1979   :  { %11950 = vmatprep.subr.bf16.mxu1 %v11949_v55 }
0x197a   :  { %10707 = vmatmul.mubr.msk.f32.vlgmr.msra.gmra.mrb[78].mxu0 %vm131_vm0, %v13574_v26 }
0x197b   :  { %10700 = vmatmul.mubr.msk.f32.vlgmr.msra.gmra.mrb[90].mxu1 %vm131_vm0, %v13532_v7  ;;  %12008 = vmatpush1.bf16.msra.mxu0 %v12007_v63 }
0x197c   :  { %11952 = vmatpush1.bf16.msra.mxu1 %v11951_v0  ;;  %12010 = vmatprep.subr.bf16.mxu0 %v12009_v1 }
0x197d   :  { %11954 = vmatprep.subr.bf16.mxu1 %v11953_v4  ;;  %8386 = vmatprep.mubr.f32.mxu0 %v14759_v21 }
0x197e   :  { %7732 = vmatprep.mubr.f32.mxu1 %v14759_v21 }
0x197f   :  { %12012 = vmatpush1.bf16.msra.mxu0 %v12011_v41 }
0x1980   :  { %11956 = vmatpush1.bf16.msra.mxu1 %v11955_v17  ;;  %12022 = vmatprep.subr.bf16.mxu0 %v13556_v27  ;;  %v13604_v27 = vpack.c.bf16 %v8878_v14, %v8870_v12  ;;  %v13686_v14 = vrot.slane %v13332_v13, 7 }
0x1981   :  { %11966 = vmatprep.subr.bf16.mxu1 %v13559_v56  ;;  %v8894_v56 = vld [vmem:[#allocation3 + $0x7c0] sm:$0xff] }
0x1982   :  { %10709 = vmatmul.mubr.msk.f32.vlgmr.msra.gmra.mrb[80].mxu0 %vm131_vm0, %v13574_v26 }
0x1983   :  { %10702 = vmatmul.mubr.msk.f32.vlgmr.msra.gmra.mrb[92].mxu1 %vm131_vm0, %v13532_v7  ;;  %12024 = vmatpush1.bf16.msra.mxu0 %v13562_v33  ;;  %v8148_v7 = vld [vmem:[#allocation3 + $0x618] sm:$0xff] }
0x1984   :  { %11968 = vmatpush1.bf16.msra.mxu1 %v11935_v34  ;;  %12026 = vmatprep.subr.bf16.mxu0 %v11993_v35  ;;  %v13601_v54 = vpack.c.bf16 %v8156_v10, %v8148_v7  ;;  %v8152_v33 = vld [vmem:[#allocation3 + $0x638] sm:$0xff]  ;;  %v13619_v35 = vpack.c.bf16 %v8894_v56, %v8886_v28 }
0x1985   :  { %11970 = vmatprep.subr.bf16.mxu1 %v11937_v44  ;;  %8590 = vmatprep.mubr.f32.mxu0 %v14759_v21  ;;  %v8160_v34 = vld [vmem:[#allocation3 + $0x678] sm:$0xff]  ;;  %v8882_v44 = vld [vmem:[#allocation3 + $0x760] sm:$0xff] }
0x1986   :  { %7936 = vmatprep.mubr.f32.mxu1 %v14759_v21  ;;  %v8889_v28 = vld [vmem:[#allocation3 + $0x798] sm:$0xff] }
0x1987   :  { %12028 = vmatpush1.bf16.msra.mxu0 %v11995_v50  ;;  %v8176_v50 = vld [vmem:[#allocation3 + $0x6f8] sm:$0xff] }
0x1988   :  { %11972 = vmatpush1.bf16.msra.mxu1 %v11939_v51  ;;  %12038 = vmatprep.subr.bf16.mxu0 %v12005_v52  ;;  %v13633_v51 = vpack.c.bf16 %v8882_v44, %v8874_v38  ;;  %v13637_v52 = vrot.slane %v13336_v19, 7  ;;  %v12017_v59 = vpack.c.bf16 %v8176_v50, %v8168_v49  ;;  %v8897_v56 = vld [vmem:[#allocation3 + $0x7d8] sm:$0xff] }
0x1989   :  { %11982 = vmatprep.subr.bf16.mxu1 %v11949_v55  ;;  %v8898_v55 = vld [vmem:[#allocation3 + $0x7e0] sm:$0xff]  ;;  %v12065_v32 = vpack.c.bf16 %v8897_v56, %v8889_v28  ;;  %v8901_v49 = vld [vmem:[#allocation3 + $0x7f8] sm:$0xff] }
0x198a   :  { %10711 = vmatmul.mubr.msk.f32.vlgmr.msra.gmra.mrb[82].mxu0 %vm131_vm0, %v13592_v6  ;;  %v13646_v19 = vpack.c.bf16 %v8898_v55, %v8890_v58  ;;  %v8892_v58 = vld [vmem:[#allocation3 + $0x7b0] sm:$0xff] }
0x198b   :  { %10704 = vmatmul.mubr.msk.f32.vlgmr.msra.gmra.mrb[94].mxu1 %vm131_vm0, %v13550_v18  ;;  %12040 = vmatpush1.bf16.msra.mxu0 %v12007_v63  ;;  %v8900_v55 = vld [vmem:[#allocation3 + $0x7f0] sm:$0xff] }
0x198c   :  { %11984 = vmatpush1.bf16.msra.mxu1 %v11951_v0  ;;  %12042 = vmatprep.subr.bf16.mxu0 %v12009_v1  ;;  %v12567_v0 = vmov 1966171168  }
0x198d   :  { %11986 = vmatprep.subr.bf16.mxu1 %v11953_v4  ;;  %8732 = vmatprep.mubr.f32.mxu0 %v14759_v21  ;;  %v4127_v1 = vunpack.c.l.s4 %v12567_v0 }
0x198e   :  { %8078 = vmatprep.mubr.f32.mxu1 %v14759_v21 }
0x198f   :  { %12044 = vmatpush1.bf16.msra.mxu0 %v12011_v41  ;;  %v4128_v41 = vunpack.c.0.s8 %v4127_v1 }
0x1990   :  { %11988 = vmatpush1.bf16.msra.mxu1 %v11955_v17  ;;  %12054 = vmatprep.subr.bf16.mxu0 %v13598_v11  ;;  %v13662_v17 = vshrl.u32 %v4129_v2, 7 }
0x1991   :  { %11998 = vmatprep.subr.bf16.mxu1 %v13601_v54 }
0x1992   :  { %10713 = vmatmul.mubr.msk.f32.vlgmr.msra.gmra.mrb[84].mxu0 %vm131_vm0, %v13592_v6  ;;  %v13676_v9 = vsub.s32 %v4128_v41, %v13662_v17 }
0x1993   :  { %10706 = vmatmul.mubr.msk.f32.vlgmr.msra.gmra.mrb[96].mxu1 %vm131_vm0, %v13550_v18  ;;  %12056 = vmatpush1.bf16.msra.mxu0 %v13604_v27  ;;  %v13629_v18 = vpack.c.bf16 %v8160_v34, %v8152_v33  ;;  %v8888_v33 = vld [vmem:[#allocation3 + $0x790] sm:$0xff] }
0x1994   :  { %12000 = vmatpush1.bf16.msra.mxu1 %v13607_v40  ;;  %12058 = vmatprep.subr.bf16.mxu0 %v13609_v39  ;;  %v8896_v34 = vld [vmem:[#allocation3 + $0x7d0] sm:$0xff] }
0x1995   :  { %12002 = vmatprep.subr.bf16.mxu1 %v13612_v31  ;;  %8969 = vmatprep.mubr.f32.mxu0 %v14759_v21 }
0x1996   :  { %8315 = vmatprep.mubr.f32.mxu1 %v14759_v21 }
0x1997   :  { %12060 = vmatpush1.bf16.msra.mxu0 %v13619_v35 }
0x1998   :  { %12004 = vmatpush1.bf16.msra.mxu1 %v13623_v36  ;;  %12070 = vmatprep.subr.bf16.mxu0 %v13625_v37 }
0x1999   :  { %12014 = vmatprep.subr.bf16.mxu1 %v13629_v18 }
0x199a   :  { %10715 = vmatmul.mubr.msk.f32.vlgmr.msra.gmra.mrb[86].mxu0 %vm131_vm0, %v13637_v52 }
0x199b   :  { %10708 = vmatmul.mubr.msk.f32.vlgmr.msra.gmra.mrb[98].mxu1 %vm131_vm0, %v13574_v26  ;;  %12072 = vmatpush1.bf16.msra.mxu0 %v13633_v51 }
0x199c   :  { %12016 = vmatpush1.bf16.msra.mxu1 %v12015_v53  ;;  %12074 = vmatprep.subr.bf16.mxu0 %v12073_v57 }
0x199d   :  { %v13650_v62 = vpop.f32.mrb[34].mxu0  ;;  %12018 = vmatprep.subr.bf16.mxu1 %v12017_v59  ;;  %9111 = vmatprep.mubr.f32.mxu0 %v14759_v21 }
0x199e   :  { %v3896_v63 = vpop.f32.mrb[46].mxu1  ;;  %v13653_v3 = vpop.f32.mrb[35].mxu0  ;;  %8457 = vmatprep.mubr.f32.mxu1 %v14759_v21 }
0x199f   :  { %v4468_v4 = vcombine.low %v13650_v62, %v13653_v3  ;;  %12076 = vmatpush1.bf16.msra.mxu0 %v13646_v19  ;;  %v3898_v5 = vpop.f32.mrb[47].mxu1 }
0x19a0   :  { %v4122_v20 = vcombine.low %v3896_v63, %v3898_v5  ;;  %12020 = vmatpush1.bf16.msra.mxu1 %v13648_v29  ;;  %12086 = vmatprep.subr.bf16.mxu0 %v13598_v11 }
0x19a1   :  { %12030 = vmatprep.subr.bf16.mxu1 %v13601_v54 }
0x19a2   :  { %10717 = vmatmul.mubr.msk.f32.vlgmr.msra.gmra.mrb[88].mxu0 %vm131_vm0, %v13637_v52  ;;  %v13691_v15 = vrot.slane %v4122_v20, %v13676_v9 }
0x19a3   :  { %10710 = vmatmul.mubr.msk.f32.vlgmr.msra.gmra.mrb[100].mxu1 %vm131_vm0, %v13574_v26  ;;  %12088 = vmatpush1.bf16.msra.mxu0 %v13604_v27  ;;  %v8880_v27 = vld [vmem:[#allocation3 + $0x750] sm:$0xff] }
0x19a4   :  { %12032 = vmatpush1.bf16.msra.mxu1 %v13607_v40  ;;  %12090 = vmatprep.subr.bf16.mxu0 %v13609_v39  ;;  %v12063_v30 = vpack.c.bf16 %v8880_v27, %v8872_v24 }
0x19a5   :  { %v13671_v8 = vpop.f32.mrb[36].mxu0  ;;  %12034 = vmatprep.subr.bf16.mxu1 %v13612_v31  ;;  %9315 = vmatprep.mubr.f32.mxu0 %v14759_v21 }
0x19a6   :  { %v3967_v7 = vpop.f32.mrb[48].mxu1  ;;  %v13678_v10 = vpop.f32.mrb[37].mxu0  ;;  %8661 = vmatprep.mubr.f32.mxu1 %v14759_v21 }
0x19a7   :  { %v4470_v26 = vcombine.low %v13671_v8, %v13678_v10  ;;  %v3969_v11 = vpop.f32.mrb[49].mxu1  ;;  %12092 = vmatpush1.bf16.msra.mxu0 %v13619_v35  ;;  %v8877_v35 = vld [vmem:[#allocation3 + $0x738] sm:$0xff] }
0x19a8   :  { %v4123_v12 = vcombine.low %v3967_v7, %v3969_v11  ;;  %12036 = vmatpush1.bf16.msra.mxu1 %v13623_v36  ;;  %12102 = vmatprep.subr.bf16.mxu0 %v13625_v37  ;;  %v8885_v36 = vld [vmem:[#allocation3 + $0x778] sm:$0xff]  ;;  %v12067_v37 = vpack.c.bf16 %v8896_v34, %v8888_v33  ;;  %v4478_v11 = vrot.slane %v4468_v4, %v13676_v9 }
0x19a9   :  { %12046 = vmatprep.subr.bf16.mxu1 %v13629_v18  ;;  %v12077_v44 = vpack.c.bf16 %v8885_v36, %v8877_v35  ;;  %v8884_v18 = vld [vmem:[#allocation3 + $0x770] sm:$0xff]  ;;  %v4492_v62 = vrot.slane %v4470_v26, %v13676_v9 }
0x19aa   :  { %v13694_v54 = vrot.slane %v4123_v12, %v13676_v9  ;;  %10719 = vmatmul.mubr.msk.f32.vlgmr.msra.gmra.mrb[90].mxu0 %vm131_vm0, %v13686_v14 }
0x19ab   :  { %10712 = vmatmul.mubr.msk.f32.vlgmr.msra.gmra.mrb[102].mxu1 %vm131_vm0, %v13592_v6  ;;  %12104 = vmatpush1.bf16.msra.mxu0 %v13633_v51 }
0x19ac   :  { %v4154_v13 = vcombine.low %v13691_v15, %v13694_v54  ;;  %12048 = vmatpush1.bf16.msra.mxu1 %v12015_v53  ;;  %12106 = vmatprep.subr.bf16.mxu0 %v12073_v57  ;;  %v12079_v53 = vpack.c.bf16 %v8884_v18, %v8876_v46  ;;  %v12081_v57 = vpack.c.bf16 %v8901_v49, %v8893_v48 }
0x19ad   :  { %v13703_v23 = vpop.f32.mrb[38].mxu0  ;;  %12050 = vmatprep.subr.bf16.mxu1 %v12017_v59  ;;  %9457 = vmatprep.mubr.f32.mxu0 %v14759_v21 }
0x19ae   :  { %v4038_v40 = vpop.f32.mrb[50].mxu1  ;;  %v13706_v39 = vpop.f32.mrb[39].mxu0  ;;  %8803 = vmatprep.mubr.f32.mxu1 %v14759_v21  ;;  %v13732_v63 = vrot.slane %v4154_v13, %v13676_v9 }
0x19af   :  { %v4847_v25 = vcombine.low %v13703_v23, %v13706_v39  ;;  %v4040_v31 = vpop.f32.mrb[51].mxu1  ;;  %12108 = vmatpush1.bf16.msra.mxu0 %v13646_v19  ;;  %v12083_v19 = vpack.c.bf16 %v8900_v55, %v8892_v58 }
0x19b0   :  { %v4124_v43 = vcombine.low %v4038_v40, %v4040_v31  ;;  %12052 = vmatpush1.bf16.msra.mxu1 %v13648_v29 }
0x19b1   :  { %12062 = vmatprep.subr.bf16.mxu1 %v12061_v45 }
0x19b2   :  { %10721 = vmatmul.mubr.msk.f32.vlgmr.msra.gmra.mrb[92].mxu0 %vm131_vm0, %v13686_v14  ;;  %v4146_v59 = vrot.slane %v4124_v43, %v13676_v9  ;;  %v4857_v43 = vrot.slane %v4847_v25, %v13676_v9  ;;  %v3794_v25 = vld [vmem:[%s14726_s17] sm:$0xff] }
0x19b3   :  { %10714 = vmatmul.mubr.msk.f32.vlgmr.msra.gmra.mrb[104].mxu1 %vm131_vm0, %v13592_v6 }
0x19b4   :  { %12064 = vmatpush1.bf16.msra.mxu1 %v12063_v30  ;;  %9040 = vmatprep.mubr.f32.mxu1 %v14759_v21 }
0x19b5   :  { %v13718_v38 = vpop.f32.mrb[40].mxu0  ;;  %12066 = vmatprep.subr.bf16.mxu1 %v12065_v32 }
0x19b6   :  { %v4109_v42 = vpop.f32.mrb[52].mxu1  ;;  %v13720_v47 = vpop.f32.mrb[41].mxu0 }
0x19b7   :  { %v4849_v50 = vcombine.low %v13718_v38, %v13720_v47  ;;  %v4111_v51 = vpop.f32.mrb[53].mxu1 }
0x19b8   :  { %v4125_v6 = vcombine.low %v4109_v42, %v4111_v51  ;;  %12068 = vmatpush1.bf16.msra.mxu1 %v12067_v37 }
0x19b9   :  { %12078 = vmatprep.subr.bf16.mxu1 %v12077_v44  ;;  %v4871_v46 = vrot.slane %v4849_v50, %v13676_v9 }
0x19ba   :  { %v4153_v60 = vrot.slane %v4125_v6, %v13676_v9 }
0x19bb   :  { %10716 = vmatmul.mubr.msk.f32.vlgmr.msra.gmra.mrb[106].mxu1 %vm131_vm0, %v13637_v52 }
0x19bc   :  { %v4155_v61 = vcombine.low %v4146_v59, %v4153_v60  ;;  %12080 = vmatpush1.bf16.msra.mxu1 %v12079_v53  ;;  %9182 = vmatprep.mubr.f32.mxu1 %v14759_v21 }
0x19bd   :  { %v13729_v29 = vpop.f32.mrb[42].mxu0  ;;  %12082 = vmatprep.subr.bf16.mxu1 %v12081_v57 }
0x19be   :  { %v13735_v0 = vrot.slane %v4155_v61, %v13676_v9  ;;  %v4313_v1 = vpop.f32.mrb[54].mxu1  ;;  %v13737_v2 = vpop.f32.mrb[43].mxu0 }
0x19bf   :  { %v5193_v5 = vcombine.low %v13729_v29, %v13737_v2  ;;  %v4315_v20 = vpop.f32.mrb[55].mxu1 }
0x19c0   :  { %v4170_v41 = vcombine.low %v13732_v63, %v13735_v0  ;;  %v4469_v7 = vcombine.low %v4313_v1, %v4315_v20  ;;  %12084 = vmatpush1.bf16.msra.mxu1 %v12083_v19 }
0x19c1   :  { %12094 = vmatprep.subr.bf16.mxu1 %v12061_v45  ;;  %v5203_v47 = vrot.slane %v5193_v5, %v13676_v9 }
0x19c2   :  { %v4485_v12 = vrot.slane %v4469_v7, %v13676_v9 }
0x19c3   :  { %10718 = vmatmul.mubr.msk.f32.vlgmr.msra.gmra.mrb[108].mxu1 %vm131_vm0, %v13637_v52 }
0x19c4   :  { %v4500_v15 = vcombine.low %v4478_v11, %v4485_v12  ;;  %12096 = vmatpush1.bf16.msra.mxu1 %v12063_v30  ;;  %9386 = vmatprep.mubr.f32.mxu1 %v14759_v21 }
0x19c5   :  { %v5109_v54 = vpop.f32.mrb[44].mxu0  ;;  %12098 = vmatprep.subr.bf16.mxu1 %v12065_v32 }
0x19c6   :  { %v4455_v16 = vpop.f32.mrb[56].mxu1  ;;  %v5111_v22 = vpop.f32.mrb[45].mxu0  ;;  %v4508_v27 = vrot.slane %v4500_v15, %v13676_v9 }
0x19c7   :  { %v5195_v13 = vcombine.low %v5109_v54, %v5111_v22  ;;  %v4457_v45 = vpop.f32.mrb[57].mxu1 }
0x19c8   :  { %v4471_v24 = vcombine.low %v4455_v16, %v4457_v45  ;;  %12100 = vmatpush1.bf16.msra.mxu1 %v12067_v37 }
0x19c9   :  { %12110 = vmatprep.subr.bf16.mxu1 %v12077_v44  ;;  %v5217_v0 = vrot.slane %v5195_v13, %v13676_v9 }
0x19ca   :  { %v4499_v52 = vrot.slane %v4471_v24, %v13676_v9 }
0x19cb   :  { %10720 = vmatmul.mubr.msk.f32.vlgmr.msra.gmra.mrb[110].mxu1 %vm131_vm0, %v13686_v14 }
0x19cc   :  { %v4501_v3 = vcombine.low %v4492_v62, %v4499_v52  ;;  %12112 = vmatpush1.bf16.msra.mxu1 %v12079_v53  ;;  %9528 = vmatprep.mubr.f32.mxu1 %v14759_v21  ;;  %v4172_v53 = vadd.f32 %v4170_v41, %v3794_v25 }
0x19cd   :  { %v5346_v4 = vpop.f32.mrb[46].mxu0  ;;  %12114 = vmatprep.subr.bf16.mxu1 %v12081_v57 }
0x19ce   :  { %v4515_v40 = vrot.slane %v4501_v3, %v13676_v9  ;;  %v4692_v28 = vpop.f32.mrb[58].mxu1  ;;  %v5348_v56 = vpop.f32.mrb[47].mxu0 }
0x19cf   :  { %v5572_v31 = vcombine.low %v5346_v4, %v5348_v56  ;;  %v4694_v8 = vpop.f32.mrb[59].mxu1 }
0x19d0   :  { %v4516_v10 = vcombine.low %v4508_v27, %v4515_v40  ;;  %v4848_v26 = vcombine.low %v4692_v28, %v4694_v8  ;;  %12116 = vmatpush1.bf16.msra.mxu1 %v12083_v19 }
0x19d1   :  { %v5582_v13 = vrot.slane %v5572_v31, %v13676_v9 }
0x19d2   :  { %v4864_v30 = vrot.slane %v4848_v26, %v13676_v9  ;;  %v4518_v54 = vadd.f32 %v4516_v10, %v3794_v25 }
0x19d3   :  { %10722 = vmatmul.mubr.msk.f32.vlgmr.msra.gmra.mrb[112].mxu1 %vm131_vm0, %v13686_v14 }
0x19d4   :  { %v4879_v32 = vcombine.low %v4857_v43, %v4864_v30 }
0x19d5   :  { %v5488_v33 = vpop.f32.mrb[48].mxu0 }
0x19d6   :  { %v4834_v34 = vpop.f32.mrb[60].mxu1  ;;  %v5490_v35 = vpop.f32.mrb[49].mxu0  ;;  %v4887_v18 = vrot.slane %v4879_v32, %v13676_v9 }
0x19d7   :  { %v5574_v36 = vcombine.low %v5488_v33, %v5490_v35  ;;  %v4836_v37 = vpop.f32.mrb[61].mxu1 }
0x19d8   :  { %v4850_v44 = vcombine.low %v4834_v34, %v4836_v37 }
0x19d9   :  { %v5596_v56 = vrot.slane %v5574_v36, %v13676_v9 }
0x19da   :  { %v4878_v23 = vrot.slane %v4850_v44, %v13676_v9 }
0x19dc   :  { %v4880_v39 = vcombine.low %v4871_v46, %v4878_v23 }
0x19dd   :  { %v5692_v14 = vpop.f32.mrb[50].mxu0 }
0x19de   :  { %v4894_v42 = vrot.slane %v4880_v39, %v13676_v9  ;;  %v5038_v48 = vpop.f32.mrb[62].mxu1  ;;  %v5694_v49 = vpop.f32.mrb[51].mxu0 }
0x19df   :  { %v5918_v51 = vcombine.low %v5692_v14, %v5694_v49  ;;  %v5040_v6 = vpop.f32.mrb[63].mxu1  ;;  %v9611_v49 = vld [vmem:[%s14727_s18 + $0x88] sm:$0xff] }
0x19e0   :  { %v4895_v57 = vcombine.low %v4887_v18, %v4894_v42  ;;  %v5194_v38 = vcombine.low %v5038_v48, %v5040_v6  ;;  %v9610_v48 = vld [vmem:[%s14727_s18 + $0x80] sm:$0xff] }
0x19e1   :  { %v5928_v36 = vrot.slane %v5918_v51, %v13676_v9  ;;  %v9642_v51 = vld [vmem:[%s14727_s18 + $0x180] sm:$0xff] }
0x19e2   :  { %v4897_v50 = vadd.f32 %v4895_v57, %v4172_v53  ;;  %v5210_v58 = vrot.slane %v5194_v38, %v13676_v9  ;;  %v13832_v53 = vpack.c.bf16 %v9611_v49, %v9610_v48  ;;  %v9643_v57 = vld [vmem:[%s14727_s18 + $0x188] sm:$0xff]  ;;  %v9594_v38 = vld [vmem:[%s14727_s18] sm:$0xff] }
0x19e3   :  { %v9631_v48 = vld [vmem:[%s14727_s18 + $0x128] sm:$0xff] }
0x19e4   :  { %v5225_v55 = vcombine.low %v5203_v47, %v5210_v58  ;;  %v9595_v47 = vld [vmem:[%s14727_s18 + $0x8] sm:$0xff]  ;;  %12118 = vmatprep.subr.bf16.mxu0 %v13832_v53 }
0x19e5   :  { %v13780_v59 = vpop.f32.mrb[52].mxu0  ;;  %v13845_v58 = vpack.c.bf16 %v9595_v47, %v9594_v38  ;;  %v9616_v38 = vld [vmem:[%s14727_s18 + $0xb0] sm:$0xff]  ;;  %v9649_v47 = vld [vmem:[%s14727_s18 + $0x1b8] sm:$0xff] }
0x19e6   :  { %v5180_v60 = vpop.f32.mrb[64].mxu1  ;;  %v5836_v61 = vpop.f32.mrb[53].mxu0  ;;  %v5233_v5 = vrot.slane %v5225_v55, %v13676_v9  ;;  %v9626_v55 = vld [vmem:[%s14727_s18 + $0x100] sm:$0xff] }
0x19e7   :  { %v5920_v19 = vcombine.low %v13780_v59, %v5836_v61  ;;  %v5182_v29 = vpop.f32.mrb[65].mxu1  ;;  %v9627_v59 = vld [vmem:[%s14727_s18 + $0x108] sm:$0xff]  ;;  %12120 = vmatpush3.bf16.msra.mxu0 %v13845_v58 }
0x19e8   :  { %v5196_v63 = vcombine.low %v5180_v60, %v5182_v29  ;;  %v13856_v29 = vpack.c.bf16 %v9627_v59, %v9626_v55  ;;  %v9600_v55 = vld [vmem:[%s14727_s18 + $0x30] sm:$0xff]  ;;  %v9601_v59 = vld [vmem:[%s14727_s18 + $0x38] sm:$0xff] }
0x19e9   :  { %v5942_v60 = vrot.slane %v5920_v19, %v13676_v9  ;;  %v9644_v19 = vld [vmem:[%s14727_s18 + $0x190] sm:$0xff] }
0x19ea   :  { %v5224_v1 = vrot.slane %v5196_v63, %v13676_v9  ;;  %v9612_v63 = vld [vmem:[%s14727_s18 + $0x90] sm:$0xff] }
0x19ec   :  { %v5226_v2 = vcombine.low %v5217_v0, %v5224_v1  ;;  %v9613_v0 = vld [vmem:[%s14727_s18 + $0x98] sm:$0xff] }
0x19ed   :  { %v13785_v20 = vpop.f32.mrb[54].mxu0 }
0x19ee   :  { %v5240_v41 = vrot.slane %v5226_v2, %v13676_v9  ;;  %v5417_v7 = vpop.f32.mrb[66].mxu1  ;;  %v13789_v11 = vpop.f32.mrb[55].mxu0  ;;  %v13870_v2 = vpack.c.bf16 %v9613_v0, %v9612_v63  ;;  %v13976_v63 = vpack.c.bf16 %v9601_v59, %v9600_v55  ;;  %v9632_v0 = vld [vmem:[%s14727_s18 + $0x130] sm:$0xff] }
0x19ef   :  { %v6297_v12 = vcombine.low %v13785_v20, %v13789_v11  ;;  %v5419_v15 = vpop.f32.mrb[67].mxu1  ;;  %v9617_v20 = vld [vmem:[%s14727_s18 + $0xb8] sm:$0xff]  ;;  %v9648_v11 = vld [vmem:[%s14727_s18 + $0x1b0] sm:$0xff] }
0x19f0   :  { %v5241_v16 = vcombine.low %v5233_v5, %v5240_v41  ;;  %v5573_v22 = vcombine.low %v5417_v7, %v5419_v15  ;;  %v9645_v5 = vld [vmem:[%s14727_s18 + $0x198] sm:$0xff]  ;;  %v9596_v41 = vld [vmem:[%s14727_s18 + $0x10] sm:$0xff]  ;;  %12122 = vmatprep.subr.bf16.mxu0 %v13870_v2 }
0x19f1   :  { %v9597_v7 = vld [vmem:[%s14727_s18 + $0x18] sm:$0xff]  ;;  %v13939_v49 = vrot.slane %v6297_v12, %v13676_v9 }
0x19f2   :  { %v13794_v45 = vadd.f32 %v5241_v16, %v4518_v54  ;;  %v5589_v24 = vrot.slane %v5573_v22, %v13676_v9  ;;  %v13883_v54 = vpack.c.bf16 %v9645_v5, %v9644_v19  ;;  %v13885_v16 = vpack.c.bf16 %v9597_v7, %v9596_v41  ;;  %v9628_v22 = vld [vmem:[%s14727_s18 + $0x110] sm:$0xff]  ;;  %v9633_v19 = vld [vmem:[%s14727_s18 + $0x138] sm:$0xff] }
0x19f3   :  { %v13987_v41 = vpack.c.bf16 %v9633_v19, %v9632_v0  ;;  %v9636_v0 = vld [vmem:[%s14727_s18 + $0x150] sm:$0xff]  ;;  %v9637_v19 = vld [vmem:[%s14727_s18 + $0x158] sm:$0xff] }
0x19f4   :  { %v5604_v62 = vcombine.low %v5582_v13, %v5589_v24  ;;  %v9629_v13 = vld [vmem:[%s14727_s18 + $0x118] sm:$0xff]  ;;  %12124 = vmatpush3.bf16.msra.mxu0 %v13885_v16 }
0x19f5   :  { %v13797_v52 = vpop.f32.mrb[56].mxu0 }
0x19f6   :  { %v5559_v3 = vpop.f32.mrb[68].mxu1  ;;  %v13799_v4 = vpop.f32.mrb[57].mxu0  ;;  %v5612_v26 = vrot.slane %v5604_v62, %v13676_v9 }
0x19f7   :  { %v6299_v27 = vcombine.low %v13797_v52, %v13799_v4  ;;  %v5561_v40 = vpop.f32.mrb[69].mxu1  ;;  %v9652_v52 = vld [vmem:[%s14727_s18 + $0x1d0] sm:$0xff] }
0x19f8   :  { %v5575_v28 = vcombine.low %v5559_v3, %v5561_v40 }
0x19fa   :  { %v5603_v8 = vrot.slane %v5575_v28, %v13676_v9  ;;  %v13898_v28 = vpack.c.bf16 %v9629_v13, %v9628_v22  ;;  %v9618_v13 = vld [vmem:[%s14727_s18 + $0xc0] sm:$0xff] }
0x19fc   :  { %v5605_v31 = vcombine.low %v5596_v56, %v5603_v8 }
0x19fd   :  { %v13805_v10 = vpop.f32.mrb[58].mxu0 }
0x19fe   :  { %v5619_v43 = vrot.slane %v5605_v31, %v13676_v9  ;;  %v5763_v30 = vpop.f32.mrb[70].mxu1  ;;  %v13809_v32 = vpop.f32.mrb[59].mxu0  ;;  %v9614_v31 = vld [vmem:[%s14727_s18 + $0xa0] sm:$0xff] }
0x19ff   :  { %v6643_v33 = vcombine.low %v13805_v10, %v13809_v32  ;;  %v5765_v34 = vpop.f32.mrb[71].mxu1  ;;  %v9625_v10 = vld [vmem:[%s14727_s18 + $0xf8] sm:$0xff]  ;;  %v9656_v32 = vld [vmem:[%s14727_s18 + $0x1f0] sm:$0xff] }
0x1a00   :  { %v5620_v35 = vcombine.low %v5612_v26, %v5619_v43  ;;  %v5919_v37 = vcombine.low %v5763_v30, %v5765_v34  ;;  %v9615_v26 = vld [vmem:[%s14727_s18 + $0xa8] sm:$0xff]  ;;  %v9646_v43 = vld [vmem:[%s14727_s18 + $0x1a0] sm:$0xff] }
0x1a02   :  { %v13814_v44 = vadd.f32 %v5620_v35, %v4897_v50  ;;  %v5935_v46 = vrot.slane %v5919_v37, %v13676_v9  ;;  %v13843_v50 = vpack.c.bf16 %v9643_v57, %v9642_v51  ;;  %v13914_v35 = vpack.c.bf16 %v9615_v26, %v9614_v31  ;;  %v9647_v37 = vld [vmem:[%s14727_s18 + $0x1a8] sm:$0xff]  ;;  %v9602_v26 = vld [vmem:[%s14727_s18 + $0x40] sm:$0xff] }
0x1a03   :  { %v9651_v31 = vld [vmem:[%s14727_s18 + $0x1c8] sm:$0xff] }
0x1a04   :  { %v5950_v23 = vcombine.low %v5928_v36, %v5935_v46  ;;  %12150 = vmatprep.subr.bf16.mxu1 %v13843_v50  ;;  %v9598_v36 = vld [vmem:[%s14727_s18 + $0x20] sm:$0xff]  ;;  %v9599_v46 = vld [vmem:[%s14727_s18 + $0x28] sm:$0xff]  ;;  %12126 = vmatprep.subr.bf16.mxu0 %v13914_v35 }
0x1a05   :  { %v13817_v39 = vpop.f32.mrb[60].mxu0  ;;  %12152 = vmatpush3.bf16.msra.mxu1 %v13856_v29 }
0x1a06   :  { %v5905_v25 = vpop.f32.mrb[72].mxu1  ;;  %v13819_v14 = vpop.f32.mrb[61].mxu0  ;;  %v5958_v24 = vrot.slane %v5950_v23, %v13676_v9  ;;  %12154 = vmatprep.subr.bf16.mxu1 %v13883_v54  ;;  %v13925_v23 = vpack.c.bf16 %v9647_v37, %v9646_v43  ;;  %v9603_v43 = vld [vmem:[%s14727_s18 + $0x48] sm:$0xff]  ;;  %v9634_v37 = vld [vmem:[%s14727_s18 + $0x140] sm:$0xff] }
0x1a07   :  { %v6645_v18 = vcombine.low %v13817_v39, %v13819_v14  ;;  %v5907_v42 = vpop.f32.mrb[73].mxu1 }
0x1a08   :  { %v5921_v6 = vcombine.low %v5905_v25, %v5907_v42  ;;  %v13927_v25 = vpack.c.bf16 %v9599_v46, %v9598_v36  ;;  %v9630_v42 = vld [vmem:[%s14727_s18 + $0x120] sm:$0xff]  ;;  %v9635_v36 = vld [vmem:[%s14727_s18 + $0x148] sm:$0xff]  ;;  %v6321_v46 = vrot.slane %v6299_v27, %v13676_v9 }
0x1a09   :  { %12156 = vmatpush3.bf16.msra.mxu1 %v13898_v28  ;;  %v13946_v57 = vpack.c.bf16 %v9631_v48, %v9630_v42  ;;  %v14030_v48 = vpack.c.bf16 %v9635_v36, %v9634_v37 }
0x1a0a   :  { %v5949_v61 = vrot.slane %v5921_v6, %v13676_v9  ;;  %12158 = vmatprep.subr.bf16.mxu1 %v13925_v23  ;;  %12128 = vmatpush3.bf16.msra.mxu0 %v13927_v25 }
0x1a0c   :  { %v5951_v1 = vcombine.low %v5942_v60, %v5949_v61  ;;  %v13974_v61 = vpack.c.bf16 %v9649_v47, %v9648_v11  ;;  %v9605_v11 = vld [vmem:[%s14727_s18 + $0x58] sm:$0xff] }
0x1a0d   :  { %v13881_v15 = vpop.f32.mrb[62].mxu0  ;;  %12160 = vmatpush3.bf16.msra.mxu1 %v13946_v57 }
0x1a0e   :  { %v5965_v62 = vrot.slane %v5951_v1, %v13676_v9  ;;  %v6142_v3 = vpop.f32.mrb[74].mxu1  ;;  %v13895_v40 = vpop.f32.mrb[63].mxu0  ;;  %12162 = vmatprep.subr.bf16.mxu1 %v13974_v61 }
0x1a0f   :  { %v7022_v56 = vcombine.low %v13881_v15, %v13895_v40  ;;  %v6144_v8 = vpop.f32.mrb[75].mxu1 }
0x1a10   :  { %v5966_v30 = vcombine.low %v5958_v24, %v5965_v62  ;;  %v6298_v34 = vcombine.low %v6142_v3, %v6144_v8  ;;  %v9619_v24 = vld [vmem:[%s14727_s18 + $0xc8] sm:$0xff]  ;;  %v9650_v62 = vld [vmem:[%s14727_s18 + $0x1c0] sm:$0xff] }
0x1a11   :  { %12164 = vmatpush3.bf16.msra.mxu1 %v13987_v41  ;;  %v14003_v8 = vpack.c.bf16 %v9619_v24, %v9618_v13  ;;  %v7032_v39 = vrot.slane %v7022_v56, %v13676_v9 }
0x1a12   :  { %v13942_v51 = vadd.f32 %v5966_v30, %v13794_v45  ;;  %v6314_v6 = vrot.slane %v6298_v34, %v13676_v9  ;;  %v13961_v45 = vpack.c.bf16 %v9617_v20, %v9616_v38  ;;  %v14014_v30 = vpack.c.bf16 %v9651_v31, %v9650_v62  ;;  %v9653_v38 = vld [vmem:[%s14727_s18 + $0x1d8] sm:$0xff]  ;;  %v9604_v20 = vld [vmem:[%s14727_s18 + $0x50] sm:$0xff] }
0x1a13   :  { %v14016_v34 = vpack.c.bf16 %v9603_v43, %v9602_v26  ;;  %v14057_v55 = vpack.c.bf16 %v9653_v38, %v9652_v52  ;;  %v14059_v59 = vpack.c.bf16 %v9605_v11, %v9604_v20  ;;  %v14072_v62 = vpack.c.bf16 %v9637_v19, %v9636_v0  ;;  %v9623_v26 = vld [vmem:[%s14727_s18 + $0xe8] sm:$0xff]  ;;  %v9654_v43 = vld [vmem:[%s14727_s18 + $0x1e0] sm:$0xff] }
0x1a14   :  { %v6329_v12 = vcombine.low %v13939_v49, %v6314_v6  ;;  %12130 = vmatprep.subr.bf16.mxu0 %v13961_v45  ;;  %12166 = vmatprep.subr.bf16.mxu1 %v14014_v30  ;;  %v9620_v49 = vld [vmem:[%s14727_s18 + $0xd0] sm:$0xff]  ;;  %v9621_v6 = vld [vmem:[%s14727_s18 + $0xd8] sm:$0xff]  ;;  %v9638_v38 = vld [vmem:[%s14727_s18 + $0x160] sm:$0xff]  ;;  %v6653_v11 = vrot.slane %v6643_v33, %v13676_v9 }
0x1a15   :  { %v13972_v60 = vpop.f32.mrb[64].mxu0  ;;  %12132 = vmatpush3.bf16.msra.mxu0 %v13976_v63  ;;  %12168 = vmatpush3.bf16.msra.mxu1 %v14030_v48  ;;  %v14044_v27 = vpack.c.bf16 %v9621_v6, %v9620_v49  ;;  %14808 = vst [vmem:[#allocation9_spill] sm:$0xff] %v14057_v55  ;;  %14809 = vst [vmem:[#allocation10_spill] sm:$0xff] %v14072_v62  ;;  %v9606_v49 = vld [vmem:[%s14727_s18 + $0x60] sm:$0xff]  ;;  %v9607_v6 = vld [vmem:[%s14727_s18 + $0x68] sm:$0xff] }
0x1a16   :  { %v6284_v1 = vpop.f32.mrb[76].mxu1  ;;  %v13984_v5 = vpop.f32.mrb[65].mxu0  ;;  %12134 = vmatprep.subr.bf16.mxu0 %v14003_v8  ;;  %12170 = vmatprep.subr.bf16.mxu1 %v14057_v55  ;;  %v9639_v20 = vld [vmem:[%s14727_s18 + $0x168] sm:$0xff]  ;;  %v9673_v55 = vld [vmem:[%s14727_s18 + $0x278] sm:$0xff] }
0x1a17   :  { %v6286_v22 = vpop.f32.mrb[77].mxu1 }
0x1a18   :  { %v6300_v3 = vcombine.low %v6284_v1, %v6286_v22  ;;  %v6337_v1 = vrot.slane %v6329_v12, %v13676_v9  ;;  %v9622_v12 = vld [vmem:[%s14727_s18 + $0xe0] sm:$0xff] }
0x1a19   :  { %12136 = vmatpush3.bf16.msra.mxu0 %v14016_v34  ;;  %12172 = vmatpush3.bf16.msra.mxu1 %v14072_v62 }
0x1a1a   :  { %v6328_v42 = vrot.slane %v6300_v3, %v13676_v9  ;;  %12138 = vmatprep.subr.bf16.mxu0 %v14044_v27 }
0x1a1c   :  { %v6330_v4 = vcombine.low %v6321_v46, %v6328_v42  ;;  %v14088_v46 = vpack.c.bf16 %v9623_v26, %v9622_v12  ;;  %v9655_v42 = vld [vmem:[%s14727_s18 + $0x1e8] sm:$0xff]  ;;  %v9609_v12 = vld [vmem:[%s14727_s18 + $0x78] sm:$0xff] }
0x1a1d   :  { %v14055_v47 = vpop.f32.mrb[66].mxu0  ;;  %12140 = vmatpush3.bf16.msra.mxu0 %v14059_v59  ;;  %v14099_v52 = vpack.c.bf16 %v9655_v42, %v9654_v43  ;;  %v9641_v42 = vld [vmem:[%s14727_s18 + $0x178] sm:$0xff] }
0x1a1e   :  { %v6344_v22 = vrot.slane %v6330_v4, %v13676_v9  ;;  %v6488_v13 = vpop.f32.mrb[78].mxu1  ;;  %v14069_v24 = vpop.f32.mrb[67].mxu0  ;;  %v14101_v4 = vpack.c.bf16 %v9607_v6, %v9606_v49  ;;  %12142 = vmatprep.subr.bf16.mxu0 %v14088_v46 }
0x1a1f   :  { %v6490_v31 = vpop.f32.mrb[79].mxu1  ;;  %14810 = vst [vmem:[#allocation11_spill] sm:$0xff] %v14099_v52  ;;  %12174 = vmatprep.subr.bf16.mxu1 %v14099_v52  ;;  %v9670_v52 = vld [vmem:[%s14727_s18 + $0x260] sm:$0xff] }
0x1a20   :  { %v6345_v37 = vcombine.low %v6337_v1, %v6344_v22  ;;  %v6644_v36 = vcombine.low %v6488_v13, %v6490_v31  ;;  %v14118_v1 = vpack.c.bf16 %v9639_v20, %v9638_v38  ;;  %v9624_v22 = vld [vmem:[%s14727_s18 + $0xf0] sm:$0xff]  ;;  %v9657_v13 = vld [vmem:[%s14727_s18 + $0x1f8] sm:$0xff] }
0x1a21   :  { %12144 = vmatpush3.bf16.msra.mxu0 %v14101_v4  ;;  %v9608_v31 = vld [vmem:[%s14727_s18 + $0x70] sm:$0xff]  ;;  %v14145_v43 = vpack.c.bf16 %v9657_v13, %v9656_v32 }
0x1a22   :  { %v14114_v0 = vadd.f32 %v6345_v37, %v13814_v44  ;;  %v6660_v19 = vrot.slane %v6644_v36, %v13676_v9  ;;  %14811 = vst [vmem:[#allocation12_spill] sm:$0xff] %v14118_v1  ;;  %12176 = vmatpush3.bf16.msra.mxu1 %v14118_v1  ;;  %v14132_v44 = vpack.c.bf16 %v9625_v10, %v9624_v22  ;;  %v9640_v36 = vld [vmem:[%s14727_s18 + $0x170] sm:$0xff]  ;;  %v9675_v22 = vld [vmem:[%s14727_s18 + $0x288] sm:$0xff]  ;;  %v9706_v10 = vld [vmem:[%s14727_s18 + $0x380] sm:$0xff] }
0x1a23   :  { %14812 = vst [vmem:[#allocation13_spill] sm:$0xff] %v14145_v43  ;;  %v14147_v37 = vpack.c.bf16 %v9609_v12, %v9608_v31  ;;  %v14156_v38 = vpack.c.bf16 %v9641_v42, %v9640_v36  ;;  %12178 = vmatprep.subr.bf16.mxu1 %v14145_v43  ;;  %v9707_v31 = vld [vmem:[%s14727_s18 + $0x388] sm:$0xff] }
0x1a24   :  { %v6675_v33 = vcombine.low %v6653_v11, %v6660_v19  ;;  %12146 = vmatprep.subr.bf16.mxu0 %v14132_v44  ;;  %v9674_v19 = vld [vmem:[%s14727_s18 + $0x280] sm:$0xff]  ;;  %v14176_v12 = vpack.c.bf16 %v9707_v31, %v9706_v10 }
0x1a25   :  { %v14143_v26 = vpop.f32.mrb[68].mxu0  ;;  %14813 = vst [vmem:[#allocation14_spill] sm:$0xff] %v14156_v38  ;;  %12148 = vmatpush3.bf16.msra.mxu0 %v14147_v37  ;;  %v14171_v13 = vpack.c.bf16 %v9675_v22, %v9674_v19 }
0x1a26   :  { %v6630_v49 = vpop.f32.mrb[80].mxu1  ;;  %v7286_v6 = vpop.f32.mrb[69].mxu0  ;;  %12180 = vmatpush3.bf16.msra.mxu1 %v14156_v38  ;;  %14814 = vst [vmem:[#allocation15_spill] sm:$0xff] %v14176_v12  ;;  %v9719_v38 = vld [vmem:[%s14727_s18 + $0x3e8] sm:$0xff] }
0x1a27   :  { %v7370_v20 = vcombine.low %v14143_v26, %v7286_v6  ;;  %v6632_v11 = vpop.f32.mrb[81].mxu1  ;;  %v6667_v26 = vrot.slane %v6645_v18, %v13676_v9  ;;  %12182 = vmatprep.subr.bf16.mxu0 %v14171_v13  ;;  %12214 = vmatprep.subr.bf16.mxu1 %v14176_v12  ;;  %v6683_v6 = vrot.slane %v6675_v33, %v13676_v9 }
0x1a28   :  { %v6646_v32 = vcombine.low %v6630_v49, %v6632_v11 }
0x1a2a   :  { %v6674_v36 = vrot.slane %v6646_v32, %v13676_v9 }
0x1a2c   :  { %v6676_v42 = vcombine.low %v6667_v26, %v6674_v36 }
0x1a2d   :  { %v7521_v49 = vpop.f32.mrb[70].mxu0 }
0x1a2e   :  { %v6690_v11 = vrot.slane %v6676_v42, %v13676_v9  ;;  %v6867_v19 = vpop.f32.mrb[82].mxu1  ;;  %v7523_v22 = vpop.f32.mrb[71].mxu0 }
0x1a2f   :  { %v7747_v10 = vcombine.low %v7521_v49, %v7523_v22  ;;  %v6869_v31 = vpop.f32.mrb[83].mxu1  ;;  %v14815_v49 = vcombine.low %v13972_v60, %v13984_v5 }
0x1a30   :  { %v6691_v21 = vcombine.low %v6683_v6, %v6690_v11  ;;  %v7023_v3 = vcombine.low %v6867_v19, %v6869_v31 }
0x1a31   :  { %v7046_v6 = vrot.slane %v14815_v49, %v13676_v9 }
0x1a32   :  { %v6693_v14 = vadd.f32 %v6691_v21, %v13942_v51  ;;  %v7039_v18 = vrot.slane %v7023_v3, %v13676_v9 }
0x1a34   :  { %v7054_v32 = vcombine.low %v7032_v39, %v7039_v18 }
0x1a35   :  { %v7663_v26 = vpop.f32.mrb[72].mxu0 }
0x1a36   :  { %v7009_v33 = vpop.f32.mrb[84].mxu1  ;;  %v7665_v36 = vpop.f32.mrb[73].mxu0  ;;  %v7062_v21 = vrot.slane %v7054_v32, %v13676_v9 }
0x1a37   :  { %v7749_v42 = vcombine.low %v7663_v26, %v7665_v36  ;;  %v7011_v7 = vpop.f32.mrb[85].mxu1 }
0x1a38   :  { %v7025_v12 = vcombine.low %v7009_v33, %v7011_v7  ;;  %v14816_v7 = vcombine.low %v14055_v47, %v14069_v24 }
0x1a3a   :  { %v7053_v11 = vrot.slane %v7025_v12, %v13676_v9  ;;  %v7378_v60 = vrot.slane %v14816_v7, %v13676_v9 }
0x1a3c   :  { %v7055_v15 = vcombine.low %v7046_v6, %v7053_v11  ;;  %v7392_v11 = vrot.slane %v7370_v20, %v13676_v9 }
0x1a3d   :  { %v7867_v40 = vpop.f32.mrb[74].mxu0 }
0x1a3e   :  { %v7069_v56 = vrot.slane %v7055_v15, %v13676_v9  ;;  %v7213_v51 = vpop.f32.mrb[86].mxu1  ;;  %v7869_v3 = vpop.f32.mrb[75].mxu0 }
0x1a3f   :  { %v8093_v19 = vcombine.low %v7867_v40, %v7869_v3  ;;  %v7215_v22 = vpop.f32.mrb[87].mxu1 }
0x1a40   :  { %v7070_v31 = vcombine.low %v7062_v21, %v7069_v56  ;;  %v7369_v39 = vcombine.low %v7213_v51, %v7215_v22 }
0x1a42   :  { %v7072_v5 = vadd.f32 %v7070_v31, %v14114_v0  ;;  %v7385_v12 = vrot.slane %v7369_v39, %v13676_v9  ;;  %v7757_v39 = vrot.slane %v7747_v10, %v13676_v9 }
0x1a44   :  { %v7400_v18 = vcombine.low %v7378_v60, %v7385_v12 }
0x1a45   :  { %v8009_v26 = vpop.f32.mrb[76].mxu0 }
0x1a46   :  { %v7355_v32 = vpop.f32.mrb[88].mxu1  ;;  %v8011_v33 = vpop.f32.mrb[77].mxu0  ;;  %v7408_v47 = vrot.slane %v7400_v18, %v13676_v9 }
0x1a47   :  { %v8095_v36 = vcombine.low %v8009_v26, %v8011_v33  ;;  %v7357_v49 = vpop.f32.mrb[89].mxu1 }
0x1a48   :  { %v7371_v6 = vcombine.low %v7355_v32, %v7357_v49 }
0x1a4a   :  { %v7399_v15 = vrot.slane %v7371_v6, %v13676_v9  ;;  %v7771_v6 = vrot.slane %v7749_v42, %v13676_v9 }
0x1a4c   :  { %v7401_v40 = vcombine.low %v7392_v11, %v7399_v15 }
0x1a4d   :  { %v8246_v21 = vpop.f32.mrb[78].mxu0 }
0x1a4e   :  { %v7415_v24 = vrot.slane %v7401_v40, %v13676_v9  ;;  %v7592_v0 = vpop.f32.mrb[90].mxu1  ;;  %v8248_v56 = vpop.f32.mrb[79].mxu0 }
0x1a4f   :  { %v8472_v51 = vcombine.low %v8246_v21, %v8248_v56  ;;  %v7594_v3 = vpop.f32.mrb[91].mxu1 }
0x1a50   :  { %v7416_v22 = vcombine.low %v7408_v47, %v7415_v24  ;;  %v7748_v31 = vcombine.low %v7592_v0, %v7594_v3 }
0x1a52   :  { %v7418_v7 = vadd.f32 %v7416_v22, %v6693_v14  ;;  %v7764_v60 = vrot.slane %v7748_v31, %v13676_v9  ;;  %v8103_v22 = vrot.slane %v8093_v19, %v13676_v9 }
0x1a54   :  { %v7779_v20 = vcombine.low %v7757_v39, %v7764_v60 }
0x1a55   :  { %v8388_v12 = vpop.f32.mrb[80].mxu0 }
0x1a56   :  { %v7734_v26 = vpop.f32.mrb[92].mxu1  ;;  %v8390_v32 = vpop.f32.mrb[81].mxu0  ;;  %v7787_v21 = vrot.slane %v7779_v20, %v13676_v9 }
0x1a57   :  { %v8474_v33 = vcombine.low %v8388_v12, %v8390_v32  ;;  %v7736_v49 = vpop.f32.mrb[93].mxu1 }
0x1a58   :  { %v7750_v18 = vcombine.low %v7734_v26, %v7736_v49 }
0x1a5a   :  { %v7778_v11 = vrot.slane %v7750_v18, %v13676_v9  ;;  %v8117_v18 = vrot.slane %v8095_v36, %v13676_v9 }
0x1a5c   :  { %v7780_v15 = vcombine.low %v7771_v6, %v7778_v11 }
0x1a5d   :  { %v8592_v40 = vpop.f32.mrb[82].mxu0 }
0x1a5e   :  { %v7794_v10 = vrot.slane %v7780_v15, %v13676_v9  ;;  %v7938_v14 = vpop.f32.mrb[94].mxu1  ;;  %v8594_v47 = vpop.f32.mrb[83].mxu0 }
0x1a5f   :  { %v8818_v24 = vcombine.low %v8592_v40, %v8594_v47  ;;  %v7940_v0 = vpop.f32.mrb[95].mxu1 }
0x1a60   :  { %v7795_v56 = vcombine.low %v7787_v21, %v7794_v10  ;;  %v8094_v3 = vcombine.low %v7938_v14, %v7940_v0 }
0x1a62   :  { %v7797_v31 = vadd.f32 %v7795_v56, %v7072_v5  ;;  %v8110_v39 = vrot.slane %v8094_v3, %v13676_v9  ;;  %v8482_v56 = vrot.slane %v8472_v51, %v13676_v9 }
0x1a64   :  { %v8125_v42 = vcombine.low %v8103_v22, %v8110_v39 }
0x1a65   :  { %v8734_v60 = vpop.f32.mrb[84].mxu0 }
0x1a66   :  { %v8080_v12 = vpop.f32.mrb[96].mxu1  ;;  %v8736_v26 = vpop.f32.mrb[85].mxu0  ;;  %v8133_v40 = vrot.slane %v8125_v42, %v13676_v9 }
0x1a67   :  { %v8820_v32 = vcombine.low %v8734_v60, %v8736_v26  ;;  %v8082_v49 = vpop.f32.mrb[97].mxu1 }
0x1a68   :  { %v8096_v20 = vcombine.low %v8080_v12, %v8082_v49 }
0x1a6a   :  { %v8124_v6 = vrot.slane %v8096_v20, %v13676_v9  ;;  %v8496_v20 = vrot.slane %v8474_v33, %v13676_v9 }
0x1a6c   :  { %v8126_v11 = vcombine.low %v8117_v18, %v8124_v6 }
0x1a6d   :  { %v8971_v15 = vpop.f32.mrb[86].mxu0 }
0x1a6e   :  { %v8140_v19 = vrot.slane %v8126_v11, %v13676_v9  ;;  %v8317_v5 = vpop.f32.mrb[98].mxu1  ;;  %v8973_v21 = vpop.f32.mrb[87].mxu0 }
0x1a6f   :  { %v9197_v10 = vcombine.low %v8971_v15, %v8973_v21  ;;  %v8319_v14 = vpop.f32.mrb[99].mxu1 }
0x1a70   :  { %v8141_v47 = vcombine.low %v8133_v40, %v8140_v19  ;;  %v8473_v0 = vcombine.low %v8317_v5, %v8319_v14 }
0x1a72   :  { %v8143_v3 = vadd.f32 %v8141_v47, %v7418_v7  ;;  %v8489_v22 = vrot.slane %v8473_v0, %v13676_v9  ;;  %v8828_v47 = vrot.slane %v8818_v24, %v13676_v9 }
0x1a74   :  { %v8504_v36 = vcombine.low %v8482_v56, %v8489_v22 }
0x1a75   :  { %v9113_v39 = vpop.f32.mrb[88].mxu0 }
0x1a76   :  { %v8459_v60 = vpop.f32.mrb[100].mxu1  ;;  %v9115_v12 = vpop.f32.mrb[89].mxu0  ;;  %v8512_v15 = vrot.slane %v8504_v36, %v13676_v9  ;;  %v9710_v36 = vld [vmem:[%s14727_s18 + $0x3a0] sm:$0xff] }
0x1a77   :  { %v9199_v26 = vcombine.low %v9113_v39, %v9115_v12  ;;  %v8461_v49 = vpop.f32.mrb[101].mxu1 }
0x1a78   :  { %v8475_v42 = vcombine.low %v8459_v60, %v8461_v49 }
0x1a7a   :  { %v8503_v18 = vrot.slane %v8475_v42, %v13676_v9  ;;  %v8842_v42 = vrot.slane %v8820_v32, %v13676_v9 }
0x1a7c   :  { %v8505_v6 = vcombine.low %v8496_v20, %v8503_v18 }
0x1a7d   :  { %v9317_v11 = vpop.f32.mrb[90].mxu0 }
0x1a7e   :  { %v8519_v51 = vrot.slane %v8505_v6, %v13676_v9  ;;  %v8663_v7 = vpop.f32.mrb[102].mxu1  ;;  %v9319_v40 = vpop.f32.mrb[91].mxu0 }
0x1a7f   :  { %v9543_v19 = vcombine.low %v9317_v11, %v9319_v40  ;;  %v8665_v5 = vpop.f32.mrb[103].mxu1 }
0x1a80   :  { %v8520_v21 = vcombine.low %v8512_v15, %v8519_v51  ;;  %v8819_v14 = vcombine.low %v8663_v7, %v8665_v5  ;;  %v9207_v7 = vrot.slane %v9197_v10, %v13676_v9 }
0x1a82   :  { %v8522_v0 = vadd.f32 %v8520_v21, %v7797_v31  ;;  %v8835_v56 = vrot.slane %v8819_v14, %v13676_v9 }
0x1a84   :  { %v8850_v33 = vcombine.low %v8828_v47, %v8835_v56  ;;  %v9221_v56 = vrot.slane %v9199_v26, %v13676_v9 }
0x1a85   :  { %v14230_v22 = vpop.f32.mrb[92].mxu0 }
0x1a86   :  { %v8805_v39 = vpop.f32.mrb[104].mxu1  ;;  %v14232_v60 = vpop.f32.mrb[93].mxu0  ;;  %v8858_v24 = vrot.slane %v8850_v33, %v13676_v9 }
0x1a87   :  { %v8807_v12 = vpop.f32.mrb[105].mxu1 }
0x1a88   :  { %v8821_v49 = vcombine.low %v8805_v39, %v8807_v12 }
0x1a8a   :  { %v8849_v20 = vrot.slane %v8821_v49, %v13676_v9 }
0x1a8c   :  { %v8851_v18 = vcombine.low %v8842_v42, %v8849_v20 }
0x1a8e   :  { %v8865_v31 = vrot.slane %v8851_v18, %v13676_v9  ;;  %v9042_v6 = vpop.f32.mrb[106].mxu1  ;;  %v14762_v18 = vsub.s32 1, %v13662_v17 }
0x1a8f   :  { %v9044_v11 = vpop.f32.mrb[107].mxu1 }
0x1a90   :  { %v8866_v15 = vcombine.low %v8858_v24, %v8865_v31  ;;  %v9198_v51 = vcombine.low %v9042_v6, %v9044_v11  ;;  %v14763_v24 = vsub.s32 3, %v13662_v17  ;;  %v14251_v31 = vrot.slane %v9543_v19, %v13676_v9  ;;  %v9690_v19 = vld [vmem:[%s14727_s18 + $0x300] sm:$0xff] }
0x1a91   :  { %v14764_v11 = vsub.s32 0, %v13662_v17 }
0x1a92   :  { %v14241_v40 = vadd.f32 %v8866_v15, %v8143_v3  ;;  %v9214_v5 = vrot.slane %v9198_v51, %v13676_v9  ;;  %v9658_v15 = vld [vmem:[%s14727_s18 + $0x200] sm:$0xff]  ;;  %v9659_v51 = vld [vmem:[%s14727_s18 + $0x208] sm:$0xff] }
0x1a94   :  { %v9229_v21 = vcombine.low %v9207_v7, %v9214_v5  ;;  %v14765_v7 = vsub.s32 2, %v13662_v17 }
0x1a96   :  { %v9184_v14 = vpop.f32.mrb[108].mxu1  ;;  %v9237_v12 = vrot.slane %v9229_v21, %v13676_v9 }
0x1a97   :  { %v9186_v32 = vpop.f32.mrb[109].mxu1 }
0x1a98   :  { %v9200_v47 = vcombine.low %v9184_v14, %v9186_v32  ;;  %v9676_v14 = vld [vmem:[%s14727_s18 + $0x290] sm:$0xff]  ;;  %v14277_v32 = vpack.c.bf16 %v9659_v51, %v9658_v15 }
0x1a99   :  { %v9692_v51 = vld [vmem:[%s14727_s18 + $0x310] sm:$0xff] }
0x1a9a   :  { %v9228_v33 = vrot.slane %v9200_v47, %v13676_v9  ;;  %v14766_v47 = vsub.s32 5, %v13662_v17 }
0x1a9c   :  { %v9230_v39 = vcombine.low %v9221_v56, %v9228_v33  ;;  %v9677_v33 = vld [vmem:[%s14727_s18 + $0x298] sm:$0xff]  ;;  %v9711_v56 = vld [vmem:[%s14727_s18 + $0x3a8] sm:$0xff] }
0x1a9e   :  { %v9244_v49 = vrot.slane %v9230_v39, %v13676_v9  ;;  %v9388_v42 = vpop.f32.mrb[110].mxu1  ;;  %v9708_v39 = vld [vmem:[%s14727_s18 + $0x390] sm:$0xff] }
0x1a9f   :  { %v9390_v20 = vpop.f32.mrb[111].mxu1 }
0x1aa0   :  { %v9245_v10 = vcombine.low %v9237_v12, %v9244_v49  ;;  %v9544_v3 = vcombine.low %v9388_v42, %v9390_v20  ;;  %v9709_v12 = vld [vmem:[%s14727_s18 + $0x398] sm:$0xff] }
0x1aa2   :  { %v9247_v6 = vadd.f32 %v9245_v10, %v8522_v0  ;;  %v14254_v26 = vrot.slane %v9544_v3, %v13676_v9  ;;  %v9691_v0 = vld [vmem:[%s14727_s18 + $0x308] sm:$0xff] }
0x1aa3   :  { %v14299_v3 = vpack.c.bf16 %v9691_v0, %v9690_v19  ;;  %v9693_v19 = vld [vmem:[%s14727_s18 + $0x318] sm:$0xff]  ;;  %v9678_v0 = vld [vmem:[%s14727_s18 + $0x2a0] sm:$0xff] }
0x1aa4   :  { %v14270_v5 = vmax.f32 %v9247_v6, 0.0  ;;  %v9575_v21 = vcombine.low %v14251_v31, %v14254_v26  ;;  %v9660_v31 = vld [vmem:[%s14727_s18 + $0x210] sm:$0xff]  ;;  %v9661_v6 = vld [vmem:[%s14727_s18 + $0x218] sm:$0xff] }
0x1aa5   :  { %14817 = vst [vmem:[#allocation16_spill] sm:$0xff] %v14299_v3 }
0x1aa6   :  { %v9530_v49 = vpop.f32.mrb[112].mxu1  ;;  %v9741_v42 = vrot.slane %v14270_v5, %v14762_v18  ;;  %v9749_v20 = vrot.slane %v14270_v5, %v14763_v24  ;;  %v9737_v10 = vrot.slane %v14270_v5, %v14764_v11  ;;  %v9745_v15 = vrot.slane %v14270_v5, %v14765_v7  ;;  %v9679_v7 = vld [vmem:[%s14727_s18 + $0x2a8] sm:$0xff] }
0x1aa7   :  { %v9532_v26 = vpop.f32.mrb[113].mxu1  ;;  %v14319_v24 = vpack.c.bf16 %v9677_v33, %v9676_v14  ;;  %v14321_v11 = vpack.c.bf16 %v9709_v12, %v9708_v39  ;;  %v9757_v14 = vrot.slane %v14270_v5, %v14766_v47  ;;  %v14819_v33 = vsub.s32 7, %v13662_v17  ;;  %v9699_v47 = vld [vmem:[%s14727_s18 + $0x348] sm:$0xff] }
0x1aa8   :  { %v9546_v18 = vcombine.low %v9530_v49, %v9532_v26  ;;  %9838 = vmatprep.mubr.f32.mxu0 %v9741_v42  ;;  %9908 = vmatprep.mubr.f32.mxu1 %v9749_v20  ;;  %v14338_v12 = vpack.c.bf16 %v9661_v6, %v9660_v31  ;;  %v14820_v49 = vcombine.low %v14230_v22, %v14232_v60  ;;  %v9662_v26 = vld [vmem:[%s14727_s18 + $0x220] sm:$0xff]  ;;  %v9663_v31 = vld [vmem:[%s14727_s18 + $0x228] sm:$0xff] }
0x1aa9   :  { %14818 = vst [vmem:[#allocation17_spill] sm:$0xff] %v14321_v11  ;;  %9839 = vmatmul.mubr.f32.vlgmr.msra.gmra.mrb[94].mxu0 %v9737_v10  ;;  %9909 = vmatmul.mubr.f32.vlgmr.msra.gmra.mrb[114].mxu1 %v9745_v15  ;;  %v9765_v39 = vrot.slane %v14270_v5, %v14819_v33  ;;  %v14347_v10 = vpack.c.bf16 %v9693_v19, %v9692_v51  ;;  %v9695_v6 = vld [vmem:[%s14727_s18 + $0x328] sm:$0xff]  ;;  %v9680_v15 = vld [vmem:[%s14727_s18 + $0x2b0] sm:$0xff] }
0x1aaa   :  { %v9567_v42 = vrot.slane %v14820_v49, %v13676_v9  ;;  %v9574_v20 = vrot.slane %v9546_v18, %v13676_v9  ;;  %12184 = vmatpush3.bf16.msra.mxu0 %v14277_v32  ;;  %12216 = vmatpush3.bf16.msra.mxu1 %v14299_v3  ;;  %v14355_v22 = vpack.c.bf16 %v9679_v7, %v9678_v0  ;;  %v9694_v18 = vld [vmem:[%s14727_s18 + $0x320] sm:$0xff]  ;;  %v9712_v7 = vld [vmem:[%s14727_s18 + $0x3b0] sm:$0xff]  ;;  %v9665_v49 = vld [vmem:[%s14727_s18 + $0x238] sm:$0xff] }
0x1aab   :  { %14821 = vst [vmem:[#allocation18_spill] sm:$0xff] %v14347_v10  ;;  %9978 = vmatprep.mubr.f32.mxu0 %v9757_v14  ;;  %10048 = vmatprep.mubr.f32.mxu1 %v9765_v39  ;;  %v14357_v60 = vpack.c.bf16 %v9711_v56, %v9710_v36  ;;  %v9681_v36 = vld [vmem:[%s14727_s18 + $0x2b8] sm:$0xff]  ;;  %v14379_v19 = vpack.c.bf16 %v9663_v31, %v9662_v26  ;;  %v9664_v39 = vld [vmem:[%s14727_s18 + $0x230] sm:$0xff]  ;;  %v9682_v26 = vld [vmem:[%s14727_s18 + $0x2c0] sm:$0xff] }
0x1aac   :  { %v9576_v51 = vcombine.low %v9567_v42, %v9574_v20  ;;  %12186 = vmatprep.subr.bf16.mxu0 %v14319_v24  ;;  %12218 = vmatprep.subr.bf16.mxu1 %v14321_v11  ;;  %v9713_v56 = vld [vmem:[%s14727_s18 + $0x3b8] sm:$0xff]  ;;  %v9583_v0 = vrot.slane %v9575_v21, %v13676_v9  ;;  %v14385_v33 = vpack.c.bf16 %v9695_v6, %v9694_v18  ;;  %v9696_v42 = vld [vmem:[%s14727_s18 + $0x330] sm:$0xff]  ;;  %v9683_v18 = vld [vmem:[%s14727_s18 + $0x2c8] sm:$0xff] }
0x1aad   :  { %14822 = vst [vmem:[#allocation19_spill] sm:$0xff] %v14357_v60  ;;  %v14395_v21 = vpack.c.bf16 %v9681_v36, %v9680_v15  ;;  %v9697_v20 = vld [vmem:[%s14727_s18 + $0x338] sm:$0xff]  ;;  %v9714_v6 = vld [vmem:[%s14727_s18 + $0x3c0] sm:$0xff]  ;;  %v9715_v15 = vld [vmem:[%s14727_s18 + $0x3c8] sm:$0xff] }
0x1aae   :  { %v9590_v14 = vrot.slane %v9576_v51, %v13676_v9  ;;  %12188 = vmatpush3.bf16.msra.mxu0 %v14338_v12  ;;  %12220 = vmatpush3.bf16.msra.mxu1 %v14347_v10  ;;  %14823 = vst [vmem:[#allocation20_spill] sm:$0xff] %v14385_v33  ;;  %v14397_v9 = vpack.c.bf16 %v9713_v56, %v9712_v7  ;;  %v9666_v51 = vld [vmem:[%s14727_s18 + $0x240] sm:$0xff]  ;;  %v9667_v36 = vld [vmem:[%s14727_s18 + $0x248] sm:$0xff] }
0x1aaf   :  { %12190 = vmatprep.subr.bf16.mxu0 %v14355_v22  ;;  %12222 = vmatprep.subr.bf16.mxu1 %v14357_v60  ;;  %v9698_v7 = vld [vmem:[%s14727_s18 + $0x340] sm:$0xff]  ;;  %v9684_v60 = vld [vmem:[%s14727_s18 + $0x2d0] sm:$0xff] }
0x1ab0   :  { %14824 = vst [vmem:[#allocation21_spill] sm:$0xff] %v14397_v9  ;;  %v9591_v31 = vcombine.low %v9583_v0, %v9590_v14  ;;  %v14429_v0 = vpack.c.bf16 %v9665_v49, %v9664_v39  ;;  %v14431_v14 = vpack.c.bf16 %v9697_v20, %v9696_v42  ;;  %v14444_v39 = vpack.c.bf16 %v9683_v18, %v9682_v26  ;;  %v9716_v42 = vld [vmem:[%s14727_s18 + $0x3d0] sm:$0xff]  ;;  %v9717_v20 = vld [vmem:[%s14727_s18 + $0x3d8] sm:$0xff]  ;;  %v9718_v3 = vld [vmem:[%s14727_s18 + $0x3e0] sm:$0xff] }
0x1ab1   :  { %v14446_v49 = vpack.c.bf16 %v9715_v15, %v9714_v6  ;;  %v14458_v10 = vpack.c.bf16 %v9699_v47, %v9698_v7  ;;  %v9752_v26 = vsub.s32 4, %v13662_v17  ;;  %v14465_v18 = vpack.c.bf16 %v9717_v20, %v9716_v42  ;;  %v9668_v6 = vld [vmem:[%s14727_s18 + $0x250] sm:$0xff]  ;;  %v9669_v15 = vld [vmem:[%s14727_s18 + $0x258] sm:$0xff]  ;;  %v9686_v42 = vld [vmem:[%s14727_s18 + $0x2e0] sm:$0xff] }
0x1ab2   :  { %v9593_v56 = vadd.f32 %v9591_v31, %v14241_v40  ;;  %12192 = vmatpush3.bf16.msra.mxu0 %v14379_v19  ;;  %12224 = vmatpush3.bf16.msra.mxu1 %v14385_v33  ;;  %14825 = vst [vmem:[#allocation22_spill] sm:$0xff] %v14431_v14  ;;  %v9685_v40 = vld [vmem:[%s14727_s18 + $0x2d8] sm:$0xff]  ;;  %v14456_v33 = vpack.c.bf16 %v9667_v36, %v9666_v51  ;;  %v9760_v47 = vsub.s32 6, %v13662_v17  ;;  %v14830_v36 = vsub.s32 5, %v13662_v17 }
0x1ab3   :  { %12194 = vmatprep.subr.bf16.mxu0 %v14395_v21  ;;  %12226 = vmatprep.subr.bf16.mxu1 %v14397_v9  ;;  %14826 = vst [vmem:[#allocation23_spill] sm:$0xff] %v14446_v49  ;;  %14827 = vst [vmem:[#allocation24_spill] sm:$0xff] %v14458_v10  ;;  %v14460_v11 = vpack.c.bf16 %v9685_v40, %v9684_v60  ;;  %v14829_v60 = vsub.s32 0, %v13662_v17  ;;  %v9701_v40 = vld [vmem:[%s14727_s18 + $0x358] sm:$0xff]  ;;  %v9687_v9 = vld [vmem:[%s14727_s18 + $0x2e8] sm:$0xff] }
0x1ab4   :  { %v14454_v31 = vmax.f32 %v9593_v56, 0.0  ;;  %14828 = vst [vmem:[#allocation25_spill] sm:$0xff] %v14465_v18  ;;  %v9700_v56 = vld [vmem:[%s14727_s18 + $0x350] sm:$0xff] }
0x1ab5   :  { %v14529_v1 = vpack.c.bf16 %v9701_v40, %v9700_v56  ;;  %v9688_v56 = vld [vmem:[%s14727_s18 + $0x2f0] sm:$0xff]  ;;  %v9689_v40 = vld [vmem:[%s14727_s18 + $0x2f8] sm:$0xff] }
0x1ab6   :  { %12196 = vmatpush3.bf16.msra.mxu0 %v14429_v0  ;;  %12228 = vmatpush3.bf16.msra.mxu1 %v14431_v14  ;;  %v14477_v51 = vrot.slane %v14454_v31, %v14829_v60  ;;  %v14482_v7 = vrot.slane %v14454_v31, %v14830_v36  ;;  %v14496_v20 = vrot.slane %v14454_v31, %v9752_v26  ;;  %v14831_v60 = vsub.s32 3, %v13662_v17 }
0x1ab7   :  { %12198 = vmatprep.subr.bf16.mxu0 %v14444_v39  ;;  %12230 = vmatprep.subr.bf16.mxu1 %v14446_v49  ;;  %v14832_v49 = vsub.s32 2, %v13662_v17 }
0x1ab8   :  { %v14501_v36 = vrot.slane %v14454_v31, %v14831_v60  ;;  %v14834_v60 = vsub.s32 7, %v13662_v17 }
0x1ab9   :  { %v14506_v14 = vrot.slane %v14454_v31, %v14832_v49  ;;  %v14523_v49 = vrot.slane %v14454_v31, %v9760_v47 }
0x1aba   :  { %v14520_v43 = vrot.slane %v14454_v31, %v14834_v60  ;;  %12200 = vmatpush3.bf16.msra.mxu0 %v14456_v33  ;;  %12232 = vmatpush3.bf16.msra.mxu1 %v14458_v10  ;;  %v9671_v60 = vld [vmem:[%s14727_s18 + $0x268] sm:$0xff]  ;;  %v12209_v10 = vpack.c.bf16 %v9689_v40, %v9688_v56  ;;  %v9753_v56 = vrot.slane %v14270_v5, %v9752_v26 }
0x1abb   :  { %14833 = vst [vmem:[#allocation26_spill] sm:$0xff] %v14506_v14  ;;  %14836 = vst [vmem:[#allocation28_spill] sm:$0xff] %v14523_v49  ;;  %v14527_v14 = vpack.c.bf16 %v9669_v15, %v9668_v6  ;;  %12202 = vmatprep.subr.bf16.mxu0 %v14460_v11  ;;  %12234 = vmatprep.subr.bf16.mxu1 %v14465_v18  ;;  %v14539_v49 = vpack.c.bf16 %v9687_v9, %v9686_v42  ;;  %v9702_v6 = vld [vmem:[%s14727_s18 + $0x360] sm:$0xff]  ;;  %v9703_v15 = vld [vmem:[%s14727_s18 + $0x368] sm:$0xff] }
0x1abc   :  { %14835 = vst [vmem:[#allocation27_spill] sm:$0xff] %v14520_v43  ;;  %v14541_v43 = vpack.c.bf16 %v9719_v38, %v9718_v3  ;;  %v9720_v38 = vld [vmem:[%s14727_s18 + $0x3f0] sm:$0xff]  ;;  %v9721_v3 = vld [vmem:[%s14727_s18 + $0x3f8] sm:$0xff]  ;;  %v12207_v9 = vpack.c.bf16 %v9671_v60, %v9670_v52  ;;  %v14563_v42 = vpack.c.bf16 %v9703_v15, %v9702_v6  ;;  %v9761_v40 = vrot.slane %v14270_v5, %v9760_v47 }
0x1abd   :  { %v9672_v18 = vld [vmem:[%s14727_s18 + $0x270] sm:$0xff]  ;;  %v14570_v62 = vpack.c.bf16 %v9721_v3, %v9720_v38  ;;  %v9705_v60 = vld [vmem:[%s14727_s18 + $0x378] sm:$0xff]  ;;  %v14837_v38 = vsub.s32 1, %v13662_v17  ;;  %v9723_v17 = vld [vmem:[%s14729_s20] sm:$0xff] }
0x1abe   :  { %12204 = vmatpush3.bf16.msra.mxu0 %v14527_v14  ;;  %12236 = vmatpush3.bf16.msra.mxu1 %v14529_v1  ;;  %v9704_v52 = vld [vmem:[%s14727_s18 + $0x370] sm:$0xff]  ;;  %v12211_v6 = vpack.c.bf16 %v9673_v55, %v9672_v18  ;;  %v14838_v55 = vmov 0.0  }
0x1abf   :  { %12206 = vmatprep.subr.bf16.mxu0 %v14539_v49  ;;  %12238 = vmatprep.subr.bf16.mxu1 %v14541_v43  ;;  %v14582_v15 = vpack.c.bf16 %v9705_v60, %v9704_v52  ;;  %v10141_v3 = vrot.slane %v14454_v31, %v14837_v38  ;;  %v14843_v18 = vld [vmem:[#allocation13_spill] sm:$0xff]  ;;  %v14855_v52 = vld [vmem:[#allocation23_spill] sm:$0xff]  ;;  %v14856_v60 = vld [vmem:[#allocation24_spill] sm:$0xff] }
0x1ac2   :  { %12208 = vmatpush3.bf16.msra.mxu0 %v12207_v9  ;;  %12240 = vmatpush3.bf16.msra.mxu1 %v14563_v42 }
0x1ac3   :  { %12210 = vmatprep.subr.bf16.mxu0 %v12209_v10  ;;  %12242 = vmatprep.subr.bf16.mxu1 %v14570_v62  ;;  %v14848_v47 = vld [vmem:[#allocation27_spill] sm:$0xff] }
0x1ac6   :  { %12212 = vmatpush3.bf16.msra.mxu0 %v12211_v6  ;;  %12244 = vmatpush3.bf16.msra.mxu1 %v14582_v15 }
0x1ac7   :  { %12258 = vmatprep.subr.bf16.mxu1 %v13832_v53  ;;  %v9724_v53 = vld [vmem:[%s14729_s20 + $0x8] sm:$0xff] }
0x1ac9   :  { %9979 = vmatmul.mubr.f32.vlgmr.msra.gmra.mrb[96].mxu0 %v9753_v56  ;;  %10049 = vmatmul.mubr.f32.vlgmr.msra.gmra.mrb[116].mxu1 %v9761_v40 }
0x1aca   :  { %12260 = vmatpush3.bf16.msra.mxu1 %v13845_v58  ;;  %10238 = vmatprep.mubr.f32.mxu1 %v10141_v3  ;;  %v9725_v58 = vld [vmem:[%s14729_s20 + $0x10] sm:$0xff] }
0x1acb   :  { %12262 = vmatprep.subr.bf16.mxu1 %v13870_v2  ;;  %11471 = vmatprep.mubr.msk.f32.mxu0 %vm12553_vm1, %v14838_v55  ;;  %v12568_v2 = vmov 0.0|0.0   ;;  %v14858_v3 = vld [vmem:[#allocation28_spill] sm:$0xff] }
0x1acc   :  { %12245 = vmatprep.subr.bf16.mxu0 %v12568_v2 }
0x1ace   :  { %12264 = vmatpush3.bf16.msra.mxu1 %v13885_v16  ;;  %v12246_v16 = vpack.c.bf16 %v9724_v53, %v9723_v17 }
0x1acf   :  { %12266 = vmatprep.subr.bf16.mxu1 %v13914_v35  ;;  %v9726_v35 = vld [vmem:[%s14729_s20 + $0x18] sm:$0xff] }
0x1ad0   :  { %12247 = vmatpush3.bf16.msra.mxu0 %v12246_v16 }
0x1ad1   :  { %12248 = vmatprep.subr.bf16.mxu0 %v12568_v2 }
0x1ad2   :  { %12268 = vmatpush3.bf16.msra.mxu1 %v13927_v25  ;;  %v12249_v25 = vpack.c.bf16 %v9726_v35, %v9725_v58 }
0x1ad3   :  { %12270 = vmatprep.subr.bf16.mxu1 %v13961_v45  ;;  %v9727_v45 = vld [vmem:[%s14729_s20 + $0x20] sm:$0xff] }
0x1ad4   :  { %12250 = vmatpush3.bf16.msra.mxu0 %v12249_v25 }
0x1ad5   :  { %12251 = vmatprep.subr.bf16.mxu0 %v12568_v2 }
0x1ad6   :  { %12272 = vmatpush3.bf16.msra.mxu1 %v13976_v63  ;;  %v9728_v63 = vld [vmem:[%s14729_s20 + $0x28] sm:$0xff] }
0x1ad7   :  { %12274 = vmatprep.subr.bf16.mxu1 %v14003_v8  ;;  %v12252_v8 = vpack.c.bf16 %v9728_v63, %v9727_v45 }
0x1ad9   :  { %12253 = vmatpush3.bf16.msra.mxu0 %v12252_v8 }
0x1ada   :  { %12276 = vmatpush3.bf16.msra.mxu1 %v14016_v34  ;;  %12254 = vmatprep.subr.bf16.mxu0 %v12568_v2  ;;  %v9729_v34 = vld [vmem:[%s14729_s20 + $0x30] sm:$0xff] }
0x1adb   :  { %12278 = vmatprep.subr.bf16.mxu1 %v14044_v27  ;;  %v9730_v27 = vld [vmem:[%s14729_s20 + $0x38] sm:$0xff] }
0x1ade   :  { %12280 = vmatpush3.bf16.msra.mxu1 %v14059_v59  ;;  %v12255_v59 = vpack.c.bf16 %v9730_v27, %v9729_v34 }
0x1adf   :  { %12282 = vmatprep.subr.bf16.mxu1 %v14088_v46 }
0x1ae0   :  { %12256 = vmatpush3.bf16.msra.mxu0 %v12255_v59 }
0x1ae1   :  { %12290 = vmatprep.subr.bf16.mxu0 %v13843_v50 }
0x1ae2   :  { %12284 = vmatpush3.bf16.msra.mxu1 %v14101_v4 }
0x1ae3   :  { %12286 = vmatprep.subr.bf16.mxu1 %v14132_v44  ;;  %v9722_v44 = vld [vmem:[%s14728_s19] sm:$0x1] }
0x1ae6   :  { %12288 = vmatpush3.bf16.msra.mxu1 %v14147_v37 }
0x1ae7   :  { %12322 = vmatprep.subr.bf16.mxu1 %v14171_v13 }
0x1ae9   :  { %10239 = vmatmul.mubr.f32.vlgmr.msra.gmra.mrb[118].mxu1 %v14477_v51  ;;  %v14849_v51 = vld [vmem:[#allocation17_spill] sm:$0xff] }
0x1aea   :  { %12324 = vmatpush3.bf16.msra.mxu1 %v14277_v32  ;;  %10378 = vmatprep.mubr.f32.mxu1 %v14482_v7  ;;  %v14850_v7 = vld [vmem:[#allocation18_spill] sm:$0xff] }
0x1aeb   :  { %12326 = vmatprep.subr.bf16.mxu1 %v14319_v24 }
0x1aee   :  { %12328 = vmatpush3.bf16.msra.mxu1 %v14338_v12 }
0x1aef   :  { %12330 = vmatprep.subr.bf16.mxu1 %v14355_v22 }
0x1af2   :  { %12332 = vmatpush3.bf16.msra.mxu1 %v14379_v19 }
0x1af3   :  { %12334 = vmatprep.subr.bf16.mxu1 %v14395_v21 }
0x1af6   :  { %12336 = vmatpush3.bf16.msra.mxu1 %v14429_v0 }
0x1af7   :  { %12338 = vmatprep.subr.bf16.mxu1 %v14444_v39  ;;  %v14839_v39 = vld [vmem:[#allocation9_spill] sm:$0xff] }
0x1afa   :  { %12340 = vmatpush3.bf16.msra.mxu1 %v14456_v33 }
0x1afb   :  { %12342 = vmatprep.subr.bf16.mxu1 %v14460_v11 }
0x1afe   :  { %12344 = vmatpush3.bf16.msra.mxu1 %v14527_v14 }
0x1aff   :  { %12346 = vmatprep.subr.bf16.mxu1 %v14539_v49  ;;  %v14853_v49 = vld [vmem:[#allocation21_spill] sm:$0xff] }
0x1b02   :  { %12348 = vmatpush3.bf16.msra.mxu1 %v12207_v9  ;;  %v14854_v9 = vld [vmem:[#allocation22_spill] sm:$0xff] }
0x1b03   :  { %12350 = vmatprep.subr.bf16.mxu1 %v12209_v10 }
0x1b06   :  { %12352 = vmatpush3.bf16.msra.mxu1 %v12211_v6  ;;  %v14857_v6 = vld [vmem:[#allocation25_spill] sm:$0xff] }
0x1b07   :  { %12385 = vmatprep.subr.bf16.mxu1 %v12568_v2 }
0x1b09   :  { %10379 = vmatmul.mubr.f32.vlgmr.msra.gmra.mrb[120].mxu1 %v14496_v20  ;;  %v14851_v20 = vld [vmem:[#allocation19_spill] sm:$0xff] }
0x1b0a   :  { %12387 = vmatpush3.bf16.msra.mxu1 %v12246_v16  ;;  %11490 = vmatprep.mubr.msk.f32.mxu1 %vm12553_vm1, %v14838_v55  ;;  %v9731_v55 = vld [vmem:[%s14730_s21] sm:$0x1]  ;;  %s12569_s21 = smov [#allocation6]  }
0x1b0b   :  { %12388 = vmatprep.subr.bf16.mxu1 %v12568_v2  ;;  %s10536_s12 = sshll.u32 %s12569_s21, 4  ;;  %s10537_s12 = int_to_ptr.vmem [resolvable:$true] %s10536_s12 }
0x1b0c   :  { %s12522_s2 = scalar_lea.vmem %s10537_s12, 32  ;;  %p12527_p9 = scmp.lt.s32.totalorder %s10537_s12, %s10537_s12 }
0x1b0d   :  { %p12523_p8 = scmp.ne.s32.totalorder %s10537_s12, %s12522_s2  ;;  %p12528_p10 = scmp.lt.s32.totalorder %s12522_s2, %s12522_s2 }
0x1b0e   :  { %12390 = vmatpush3.bf16.msra.mxu1 %v12249_v25 }
0x1b0f   :  { %12391 = vmatprep.subr.bf16.mxu1 %v12568_v2  ;;  %p12529_p11 = por %p12528_p10, %p12527_p9 }
0x1b11   :  { %p12530_p12 = pnand %p12529_p11, %p12523_p8 }
0x1b12   :  { %12393 = vmatpush3.bf16.msra.mxu1 %v12252_v8 }
0x1b13   :  { %12394 = vmatprep.subr.bf16.mxu1 %v12568_v2 }
0x1b16   :  { %12396 = vmatpush3.bf16.msra.mxu1 %v12255_v59 }
0x1b7c   :  { %v10893_v46 = vpop.f32.mrb[94].mxu0  ;;  %v10928_v4 = vpop.f32.mrb[114].mxu1 }
0x1b7d   :  { %v10894_v37 = vpop.f32.mrb[95].mxu0  ;;  %v10929_v13 = vpop.f32.mrb[115].mxu1 }
0x1b7e   :  { %v10895_v24 = vadd.f32 %v10894_v37, %v10893_v46  ;;  %v10930_v11 = vadd.f32 %v10929_v13, %v10928_v4 }
0x1b80   :  { %v9841_v5 = vadd.f32 %v10895_v24, %v9722_v44 }
0x1b82   :  { %v9911_v32 = vadd.f32 %v10930_v11, %v9841_v5 }
0x1b9c   :  { %v10963_v12 = vpop.f32.mrb[96].mxu0  ;;  %v10998_v10 = vpop.f32.mrb[116].mxu1 }
0x1b9d   :  { %v10964_v22 = vpop.f32.mrb[97].mxu0  ;;  %v10999_v19 = vpop.f32.mrb[117].mxu1 }
0x1b9e   :  { %v10965_v33 = vadd.f32 %v10964_v22, %v10963_v12  ;;  %v11000_v21 = vadd.f32 %v10999_v19, %v10998_v10 }
0x1ba0   :  { %v9981_v0 = vadd.f32 %v10965_v33, %v9911_v32 }
0x1ba2   :  { %v10051_v50 = vadd.f32 %v11000_v21, %v9981_v0 }
0x1ba4   :  { %v10054_v14 = vmax.f32 %v10051_v50, 0.0 }
0x1ba6   :  { %11472 = vmatmul.mubr.msk.f32.vlgmr.msra.gmra.mrb[98].mxu0 %vm10055_vm6, %v10054_v14 }
0x1ba7   :  { %12292 = vmatpush3.bf16.msra.mxu0 %v13856_v29  ;;  %10308 = vmatprep.mubr.f32.mxu0 %v14501_v36  ;;  %v14840_v29 = vld [vmem:[#allocation10_spill] sm:$0xff]  ;;  %v14852_v36 = vld [vmem:[#allocation20_spill] sm:$0xff] }
0x1ba8   :  { %12294 = vmatprep.subr.bf16.mxu0 %v13883_v54  ;;  %v14841_v54 = vld [vmem:[#allocation11_spill] sm:$0xff] }
0x1bab   :  { %12296 = vmatpush3.bf16.msra.mxu0 %v13898_v28 }
0x1bac   :  { %12298 = vmatprep.subr.bf16.mxu0 %v13925_v23  ;;  %v14842_v23 = vld [vmem:[#allocation12_spill] sm:$0xff] }
0x1baf   :  { %12300 = vmatpush3.bf16.msra.mxu0 %v13946_v57 }
0x1bb0   :  { %12302 = vmatprep.subr.bf16.mxu0 %v13974_v61  ;;  %v14844_v61 = vld [vmem:[#allocation14_spill] sm:$0xff] }
0x1bb3   :  { %12304 = vmatpush3.bf16.msra.mxu0 %v13987_v41  ;;  %v14845_v41 = vld [vmem:[#allocation15_spill] sm:$0xff] }
0x1bb4   :  { %12306 = vmatprep.subr.bf16.mxu0 %v14014_v30  ;;  %v14846_v30 = vld [vmem:[#allocation26_spill] sm:$0xff] }
0x1bb7   :  { %12308 = vmatpush3.bf16.msra.mxu0 %v14030_v48  ;;  %v14847_v48 = vld [vmem:[#allocation16_spill] sm:$0xff] }
0x1bb8   :  { %12310 = vmatprep.subr.bf16.mxu0 %v14839_v39 }
0x1bbb   :  { %12312 = vmatpush3.bf16.msra.mxu0 %v14840_v29 }
0x1bbc   :  { %v11042_v31 = vpop.f32.mrb[118].mxu1  ;;  %12314 = vmatprep.subr.bf16.mxu0 %v14841_v54 }
0x1bbd   :  { %v11043_v28 = vpop.f32.mrb[119].mxu1 }
0x1bbe   :  { %v11044_v26 = vadd.f32 %v11043_v28, %v11042_v31 }
0x1bbf   :  { %12316 = vmatpush3.bf16.msra.mxu0 %v14842_v23 }
0x1bc0   :  { %v10241_v57 = vadd.f32 %v11044_v26, %v9722_v44  ;;  %12318 = vmatprep.subr.bf16.mxu0 %v14843_v18 }
0x1bc3   :  { %12320 = vmatpush3.bf16.msra.mxu0 %v14844_v61 }
0x1bc4   :  { %12354 = vmatprep.subr.bf16.mxu0 %v14845_v41 }
0x1bc6   :  { %10309 = vmatmul.mubr.f32.vlgmr.msra.gmra.mrb[100].mxu0 %v14846_v30 }
0x1bc7   :  { %12356 = vmatpush3.bf16.msra.mxu0 %v14847_v48  ;;  %10448 = vmatprep.mubr.f32.mxu0 %v14848_v47 }
0x1bc8   :  { %12358 = vmatprep.subr.bf16.mxu0 %v14849_v51 }
0x1bcb   :  { %12360 = vmatpush3.bf16.msra.mxu0 %v14850_v7 }
0x1bcc   :  { %12362 = vmatprep.subr.bf16.mxu0 %v14851_v20 }
0x1bcf   :  { %12364 = vmatpush3.bf16.msra.mxu0 %v14852_v36 }
0x1bd0   :  { %12366 = vmatprep.subr.bf16.mxu0 %v14853_v49 }
0x1bd3   :  { %12368 = vmatpush3.bf16.msra.mxu0 %v14854_v9 }
0x1bd4   :  { %12370 = vmatprep.subr.bf16.mxu0 %v14855_v52 }
0x1bd7   :  { %12372 = vmatpush3.bf16.msra.mxu0 %v14856_v60 }
0x1bd8   :  { %12374 = vmatprep.subr.bf16.mxu0 %v14857_v6 }
0x1bdb   :  { %12376 = vmatpush3.bf16.msra.mxu0 %v14529_v1 }
0x1bdc   :  { %v11112_v56 = vpop.f32.mrb[120].mxu1  ;;  %12378 = vmatprep.subr.bf16.mxu0 %v14541_v43 }
0x1bdd   :  { %v11113_v40 = vpop.f32.mrb[121].mxu1 }
0x1bde   :  { %v11114_v38 = vadd.f32 %v11113_v40, %v11112_v56 }
0x1bdf   :  { %12380 = vmatpush3.bf16.msra.mxu0 %v14563_v42 }
0x1be0   :  { %12382 = vmatprep.subr.bf16.mxu0 %v14570_v62 }
0x1be3   :  { %12384 = vmatpush3.bf16.msra.mxu0 %v14582_v15 }
0x1be6   :  { %10449 = vmatmul.mubr.f32.vlgmr.msra.gmra.mrb[102].mxu0 %v14858_v3 }
0x1c79   :  { %v10125_v17 = vpop.f32.mrb[98].mxu0 }
0x1c7a   :  { %v10126_v53 = vadd.f32 %v10125_v17, %v9731_v55  ;;  %v11473_v1 = vpop.f32.mrb[99].mxu0 }
0x1c7c   :  { %v10129_v58 = vmax.f32 %v10126_v53, 0.0 }
0x1c7e   :  { %10131 = vst.msk [vmem:[#allocation6] sm:$0x1] %vm10130_vm7, %v10129_v58 }
0x1c99   :  { %v11077_v43 = vpop.f32.mrb[100].mxu0 }
0x1c9a   :  { %v11078_v2 = vpop.f32.mrb[101].mxu0 }
0x1c9b   :  { %v11079_v42 = vadd.f32 %v11078_v2, %v11077_v43 }
0x1c9d   :  { %v10311_v16 = vadd.f32 %v11079_v42, %v10241_v57 }
0x1c9f   :  { %v10381_v62 = vadd.f32 %v11114_v38, %v10311_v16 }
0x1cb9   :  { %v11147_v35 = vpop.f32.mrb[102].mxu0 }
0x1cba   :  { %v11148_v15 = vpop.f32.mrb[103].mxu0 }
0x1cbb   :  { %v11149_v25 = vadd.f32 %v11148_v15, %v11147_v35 }
0x1cbd   :  { %v10451_v45 = vadd.f32 %v11149_v25, %v10381_v62 }
0x1cbf   :  { %v10454_v63 = vmax.f32 %v10451_v45, 0.0 }
0x1cc1   :  { %11491 = vmatmul.mubr.msk.f32.vlgmr.msra.gmra.mrb[122].mxu1 %vm10055_vm6, %v10454_v63 }
0x1d94   :  { %v10524_v8 = vpop.f32.mrb[122].mxu1 }
0x1d95   :  { %v10525_v34 = vadd.f32 %v10524_v8, %v9731_v55  ;;  %v11492_v27 = vpop.f32.mrb[123].mxu1 }
0x1d97   :  { %v10528_v59 = vmax.f32 %v10525_v34, 0.0 }
0x1d99   :  { %10529 = vst.msk [vmem:[#allocation6 + $0x1] sm:$0x1] %vm10130_vm7, %v10528_v59 }
0x1d9a   :  { %12533 = shalt.err (!%p12530_p12)
}
0x1d9b   :  { %s12534_s3 = scalar_lea.hbm %s14731_s22, 32 }
0x1d9c   :  { %p12535_p13 = scmp.ne.s32.totalorder %s14731_s22, %s12534_s3  ;;  %p12538_p0 = scmp.lt.u32.totalorder %s12534_s3, %s14731_s22 }
0x1d9e   :  { %p12540_p1 = pnand %p12538_p0, %p12535_p13 }
0x1da0   :  { %12543 = shalt.err (!%p12540_p1)
}
0x1da1   :  { %10539 = dma.vmem_to_hbm [thread:$0]  %s10537_s12, 32, %s14731_s22, [#allocation5]  }
0x1da2   :  { %12546 = dma.done.wait [#allocation5], 32  }
0x1da3   :  { %12547 = vsyncadd [#allocation5], 4294967264 }
0x1da4   :  { %10543 = vsyncpa [#allocation4], 1 }
0x1da5   :  { %10544 = vsyncpa [#allocation5], 1 }

</bundles_post_ra>
